<compile_context>
chip_gen: v6e
topology: v6e:2x2x1
jax: 0.10.0
libtpu: 0.0.40
codegen_flags: <defaults>
</compile_context>

<pallas_src>
import functools

import jax
import jax.numpy as jnp
from jax.experimental import pallas as pl
from jax.experimental.pallas import tpu as pltpu


# --------------------------------------------------------------------------------------
# In-kernel helpers
# --------------------------------------------------------------------------------------
def _conv3x3_acc(xp, w_ref, Ho, Wo, stride, cout):
    """3x3 conv of a zero-padded (Hp, Wp, C) f32 buffer against (9, C, Cout) bf16 weights.

    bf16 MXU inputs, f32 accumulation. Returns (Ho*Wo, Cout) f32.
    """
    c = xp.shape[-1]
    acc = jnp.zeros((Ho * Wo, cout), jnp.float32)
    for kh in range(3):
        for kw in range(3):
            # NOTE: for stride>1 this is a strided slice (XLU cost); demo uses stride=1.
            tap = xp[kh:kh + (Ho - 1) * stride + 1:stride,
                     kw:kw + (Wo - 1) * stride + 1:stride, :]
            acc = acc + jnp.dot(tap.reshape(Ho * Wo, c).astype(jnp.bfloat16),
                                w_ref[3 * kh + kw],
                                preferred_element_type=jnp.float32)
    return acc


def _bb_body(x_ref, w1_ref, s1_ref, b1_ref, w2_ref, s2_ref, b2_ref,
             proj_refs, o_ref, xpad_ref, y1pad_ref, *, stride, H, W, Ho, Wo):
    cin = x_ref.shape[-1]
    cmid = s1_ref.shape[-1]
    cout = o_ref.shape[-1]

    x = x_ref[0]                                                   # (H, W, Cin)

    # ---- zero-pad conv1 input into VMEM scratch (no HBM-side jnp.pad) ----
    xpad_ref[...] = jnp.zeros_like(xpad_ref)
    xpad_ref[pl.ds(1, H), pl.ds(1, W), :] = x.astype(xpad_ref.dtype)

    # ---- conv1 (3x3, stride) + BN1 + ReLU (f32 epilogue) ----
    acc1 = _conv3x3_acc(xpad_ref[...], w1_ref, Ho, Wo, stride, cmid)
    y1 = jnp.maximum(acc1 * s1_ref[...] + b1_ref[...], 0.0)        # (Ho*Wo, Cmid) f32

    # ---- keep y1 in VMEM: zero-pad it for conv2 ----
    y1pad_ref[...] = jnp.zeros_like(y1pad_ref)
    y1pad_ref[pl.ds(1, Ho), pl.ds(1, Wo), :] = y1.reshape(Ho, Wo, cmid).astype(y1pad_ref.dtype)

    # ---- conv2 (3x3, stride 1) + BN2 ----
    acc2 = _conv3x3_acc(y1pad_ref[...], w2_ref, Ho, Wo, 1, cout)
    y2 = acc2 * s2_ref[...] + b2_ref[...]                          # (Ho*Wo, Cout) f32

    # ---- shortcut: projection (1x1 conv + BN) or identity ----
    if proj_refs is not None:
        ws_ref, ss_ref, bs_ref = proj_refs
        xs = x[:(Ho - 1) * stride + 1:stride, :(Wo - 1) * stride + 1:stride, :]
        sc = jnp.dot(xs.reshape(Ho * Wo, cin).astype(ws_ref.dtype), ws_ref[...],
                     preferred_element_type=jnp.float32)
        sc = sc * ss_ref[...] + bs_ref[...]
    else:
        sc = x.reshape(Ho * Wo, cout).astype(jnp.float32)

    # ---- residual add + final ReLU; flat (Ho*Wo, Cout) store (no final reshape) ----
    o_ref[0] = jnp.maximum(y2 + sc, 0.0).astype(o_ref.dtype)


def _bb_kernel_proj(x_ref, w1_ref, s1_ref, b1_ref, w2_ref, s2_ref, b2_ref,
                    ws_ref, ss_ref, bs_ref, o_ref, xpad_ref, y1pad_ref,
                    *, stride, H, W, Ho, Wo):
    _bb_body(x_ref, w1_ref, s1_ref, b1_ref, w2_ref, s2_ref, b2_ref,
             (ws_ref, ss_ref, bs_ref), o_ref, xpad_ref, y1pad_ref,
             stride=stride, H=H, W=W, Ho=Ho, Wo=Wo)


def _bb_kernel_identity(x_ref, w1_ref, s1_ref, b1_ref, w2_ref, s2_ref, b2_ref,
                        o_ref, xpad_ref, y1pad_ref, *, stride, H, W, Ho, Wo):
    _bb_body(x_ref, w1_ref, s1_ref, b1_ref, w2_ref, s2_ref, b2_ref,
             None, o_ref, xpad_ref, y1pad_ref,
             stride=stride, H=H, W=W, Ho=Ho, Wo=Wo)


# --------------------------------------------------------------------------------------
# pallas_call wrapper (one fused call; grid over batch, marked parallel for v7x megacore)
# --------------------------------------------------------------------------------------
def fold_bn(gamma, beta, mean, var, eps=1e-5):
    scale = gamma / jnp.sqrt(var + eps)
    bias = beta - mean * scale
    return scale.reshape(1, -1), bias.reshape(1, -1)


def _basic_block_pallas(x_nhwc, params, *, stride, has_proj):
    N, H, W, Cin = x_nhwc.shape
    Cmid = params["w1"].shape[-1]
    Cout = params["w2"].shape[-1]
    Ho = (H - 1) // stride + 1
    Wo = (W - 1) // stride + 1

    s1, b1 = fold_bn(*params["bn1"])
    s2, b2 = fold_bn(*params["bn2"])
    # Flatten HWIO -> (9, Cin, Cout) and ship weights as bf16 (halves weight DMA,
    # single-pass bf16 MXU with f32 accumulation).
    w1 = params["w1"].reshape(9, Cin, Cmid).astype(jnp.bfloat16)
    w2 = params["w2"].reshape(9, Cmid, Cout).astype(jnp.bfloat16)

    args = [x_nhwc, w1, s1, b1, w2, s2, b2]
    in_specs = [
        pl.BlockSpec((1, H, W, Cin), lambda n: (n, 0, 0, 0)),
        pl.BlockSpec((9, Cin, Cmid), lambda n: (0, 0, 0)),
        pl.BlockSpec((1, Cmid), lambda n: (0, 0)),
        pl.BlockSpec((1, Cmid), lambda n: (0, 0)),
        pl.BlockSpec((9, Cmid, Cout), lambda n: (0, 0, 0)),
        pl.BlockSpec((1, Cout), lambda n: (0, 0)),
        pl.BlockSpec((1, Cout), lambda n: (0, 0)),
    ]
    if has_proj:
        ss, bs = fold_bn(*params["bns"])
        args += [params["ws"].astype(jnp.bfloat16), ss, bs]
        in_specs += [
            pl.BlockSpec((Cin, Cout), lambda n: (0, 0)),
            pl.BlockSpec((1, Cout), lambda n: (0, 0)),
            pl.BlockSpec((1, Cout), lambda n: (0, 0)),
        ]
        kernel = functools.partial(_bb_kernel_proj, stride=stride, H=H, W=W, Ho=Ho, Wo=Wo)
    else:
        kernel = functools.partial(_bb_kernel_identity, stride=stride, H=H, W=W, Ho=Ho, Wo=Wo)

    # TODO(synk): for large H*W*C, tile the spatial dim in the grid (halo'd row tiles) and
    # budget VMEM against v7x's 64 MiB; whole-image blocks are fine at these demo shapes.
    out = pl.pallas_call(
        kernel,
        out_shape=jax.ShapeDtypeStruct((N, Ho * Wo, Cout), x_nhwc.dtype),
        grid=(N,),
        in_specs=in_specs,
        out_specs=pl.BlockSpec((1, Ho * Wo, Cout), lambda n: (n, 0, 0)),
        scratch_shapes=[
            pltpu.VMEM((H + 2, W + 2, Cin), jnp.float32),     # padded conv1 input
            pltpu.VMEM((Ho + 2, Wo + 2, Cmid), jnp.float32),  # padded intermediate y1
        ],
        compiler_params=pltpu.CompilerParams(dimension_semantics=("parallel",)),
    )(*args)
    return out.reshape(N, Ho, Wo, Cout)


# --------------------------------------------------------------------------------------
# BasicBlock module (parameters + forward)
# --------------------------------------------------------------------------------------
def init_basic_block_params(key, in_channels, out_channels):
    ks = jax.random.split(key, 7)
    c_out = out_channels  # expansion = 1
    w1 = jax.random.normal(ks[0], (3, 3, in_channels, c_out), jnp.float32) * (2.0 / (9 * in_channels)) ** 0.5
    w2 = jax.random.normal(ks[1], (3, 3, c_out, c_out), jnp.float32) * (2.0 / (9 * c_out)) ** 0.5
    ws = jax.random.normal(ks[2], (in_channels, c_out), jnp.float32) * (2.0 / in_channels) ** 0.5

    def bn(k, c):
        k1, k2, k3, k4 = jax.random.split(k, 4)
        gamma = 1.0 + 0.1 * jax.random.normal(k1, (c,), jnp.float32)
        beta = 0.1 * jax.random.normal(k2, (c,), jnp.float32)
        mean = 0.1 * jax.random.normal(k3, (c,), jnp.float32)
        var = 1.0 + 0.1 * jax.random.uniform(k4, (c,), jnp.float32)
        return gamma, beta, mean, var

    # TODO(synk): BatchNorm is implemented in inference mode (running stats), not train-mode batch stats.
    return {
        "w1": w1, "bn1": bn(ks[3], c_out),
        "w2": w2, "bn2": bn(ks[4], c_out),
        "ws": ws, "bns": bn(ks[5], c_out),
    }


def basic_block_forward(x_nchw, params, in_channels, out_channels, stride=1):
    x = jnp.transpose(x_nchw, (0, 2, 3, 1))  # NCHW -> NHWC
    has_proj = (stride != 1) or (in_channels != out_channels)
    y = _basic_block_pallas(x, params, stride=stride, has_proj=has_proj)
    return jnp.transpose(y, (0, 3, 1, 2))    # NHWC -> NCHW


# --------------------------------------------------------------------------------------
# Pure-JAX reference (same bf16-in / f32-accumulate numerics as the kernel)
# --------------------------------------------------------------------------------------
def _ref_forward(x_nchw, params, in_channels, out_channels, stride=1):
    x = jnp.transpose(x_nchw, (0, 2, 3, 1))

    def conv(z, w, s, pad):
        return jax.lax.conv_general_dilated(
            z.astype(jnp.bfloat16), w.astype(jnp.bfloat16), (s, s),
            [(pad, pad), (pad, pad)],
            dimension_numbers=("NHWC", "HWIO", "NHWC"),
            preferred_element_type=jnp.float32)

    s1, b1 = fold_bn(*params["bn1"])
    s2, b2 = fold_bn(*params["bn2"])
    y = jnp.maximum(conv(x, params["w1"], stride, 1) * s1 + b1, 0.0)
    y = conv(y, params["w2"], 1, 1) * s2 + b2
    if stride != 1 or in_channels != out_channels:
        ss, bs = fold_bn(*params["bns"])
        sc = conv(x, params["ws"].reshape(1, 1, in_channels, out_channels), stride, 0) * ss + bs
    else:
        sc = x
    return jnp.transpose(jnp.maximum(y + sc, 0.0), (0, 3, 1, 2))


# --------------------------------------------------------------------------------------
if __name__ == "__main__":
    key = jax.random.PRNGKey(0)
    k_x, k_p = jax.random.split(key)

    N, Cin, H, W = 2, 4, 16, 16
    Cout = 8
    stride = 1

    x = jax.random.normal(k_x, (N, Cin, H, W), jnp.float32)
    params = init_basic_block_params(k_p, Cin, Cout)

    out = basic_block_forward(x, params, Cin, Cout, stride=stride)
    out = jax.block_until_ready(out)

    ref = jax.block_until_ready(_ref_forward(x, params, Cin, Cout, stride=stride))
    assert out.shape == (N, Cout, H, W), out.shape
    max_err = float(jnp.max(jnp.abs(out - ref)))
    # Both kernel and reference use bf16 MXU inputs with f32 accumulation.
    assert jnp.allclose(out, ref, atol=1e-2, rtol=1e-2), max_err

    print("KERNEL_OK")
</pallas_src>

<mosaic_0001>
module attributes {stable_mosaic.version = 11 : i64} {
  func.func @_bb_kernel_proj(%arg0: i32, %arg1: memref<1x16x16x4xf32, #tpu.memory_space<vmem>>, %arg2: memref<9x4x8xbf16, #tpu.memory_space<vmem>>, %arg3: memref<1x8xf32, #tpu.memory_space<vmem>>, %arg4: memref<1x8xf32, #tpu.memory_space<vmem>>, %arg5: memref<9x8x8xbf16, #tpu.memory_space<vmem>>, %arg6: memref<1x8xf32, #tpu.memory_space<vmem>>, %arg7: memref<1x8xf32, #tpu.memory_space<vmem>>, %arg8: memref<4x8xbf16, #tpu.memory_space<vmem>>, %arg9: memref<1x8xf32, #tpu.memory_space<vmem>>, %arg10: memref<1x8xf32, #tpu.memory_space<vmem>>, %arg11: memref<1x256x8xf32, #tpu.memory_space<vmem>>, %arg12: memref<18x18x4xf32, #tpu.memory_space<vmem>>, %arg13: memref<18x18x8xf32, #tpu.memory_space<vmem>>) attributes {dimension_semantics = [#tpu.dimension_semantics<parallel>], iteration_bounds = array<i64: 2>, scalar_prefetch = 0 : i64, scratch_operands = 2 : i64, tpu.core_type = #tpu.core_type<tc>, window_params = [{transform_indices = @transform_0, window_bounds = array<i64: 1, 16, 16, 4>}, {pipeline_mode = #tpu.pipeline_mode<synchronous>, transform_indices = @transform_1, window_bounds = array<i64: 9, 4, 8>}, {pipeline_mode = #tpu.pipeline_mode<synchronous>, transform_indices = @transform_2, window_bounds = array<i64: 1, 8>}, {pipeline_mode = #tpu.pipeline_mode<synchronous>, transform_indices = @transform_3, window_bounds = array<i64: 1, 8>}, {pipeline_mode = #tpu.pipeline_mode<synchronous>, transform_indices = @transform_4, window_bounds = array<i64: 9, 8, 8>}, {pipeline_mode = #tpu.pipeline_mode<synchronous>, transform_indices = @transform_5, window_bounds = array<i64: 1, 8>}, {pipeline_mode = #tpu.pipeline_mode<synchronous>, transform_indices = @transform_6, window_bounds = array<i64: 1, 8>}, {pipeline_mode = #tpu.pipeline_mode<synchronous>, transform_indices = @transform_7, window_bounds = array<i64: 4, 8>}, {pipeline_mode = #tpu.pipeline_mode<synchronous>, transform_indices = @transform_8, window_bounds = array<i64: 1, 8>}, {pipeline_mode = #tpu.pipeline_mode<synchronous>, transform_indices = @transform_9, window_bounds = array<i64: 1, 8>}, {transform_indices = @transform_10, window_bounds = array<i64: 1, 256, 8>}]} {
    %c0 = arith.constant 0 : index
    %c0_0 = arith.constant 0 : index
    %c0_1 = arith.constant 0 : index
    %c0_2 = arith.constant 0 : index
    %0 = vector.load %arg1[%c0, %c0_0, %c0_1, %c0_2] : memref<1x16x16x4xf32, #tpu.memory_space<vmem>>, vector<1x16x16x4xf32>
    %1 = vector.shape_cast %0 : vector<1x16x16x4xf32> to vector<16x16x4xf32>
    %cst = arith.constant 0.000000e+00 : f32
    %2 = vector.broadcast %cst : f32 to vector<18x18x4xf32>
    %c0_3 = arith.constant 0 : index
    %c0_4 = arith.constant 0 : index
    %c0_5 = arith.constant 0 : index
    %3 = vector.load %arg12[%c0_3, %c0_4, %c0_5] : memref<18x18x4xf32, #tpu.memory_space<vmem>>, vector<18x18x4xf32>
    tpu.vector_store %arg12[%c0_3, %c0_4, %c0_5], %2 {strides = array<i32>} : memref<18x18x4xf32, #tpu.memory_space<vmem>>, vector<18x18x4xf32>,
    %c1 = arith.constant 1 : index
    %c1_6 = arith.constant 1 : index
    %c0_7 = arith.constant 0 : index
    %4 = vector.load %arg12[%c1, %c1_6, %c0_7] : memref<18x18x4xf32, #tpu.memory_space<vmem>>, vector<16x16x4xf32>
    tpu.vector_store %arg12[%c1, %c1_6, %c0_7], %1 {strides = array<i32>} : memref<18x18x4xf32, #tpu.memory_space<vmem>>, vector<16x16x4xf32>,
    %c0_8 = arith.constant 0 : index
    %c0_9 = arith.constant 0 : index
    %c0_10 = arith.constant 0 : index
    %5 = vector.load %arg12[%c0_8, %c0_9, %c0_10] : memref<18x18x4xf32, #tpu.memory_space<vmem>>, vector<18x18x4xf32>
    %cst_11 = arith.constant 0.000000e+00 : f32
    %6 = vector.broadcast %cst_11 : f32 to vector<256x8xf32>
    %7 = vector.extract_strided_slice %5 {offsets = [0, 0, 0], sizes = [16, 16, 4], strides = [1, 1, 1]} : vector<18x18x4xf32> to vector<16x16x4xf32>
    %8 = vector.shape_cast %7 : vector<16x16x4xf32> to vector<256x4xf32>
    %9 = arith.truncf %8 : vector<256x4xf32> to vector<256x4xbf16>
    %c0_12 = arith.constant 0 : index
    %c0_13 = arith.constant 0 : index
    %c0_14 = arith.constant 0 : index
    %10 = vector.load %arg2[%c0_12, %c0_13, %c0_14] : memref<9x4x8xbf16, #tpu.memory_space<vmem>>, vector<1x4x8xbf16>
    %11 = vector.shape_cast %10 : vector<1x4x8xbf16> to vector<4x8xbf16>
    %cst_15 = arith.constant dense<0.000000e+00> : vector<256x8xf32>
    %12 = tpu.matmul %9, %11, %cst_15 {dimension_numbers = #tpu.dot_dimension_numbers<[1], [0], [0], [1], [0, 0, 1, 1], [], []>} : vector<256x4xbf16>, vector<4x8xbf16>, vector<256x8xf32> -> vector<256x8xf32>
    %13 = arith.addf %6, %12 : vector<256x8xf32>
    %14 = vector.extract_strided_slice %5 {offsets = [0, 1, 0], sizes = [16, 16, 4], strides = [1, 1, 1]} : vector<18x18x4xf32> to vector<16x16x4xf32>
    %15 = vector.shape_cast %14 : vector<16x16x4xf32> to vector<256x4xf32>
    %16 = arith.truncf %15 : vector<256x4xf32> to vector<256x4xbf16>
    %c1_16 = arith.constant 1 : index
    %c0_17 = arith.constant 0 : index
    %c0_18 = arith.constant 0 : index
    %17 = vector.load %arg2[%c1_16, %c0_17, %c0_18] : memref<9x4x8xbf16, #tpu.memory_space<vmem>>, vector<1x4x8xbf16>
    %18 = vector.shape_cast %17 : vector<1x4x8xbf16> to vector<4x8xbf16>
    %cst_19 = arith.constant dense<0.000000e+00> : vector<256x8xf32>
    %19 = tpu.matmul %16, %18, %cst_19 {dimension_numbers = #tpu.dot_dimension_numbers<[1], [0], [0], [1], [0, 0, 1, 1], [], []>} : vector<256x4xbf16>, vector<4x8xbf16>, vector<256x8xf32> -> vector<256x8xf32>
    %20 = arith.addf %13, %19 : vector<256x8xf32>
    %21 = vector.extract_strided_slice %5 {offsets = [0, 2, 0], sizes = [16, 16, 4], strides = [1, 1, 1]} : vector<18x18x4xf32> to vector<16x16x4xf32>
    %22 = vector.shape_cast %21 : vector<16x16x4xf32> to vector<256x4xf32>
    %23 = arith.truncf %22 : vector<256x4xf32> to vector<256x4xbf16>
    %c2 = arith.constant 2 : index
    %c0_20 = arith.constant 0 : index
    %c0_21 = arith.constant 0 : index
    %24 = vector.load %arg2[%c2, %c0_20, %c0_21] : memref<9x4x8xbf16, #tpu.memory_space<vmem>>, vector<1x4x8xbf16>
    %25 = vector.shape_cast %24 : vector<1x4x8xbf16> to vector<4x8xbf16>
    %cst_22 = arith.constant dense<0.000000e+00> : vector<256x8xf32>
    %26 = tpu.matmul %23, %25, %cst_22 {dimension_numbers = #tpu.dot_dimension_numbers<[1], [0], [0], [1], [0, 0, 1, 1], [], []>} : vector<256x4xbf16>, vector<4x8xbf16>, vector<256x8xf32> -> vector<256x8xf32>
    %27 = arith.addf %20, %26 : vector<256x8xf32>
    %28 = vector.extract_strided_slice %5 {offsets = [1, 0, 0], sizes = [16, 16, 4], strides = [1, 1, 1]} : vector<18x18x4xf32> to vector<16x16x4xf32>
    %29 = vector.shape_cast %28 : vector<16x16x4xf32> to vector<256x4xf32>
    %30 = arith.truncf %29 : vector<256x4xf32> to vector<256x4xbf16>
    %c3 = arith.constant 3 : index
    %c0_23 = arith.constant 0 : index
    %c0_24 = arith.constant 0 : index
    %31 = vector.load %arg2[%c3, %c0_23, %c0_24] : memref<9x4x8xbf16, #tpu.memory_space<vmem>>, vector<1x4x8xbf16>
    %32 = vector.shape_cast %31 : vector<1x4x8xbf16> to vector<4x8xbf16>
    %cst_25 = arith.constant dense<0.000000e+00> : vector<256x8xf32>
    %33 = tpu.matmul %30, %32, %cst_25 {dimension_numbers = #tpu.dot_dimension_numbers<[1], [0], [0], [1], [0, 0, 1, 1], [], []>} : vector<256x4xbf16>, vector<4x8xbf16>, vector<256x8xf32> -> vector<256x8xf32>
    %34 = arith.addf %27, %33 : vector<256x8xf32>
    %35 = vector.extract_strided_slice %5 {offsets = [1, 1, 0], sizes = [16, 16, 4], strides = [1, 1, 1]} : vector<18x18x4xf32> to vector<16x16x4xf32>
    %36 = vector.shape_cast %35 : vector<16x16x4xf32> to vector<256x4xf32>
    %37 = arith.truncf %36 : vector<256x4xf32> to vector<256x4xbf16>
    %c4 = arith.constant 4 : index
    %c0_26 = arith.constant 0 : index
    %c0_27 = arith.constant 0 : index
    %38 = vector.load %arg2[%c4, %c0_26, %c0_27] : memref<9x4x8xbf16, #tpu.memory_space<vmem>>, vector<1x4x8xbf16>
    %39 = vector.shape_cast %38 : vector<1x4x8xbf16> to vector<4x8xbf16>
    %cst_28 = arith.constant dense<0.000000e+00> : vector<256x8xf32>
    %40 = tpu.matmul %37, %39, %cst_28 {dimension_numbers = #tpu.dot_dimension_numbers<[1], [0], [0], [1], [0, 0, 1, 1], [], []>} : vector<256x4xbf16>, vector<4x8xbf16>, vector<256x8xf32> -> vector<256x8xf32>
    %41 = arith.addf %34, %40 : vector<256x8xf32>
    %42 = vector.extract_strided_slice %5 {offsets = [1, 2, 0], sizes = [16, 16, 4], strides = [1, 1, 1]} : vector<18x18x4xf32> to vector<16x16x4xf32>
    %43 = vector.shape_cast %42 : vector<16x16x4xf32> to vector<256x4xf32>
    %44 = arith.truncf %43 : vector<256x4xf32> to vector<256x4xbf16>
    %c5 = arith.constant 5 : index
    %c0_29 = arith.constant 0 : index
    %c0_30 = arith.constant 0 : index
    %45 = vector.load %arg2[%c5, %c0_29, %c0_30] : memref<9x4x8xbf16, #tpu.memory_space<vmem>>, vector<1x4x8xbf16>
    %46 = vector.shape_cast %45 : vector<1x4x8xbf16> to vector<4x8xbf16>
    %cst_31 = arith.constant dense<0.000000e+00> : vector<256x8xf32>
    %47 = tpu.matmul %44, %46, %cst_31 {dimension_numbers = #tpu.dot_dimension_numbers<[1], [0], [0], [1], [0, 0, 1, 1], [], []>} : vector<256x4xbf16>, vector<4x8xbf16>, vector<256x8xf32> -> vector<256x8xf32>
    %48 = arith.addf %41, %47 : vector<256x8xf32>
    %49 = vector.extract_strided_slice %5 {offsets = [2, 0, 0], sizes = [16, 16, 4], strides = [1, 1, 1]} : vector<18x18x4xf32> to vector<16x16x4xf32>
    %50 = vector.shape_cast %49 : vector<16x16x4xf32> to vector<256x4xf32>
    %51 = arith.truncf %50 : vector<256x4xf32> to vector<256x4xbf16>
    %c6 = arith.constant 6 : index
    %c0_32 = arith.constant 0 : index
    %c0_33 = arith.constant 0 : index
    %52 = vector.load %arg2[%c6, %c0_32, %c0_33] : memref<9x4x8xbf16, #tpu.memory_space<vmem>>, vector<1x4x8xbf16>
    %53 = vector.shape_cast %52 : vector<1x4x8xbf16> to vector<4x8xbf16>
    %cst_34 = arith.constant dense<0.000000e+00> : vector<256x8xf32>
    %54 = tpu.matmul %51, %53, %cst_34 {dimension_numbers = #tpu.dot_dimension_numbers<[1], [0], [0], [1], [0, 0, 1, 1], [], []>} : vector<256x4xbf16>, vector<4x8xbf16>, vector<256x8xf32> -> vector<256x8xf32>
    %55 = arith.addf %48, %54 : vector<256x8xf32>
    %56 = vector.extract_strided_slice %5 {offsets = [2, 1, 0], sizes = [16, 16, 4], strides = [1, 1, 1]} : vector<18x18x4xf32> to vector<16x16x4xf32>
    %57 = vector.shape_cast %56 : vector<16x16x4xf32> to vector<256x4xf32>
    %58 = arith.truncf %57 : vector<256x4xf32> to vector<256x4xbf16>
    %c7 = arith.constant 7 : index
    %c0_35 = arith.constant 0 : index
    %c0_36 = arith.constant 0 : index
    %59 = vector.load %arg2[%c7, %c0_35, %c0_36] : memref<9x4x8xbf16, #tpu.memory_space<vmem>>, vector<1x4x8xbf16>
    %60 = vector.shape_cast %59 : vector<1x4x8xbf16> to vector<4x8xbf16>
    %cst_37 = arith.constant dense<0.000000e+00> : vector<256x8xf32>
    %61 = tpu.matmul %58, %60, %cst_37 {dimension_numbers = #tpu.dot_dimension_numbers<[1], [0], [0], [1], [0, 0, 1, 1], [], []>} : vector<256x4xbf16>, vector<4x8xbf16>, vector<256x8xf32> -> vector<256x8xf32>
    %62 = arith.addf %55, %61 : vector<256x8xf32>
    %63 = vector.extract_strided_slice %5 {offsets = [2, 2, 0], sizes = [16, 16, 4], strides = [1, 1, 1]} : vector<18x18x4xf32> to vector<16x16x4xf32>
    %64 = vector.shape_cast %63 : vector<16x16x4xf32> to vector<256x4xf32>
    %65 = arith.truncf %64 : vector<256x4xf32> to vector<256x4xbf16>
    %c8 = arith.constant 8 : index
    %c0_38 = arith.constant 0 : index
    %c0_39 = arith.constant 0 : index
    %66 = vector.load %arg2[%c8, %c0_38, %c0_39] : memref<9x4x8xbf16, #tpu.memory_space<vmem>>, vector<1x4x8xbf16>
    %67 = vector.shape_cast %66 : vector<1x4x8xbf16> to vector<4x8xbf16>
    %cst_40 = arith.constant dense<0.000000e+00> : vector<256x8xf32>
    %68 = tpu.matmul %65, %67, %cst_40 {dimension_numbers = #tpu.dot_dimension_numbers<[1], [0], [0], [1], [0, 0, 1, 1], [], []>} : vector<256x4xbf16>, vector<4x8xbf16>, vector<256x8xf32> -> vector<256x8xf32>
    %69 = arith.addf %62, %68 : vector<256x8xf32>
    %c0_41 = arith.constant 0 : index
    %c0_42 = arith.constant 0 : index
    %70 = vector.load %arg3[%c0_41, %c0_42] : memref<1x8xf32, #tpu.memory_space<vmem>>, vector<1x8xf32>
    %71 = vector.broadcast %70 : vector<1x8xf32> to vector<256x8xf32>
    %72 = arith.mulf %69, %71 : vector<256x8xf32>
    %c0_43 = arith.constant 0 : index
    %c0_44 = arith.constant 0 : index
    %73 = vector.load %arg4[%c0_43, %c0_44] : memref<1x8xf32, #tpu.memory_space<vmem>>, vector<1x8xf32>
    %74 = vector.broadcast %73 : vector<1x8xf32> to vector<256x8xf32>
    %75 = arith.addf %72, %74 : vector<256x8xf32>
    %cst_45 = arith.constant 0.000000e+00 : f32
    %76 = vector.broadcast %cst_45 : f32 to vector<256x8xf32>
    %77 = arith.maximumf %75, %76 : vector<256x8xf32>
    %cst_46 = arith.constant 0.000000e+00 : f32
    %78 = vector.broadcast %cst_46 : f32 to vector<18x18x8xf32>
    %c0_47 = arith.constant 0 : index
    %c0_48 = arith.constant 0 : index
    %c0_49 = arith.constant 0 : index
    %79 = vector.load %arg13[%c0_47, %c0_48, %c0_49] : memref<18x18x8xf32, #tpu.memory_space<vmem>>, vector<18x18x8xf32>
    tpu.vector_store %arg13[%c0_47, %c0_48, %c0_49], %78 {strides = array<i32>} : memref<18x18x8xf32, #tpu.memory_space<vmem>>, vector<18x18x8xf32>,
    %80 = vector.shape_cast %77 : vector<256x8xf32> to vector<16x16x8xf32>
    %c1_50 = arith.constant 1 : index
    %c1_51 = arith.constant 1 : index
    %c0_52 = arith.constant 0 : index
    %81 = vector.load %arg13[%c1_50, %c1_51, %c0_52] : memref<18x18x8xf32, #tpu.memory_space<vmem>>, vector<16x16x8xf32>
    tpu.vector_store %arg13[%c1_50, %c1_51, %c0_52], %80 {strides = array<i32>} : memref<18x18x8xf32, #tpu.memory_space<vmem>>, vector<16x16x8xf32>,
    %c0_53 = arith.constant 0 : index
    %c0_54 = arith.constant 0 : index
    %c0_55 = arith.constant 0 : index
    %82 = vector.load %arg13[%c0_53, %c0_54, %c0_55] : memref<18x18x8xf32, #tpu.memory_space<vmem>>, vector<18x18x8xf32>
    %cst_56 = arith.constant 0.000000e+00 : f32
    %83 = vector.broadcast %cst_56 : f32 to vector<256x8xf32>
    %84 = vector.extract_strided_slice %82 {offsets = [0, 0, 0], sizes = [16, 16, 8], strides = [1, 1, 1]} : vector<18x18x8xf32> to vector<16x16x8xf32>
    %85 = vector.shape_cast %84 : vector<16x16x8xf32> to vector<256x8xf32>
    %86 = arith.truncf %85 : vector<256x8xf32> to vector<256x8xbf16>
    %c0_57 = arith.constant 0 : index
    %c0_58 = arith.constant 0 : index
    %c0_59 = arith.constant 0 : index
    %87 = vector.load %arg5[%c0_57, %c0_58, %c0_59] : memref<9x8x8xbf16, #tpu.memory_space<vmem>>, vector<1x8x8xbf16>
    %88 = vector.shape_cast %87 : vector<1x8x8xbf16> to vector<8x8xbf16>
    %cst_60 = arith.constant dense<0.000000e+00> : vector<256x8xf32>
    %89 = tpu.matmul %86, %88, %cst_60 {dimension_numbers = #tpu.dot_dimension_numbers<[1], [0], [0], [1], [0, 0, 1, 1], [], []>} : vector<256x8xbf16>, vector<8x8xbf16>, vector<256x8xf32> -> vector<256x8xf32>
    %90 = arith.addf %83, %89 : vector<256x8xf32>
    %91 = vector.extract_strided_slice %82 {offsets = [0, 1, 0], sizes = [16, 16, 8], strides = [1, 1, 1]} : vector<18x18x8xf32> to vector<16x16x8xf32>
    %92 = vector.shape_cast %91 : vector<16x16x8xf32> to vector<256x8xf32>
    %93 = arith.truncf %92 : vector<256x8xf32> to vector<256x8xbf16>
    %c1_61 = arith.constant 1 : index
    %c0_62 = arith.constant 0 : index
    %c0_63 = arith.constant 0 : index
    %94 = vector.load %arg5[%c1_61, %c0_62, %c0_63] : memref<9x8x8xbf16, #tpu.memory_space<vmem>>, vector<1x8x8xbf16>
    %95 = vector.shape_cast %94 : vector<1x8x8xbf16> to vector<8x8xbf16>
    %cst_64 = arith.constant dense<0.000000e+00> : vector<256x8xf32>
    %96 = tpu.matmul %93, %95, %cst_64 {dimension_numbers = #tpu.dot_dimension_numbers<[1], [0], [0], [1], [0, 0, 1, 1], [], []>} : vector<256x8xbf16>, vector<8x8xbf16>, vector<256x8xf32> -> vector<256x8xf32>
    %97 = arith.addf %90, %96 : vector<256x8xf32>
    %98 = vector.extract_strided_slice %82 {offsets = [0, 2, 0], sizes = [16, 16, 8], strides = [1, 1, 1]} : vector<18x18x8xf32> to vector<16x16x8xf32>
    %99 = vector.shape_cast %98 : vector<16x16x8xf32> to vector<256x8xf32>
    %100 = arith.truncf %99 : vector<256x8xf32> to vector<256x8xbf16>
    %c2_65 = arith.constant 2 : index
    %c0_66 = arith.constant 0 : index
    %c0_67 = arith.constant 0 : index
    %101 = vector.load %arg5[%c2_65, %c0_66, %c0_67] : memref<9x8x8xbf16, #tpu.memory_space<vmem>>, vector<1x8x8xbf16>
    %102 = vector.shape_cast %101 : vector<1x8x8xbf16> to vector<8x8xbf16>
    %cst_68 = arith.constant dense<0.000000e+00> : vector<256x8xf32>
    %103 = tpu.matmul %100, %102, %cst_68 {dimension_numbers = #tpu.dot_dimension_numbers<[1], [0], [0], [1], [0, 0, 1, 1], [], []>} : vector<256x8xbf16>, vector<8x8xbf16>, vector<256x8xf32> -> vector<256x8xf32>
    %104 = arith.addf %97, %103 : vector<256x8xf32>
    %105 = vector.extract_strided_slice %82 {offsets = [1, 0, 0], sizes = [16, 16, 8], strides = [1, 1, 1]} : vector<18x18x8xf32> to vector<16x16x8xf32>
    %106 = vector.shape_cast %105 : vector<16x16x8xf32> to vector<256x8xf32>
    %107 = arith.truncf %106 : vector<256x8xf32> to vector<256x8xbf16>
    %c3_69 = arith.constant 3 : index
    %c0_70 = arith.constant 0 : index
    %c0_71 = arith.constant 0 : index
    %108 = vector.load %arg5[%c3_69, %c0_70, %c0_71] : memref<9x8x8xbf16, #tpu.memory_space<vmem>>, vector<1x8x8xbf16>
    %109 = vector.shape_cast %108 : vector<1x8x8xbf16> to vector<8x8xbf16>
    %cst_72 = arith.constant dense<0.000000e+00> : vector<256x8xf32>
    %110 = tpu.matmul %107, %109, %cst_72 {dimension_numbers = #tpu.dot_dimension_numbers<[1], [0], [0], [1], [0, 0, 1, 1], [], []>} : vector<256x8xbf16>, vector<8x8xbf16>, vector<256x8xf32> -> vector<256x8xf32>
    %111 = arith.addf %104, %110 : vector<256x8xf32>
    %112 = vector.extract_strided_slice %82 {offsets = [1, 1, 0], sizes = [16, 16, 8], strides = [1, 1, 1]} : vector<18x18x8xf32> to vector<16x16x8xf32>
    %113 = vector.shape_cast %112 : vector<16x16x8xf32> to vector<256x8xf32>
    %114 = arith.truncf %113 : vector<256x8xf32> to vector<256x8xbf16>
    %c4_73 = arith.constant 4 : index
    %c0_74 = arith.constant 0 : index
    %c0_75 = arith.constant 0 : index
    %115 = vector.load %arg5[%c4_73, %c0_74, %c0_75] : memref<9x8x8xbf16, #tpu.memory_space<vmem>>, vector<1x8x8xbf16>
    %116 = vector.shape_cast %115 : vector<1x8x8xbf16> to vector<8x8xbf16>
    %cst_76 = arith.constant dense<0.000000e+00> : vector<256x8xf32>
    %117 = tpu.matmul %114, %116, %cst_76 {dimension_numbers = #tpu.dot_dimension_numbers<[1], [0], [0], [1], [0, 0, 1, 1], [], []>} : vector<256x8xbf16>, vector<8x8xbf16>, vector<256x8xf32> -> vector<256x8xf32>
    %118 = arith.addf %111, %117 : vector<256x8xf32>
    %119 = vector.extract_strided_slice %82 {offsets = [1, 2, 0], sizes = [16, 16, 8], strides = [1, 1, 1]} : vector<18x18x8xf32> to vector<16x16x8xf32>
    %120 = vector.shape_cast %119 : vector<16x16x8xf32> to vector<256x8xf32>
    %121 = arith.truncf %120 : vector<256x8xf32> to vector<256x8xbf16>
    %c5_77 = arith.constant 5 : index
    %c0_78 = arith.constant 0 : index
    %c0_79 = arith.constant 0 : index
    %122 = vector.load %arg5[%c5_77, %c0_78, %c0_79] : memref<9x8x8xbf16, #tpu.memory_space<vmem>>, vector<1x8x8xbf16>
    %123 = vector.shape_cast %122 : vector<1x8x8xbf16> to vector<8x8xbf16>
    %cst_80 = arith.constant dense<0.000000e+00> : vector<256x8xf32>
    %124 = tpu.matmul %121, %123, %cst_80 {dimension_numbers = #tpu.dot_dimension_numbers<[1], [0], [0], [1], [0, 0, 1, 1], [], []>} : vector<256x8xbf16>, vector<8x8xbf16>, vector<256x8xf32> -> vector<256x8xf32>
    %125 = arith.addf %118, %124 : vector<256x8xf32>
    %126 = vector.extract_strided_slice %82 {offsets = [2, 0, 0], sizes = [16, 16, 8], strides = [1, 1, 1]} : vector<18x18x8xf32> to vector<16x16x8xf32>
    %127 = vector.shape_cast %126 : vector<16x16x8xf32> to vector<256x8xf32>
    %128 = arith.truncf %127 : vector<256x8xf32> to vector<256x8xbf16>
    %c6_81 = arith.constant 6 : index
    %c0_82 = arith.constant 0 : index
    %c0_83 = arith.constant 0 : index
    %129 = vector.load %arg5[%c6_81, %c0_82, %c0_83] : memref<9x8x8xbf16, #tpu.memory_space<vmem>>, vector<1x8x8xbf16>
    %130 = vector.shape_cast %129 : vector<1x8x8xbf16> to vector<8x8xbf16>
    %cst_84 = arith.constant dense<0.000000e+00> : vector<256x8xf32>
    %131 = tpu.matmul %128, %130, %cst_84 {dimension_numbers = #tpu.dot_dimension_numbers<[1], [0], [0], [1], [0, 0, 1, 1], [], []>} : vector<256x8xbf16>, vector<8x8xbf16>, vector<256x8xf32> -> vector<256x8xf32>
    %132 = arith.addf %125, %131 : vector<256x8xf32>
    %133 = vector.extract_strided_slice %82 {offsets = [2, 1, 0], sizes = [16, 16, 8], strides = [1, 1, 1]} : vector<18x18x8xf32> to vector<16x16x8xf32>
    %134 = vector.shape_cast %133 : vector<16x16x8xf32> to vector<256x8xf32>
    %135 = arith.truncf %134 : vector<256x8xf32> to vector<256x8xbf16>
    %c7_85 = arith.constant 7 : index
    %c0_86 = arith.constant 0 : index
    %c0_87 = arith.constant 0 : index
    %136 = vector.load %arg5[%c7_85, %c0_86, %c0_87] : memref<9x8x8xbf16, #tpu.memory_space<vmem>>, vector<1x8x8xbf16>
    %137 = vector.shape_cast %136 : vector<1x8x8xbf16> to vector<8x8xbf16>
    %cst_88 = arith.constant dense<0.000000e+00> : vector<256x8xf32>
    %138 = tpu.matmul %135, %137, %cst_88 {dimension_numbers = #tpu.dot_dimension_numbers<[1], [0], [0], [1], [0, 0, 1, 1], [], []>} : vector<256x8xbf16>, vector<8x8xbf16>, vector<256x8xf32> -> vector<256x8xf32>
    %139 = arith.addf %132, %138 : vector<256x8xf32>
    %140 = vector.extract_strided_slice %82 {offsets = [2, 2, 0], sizes = [16, 16, 8], strides = [1, 1, 1]} : vector<18x18x8xf32> to vector<16x16x8xf32>
    %141 = vector.shape_cast %140 : vector<16x16x8xf32> to vector<256x8xf32>
    %142 = arith.truncf %141 : vector<256x8xf32> to vector<256x8xbf16>
    %c8_89 = arith.constant 8 : index
    %c0_90 = arith.constant 0 : index
    %c0_91 = arith.constant 0 : index
    %143 = vector.load %arg5[%c8_89, %c0_90, %c0_91] : memref<9x8x8xbf16, #tpu.memory_space<vmem>>, vector<1x8x8xbf16>
    %144 = vector.shape_cast %143 : vector<1x8x8xbf16> to vector<8x8xbf16>
    %cst_92 = arith.constant dense<0.000000e+00> : vector<256x8xf32>
    %145 = tpu.matmul %142, %144, %cst_92 {dimension_numbers = #tpu.dot_dimension_numbers<[1], [0], [0], [1], [0, 0, 1, 1], [], []>} : vector<256x8xbf16>, vector<8x8xbf16>, vector<256x8xf32> -> vector<256x8xf32>
    %146 = arith.addf %139, %145 : vector<256x8xf32>
    %c0_93 = arith.constant 0 : index
    %c0_94 = arith.constant 0 : index
    %147 = vector.load %arg6[%c0_93, %c0_94] : memref<1x8xf32, #tpu.memory_space<vmem>>, vector<1x8xf32>
    %148 = vector.broadcast %147 : vector<1x8xf32> to vector<256x8xf32>
    %149 = arith.mulf %146, %148 : vector<256x8xf32>
    %c0_95 = arith.constant 0 : index
    %c0_96 = arith.constant 0 : index
    %150 = vector.load %arg7[%c0_95, %c0_96] : memref<1x8xf32, #tpu.memory_space<vmem>>, vector<1x8xf32>
    %151 = vector.broadcast %150 : vector<1x8xf32> to vector<256x8xf32>
    %152 = arith.addf %149, %151 : vector<256x8xf32>
    %153 = vector.shape_cast %1 : vector<16x16x4xf32> to vector<256x4xf32>
    %154 = arith.truncf %153 : vector<256x4xf32> to vector<256x4xbf16>
    %c0_97 = arith.constant 0 : index
    %c0_98 = arith.constant 0 : index
    %155 = vector.load %arg8[%c0_97, %c0_98] : memref<4x8xbf16, #tpu.memory_space<vmem>>, vector<4x8xbf16>
    %cst_99 = arith.constant dense<0.000000e+00> : vector<256x8xf32>
    %156 = tpu.matmul %154, %155, %cst_99 {dimension_numbers = #tpu.dot_dimension_numbers<[1], [0], [0], [1], [0, 0, 1, 1], [], []>} : vector<256x4xbf16>, vector<4x8xbf16>, vector<256x8xf32> -> vector<256x8xf32>
    %c0_100 = arith.constant 0 : index
    %c0_101 = arith.constant 0 : index
    %157 = vector.load %arg9[%c0_100, %c0_101] : memref<1x8xf32, #tpu.memory_space<vmem>>, vector<1x8xf32>
    %158 = vector.broadcast %157 : vector<1x8xf32> to vector<256x8xf32>
    %159 = arith.mulf %156, %158 : vector<256x8xf32>
    %c0_102 = arith.constant 0 : index
    %c0_103 = arith.constant 0 : index
    %160 = vector.load %arg10[%c0_102, %c0_103] : memref<1x8xf32, #tpu.memory_space<vmem>>, vector<1x8xf32>
    %161 = vector.broadcast %160 : vector<1x8xf32> to vector<256x8xf32>
    %162 = arith.addf %159, %161 : vector<256x8xf32>
    %163 = arith.addf %152, %162 : vector<256x8xf32>
    %cst_104 = arith.constant 0.000000e+00 : f32
    %164 = vector.broadcast %cst_104 : f32 to vector<256x8xf32>
    %165 = arith.maximumf %163, %164 : vector<256x8xf32>
    %c0_105 = arith.constant 0 : index
    %c0_106 = arith.constant 0 : index
    %c0_107 = arith.constant 0 : index
    %166 = vector.load %arg11[%c0_105, %c0_106, %c0_107] : memref<1x256x8xf32, #tpu.memory_space<vmem>>, vector<1x256x8xf32>
    %167 = vector.shape_cast %166 : vector<1x256x8xf32> to vector<256x8xf32>
    %168 = vector.shape_cast %165 : vector<256x8xf32> to vector<1x256x8xf32>
    tpu.vector_store %arg11[%c0_105, %c0_106, %c0_107], %168 {strides = array<i32>} : memref<1x256x8xf32, #tpu.memory_space<vmem>>, vector<1x256x8xf32>,
    return
  }
  func.func @transform_0(%arg0: i32) -> (i32, i32, i32, i32) {
    %c0_i32 = arith.constant 0 : i32
    %c0_i32_0 = arith.constant 0 : i32
    %c0_i32_1 = arith.constant 0 : i32
    %c0_i32_2 = arith.constant 0 : i32
    return %arg0, %c0_i32, %c0_i32_0, %c0_i32_1 : i32, i32, i32, i32
  }
  func.func @transform_1(%arg0: i32) -> (i32, i32, i32) {
    %c0_i32 = arith.constant 0 : i32
    %c0_i32_0 = arith.constant 0 : i32
    %c0_i32_1 = arith.constant 0 : i32
    %c0_i32_2 = arith.constant 0 : i32
    return %c0_i32, %c0_i32_0, %c0_i32_1 : i32, i32, i32
  }
  func.func @transform_2(%arg0: i32) -> (i32, i32) {
    %c0_i32 = arith.constant 0 : i32
    %c0_i32_0 = arith.constant 0 : i32
    %c0_i32_1 = arith.constant 0 : i32
    return %c0_i32, %c0_i32_0 : i32, i32
  }
  func.func @transform_3(%arg0: i32) -> (i32, i32) {
    %c0_i32 = arith.constant 0 : i32
    %c0_i32_0 = arith.constant 0 : i32
    %c0_i32_1 = arith.constant 0 : i32
    return %c0_i32, %c0_i32_0 : i32, i32
  }
  func.func @transform_4(%arg0: i32) -> (i32, i32, i32) {
    %c0_i32 = arith.constant 0 : i32
    %c0_i32_0 = arith.constant 0 : i32
    %c0_i32_1 = arith.constant 0 : i32
    %c0_i32_2 = arith.constant 0 : i32
    return %c0_i32, %c0_i32_0, %c0_i32_1 : i32, i32, i32
  }
  func.func @transform_5(%arg0: i32) -> (i32, i32) {
    %c0_i32 = arith.constant 0 : i32
    %c0_i32_0 = arith.constant 0 : i32
    %c0_i32_1 = arith.constant 0 : i32
    return %c0_i32, %c0_i32_0 : i32, i32
  }
  func.func @transform_6(%arg0: i32) -> (i32, i32) {
    %c0_i32 = arith.constant 0 : i32
    %c0_i32_0 = arith.constant 0 : i32
    %c0_i32_1 = arith.constant 0 : i32
    return %c0_i32, %c0_i32_0 : i32, i32
  }
  func.func @transform_7(%arg0: i32) -> (i32, i32) {
    %c0_i32 = arith.constant 0 : i32
    %c0_i32_0 = arith.constant 0 : i32
    %c0_i32_1 = arith.constant 0 : i32
    return %c0_i32, %c0_i32_0 : i32, i32
  }
  func.func @transform_8(%arg0: i32) -> (i32, i32) {
    %c0_i32 = arith.constant 0 : i32
    %c0_i32_0 = arith.constant 0 : i32
    %c0_i32_1 = arith.constant 0 : i32
    return %c0_i32, %c0_i32_0 : i32, i32
  }
  func.func @transform_9(%arg0: i32) -> (i32, i32) {
    %c0_i32 = arith.constant 0 : i32
    %c0_i32_0 = arith.constant 0 : i32
    %c0_i32_1 = arith.constant 0 : i32
    return %c0_i32, %c0_i32_0 : i32, i32
  }
  func.func @transform_10(%arg0: i32) -> (i32, i32, i32) {
    %c0_i32 = arith.constant 0 : i32
    %c0_i32_0 = arith.constant 0 : i32
    %c0_i32_1 = arith.constant 0 : i32
    return %arg0, %c0_i32, %c0_i32_0 : i32, i32, i32
  }
}

</mosaic_0001>

<bundles_post_ra>
// kernel: tpu_custom_call.1
= control target key start
LH: loop header
LB: loop body
LE: loop exit
PB: predicated region body
PF: predicated region fallthrough
CT: control target
= control target key end

     0   :  { %s7210_s13 = smov 0   ;;  %s10704_s0 = inlined_call_operand.vmem [shape: f32[2,16,16,4], index: 0, kind: input, shape index: {}]   ;;  %s10705_s1 = inlined_call_operand.vmem [shape: bf16[9,4,8], index: 1, kind: input, shape index: {}]   ;;  %s10706_s2 = inlined_call_operand.vmem [shape: f32[1,8], index: 2, kind: input, shape index: {}]   ;;  %s10707_s3 = inlined_call_operand.vmem [shape: f32[1,8], index: 3, kind: input, shape index: {}]   ;;  %s10708_s4 = inlined_call_operand.vmem [shape: bf16[9,8,8], index: 4, kind: input, shape index: {}]   ;;  %s10709_s5 = inlined_call_operand.vmem [shape: f32[1,8], index: 5, kind: input, shape index: {}]   ;;  %s10710_s6 = inlined_call_operand.vmem [shape: f32[1,8], index: 6, kind: input, shape index: {}]   ;;  %s10711_s7 = inlined_call_operand.vmem [shape: bf16[4,8], index: 7, kind: input, shape index: {}]   ;;  %s10712_s8 = inlined_call_operand.vmem [shape: f32[1,8], index: 8, kind: input, shape index: {}]   ;;  %s10713_s9 = inlined_call_operand.vmem [shape: f32[1,8], index: 9, kind: input, shape index: {}]   ;;  %s10714_s10 = inlined_call_operand.vmem [shape: f32[2,256,8], index: 10, kind: output, shape index: {}]  }
   0x1 LB: > { %s5807_s14 = sadd.s32 4294967295, %s7152_s13   ;;  %p5811_p0 = scmp.ge.s32.totalorder %s7152_s13, 1  ;;  %s7152_s13 = sphi %s7210_s13, %s20_s13  }
   0x2   : > { %p312_p1 = scmp.lt.s32.totalorder %s7152_s13, 3 }
   0x4   : > { %p313_p2 = pnand %p5811_p0, %p312_p1 }
   0x6   : > { %316 = sbr.rel (%p313_p2) target bundleno = 1046 (0x416), region = 60 }
   0xb   : > { %v5816_v0 = vld [vmem:[%s10705_s1 + $0x2] sm:$0x3]  ;;  %vm780_vm0 = vcmask 1041408   ;;  %vm393_vm1 = vcmask 31744   ;;  %vm396_vm2 = vcmask 25600   ;;  %v10715_v2 = vmov 0.0  }
   0xc   : > { %7117 = vmatprep.subr.msk.bf16.mxu0 %vm780_vm0, %v5816_v0  ;;  %7118 = vmatprep.subr.msk.bf16.mxu1 %vm780_vm0, %v5816_v0  ;;  %v782_v1 = vsel %vm780_vm0, %v5816_v0, 0  ;;  %394 = vst.msk [vmem:[#allocation2] sm:$0xff] %vm393_vm1, %v10715_v2  ;;  %395 = vst.msk [vmem:[#allocation2 + $0x8] sm:$0xff] %vm393_vm1, %v10715_v2  ;;  %p350_p3 = scmp.lt.s32.totalorder %s5807_s14, 1  ;;  %v552_v3 = vld [vmem:[%s10705_s1] sm:$0x3] }
   0xd   : > { %397 = vst.msk [vmem:[#allocation2 + $0x10] sm:$0x3] %vm396_vm2, %v10715_v2  ;;  %400 = vst.msk [vmem:[#allocation2 + $0x28] sm:$0x3] %vm396_vm2, %v10715_v2  ;;  %6470 = vmatpush3.bf16.msra.mxu0 %v782_v1  ;;  %7116 = vmatpush3.bf16.msra.mxu1 %v782_v1  ;;  %v7340_v4 = vld [vmem:[%s10705_s1 + $0x4] sm:$0x3] }
   0xe   : > { %398 = vst.msk [vmem:[#allocation2 + $0x18] sm:$0xff] %vm393_vm1, %v10715_v2  ;;  %399 = vst.msk [vmem:[#allocation2 + $0x20] sm:$0xff] %vm393_vm1, %v10715_v2  ;;  %s11254_s14 = smov (!%p350_p3, %s5807_s14), 1  ;;  %7119 = vmatprep.subr.msk.bf16.mxu1 %vm780_vm0, %v552_v3  ;;  %7120 = vmatprep.subr.msk.bf16.mxu0 %vm780_vm0, %v7340_v4  ;;  %vm601_vm3 = vcmask 1046528   ;;  %v7470_v37 = vsel %vm780_vm0, %v552_v3, 0  ;;  %v1337_v42 = vsel %vm780_vm0, %v7340_v4, 0 }
   0xf   : > { %401 = vst.msk [vmem:[#allocation2 + $0x30] sm:$0xff] %vm393_vm1, %v10715_v2  ;;  %402 = vst.msk [vmem:[#allocation2 + $0x38] sm:$0xff] %vm393_vm1, %v10715_v2  ;;  %s6144_s21 = sshll.u32 %s11254_s14, 8  ;;  %v7510_v56 = vld [vmem:[%s10705_s1 + $0x8] sm:$0x3]  ;;  %vm1157_vm4 = vcmask 1045504  }
  0x10   : > { %403 = vst.msk [vmem:[#allocation2 + $0x40] sm:$0x3] %vm396_vm2, %v10715_v2  ;;  %406 = vst.msk [vmem:[#allocation2 + $0x58] sm:$0x3] %vm396_vm2, %v10715_v2  ;;  %s7355_s24 = scalar_lea.vmem %s10704_s0, %s6144_s21  ;;  %vm3274_vm5 = vcmask 1043456   ;;  %vm2888_vm6 = vcmask 64512   ;;  %s10440_s19 = scalar_lea.vmem %s10714_s10, %s6144_s21 }
  0x11   : > { %404 = vst.msk [vmem:[#allocation2 + $0x48] sm:$0xff] %vm393_vm1, %v10715_v2  ;;  %405 = vst.msk [vmem:[#allocation2 + $0x50] sm:$0xff] %vm393_vm1, %v10715_v2  ;;  %v7358_v5 = vld [vmem:[%s7355_s24] sm:$0xff]  ;;  %v7361_v6 = vld [vmem:[%s7355_s24 + $0x8] sm:$0xff]  ;;  %vm2891_vm7 = vcmask 58368  }
  0x12   : > { %407 = vst.msk [vmem:[#allocation2 + $0x60] sm:$0xff] %vm393_vm1, %v10715_v2  ;;  %408 = vst.msk [vmem:[#allocation2 + $0x68] sm:$0xff] %vm393_vm1, %v10715_v2  ;;  %v7364_v7 = vld [vmem:[%s7355_s24 + $0x70] sm:$0xff]  ;;  %v7382_v14 = vld [vmem:[%s7355_s24 + $0x78] sm:$0xff] }
  0x13   : > { %409 = vst.msk [vmem:[#allocation2 + $0x70] sm:$0x3] %vm396_vm2, %v10715_v2  ;;  %412 = vst.msk [vmem:[#allocation2 + $0x88] sm:$0x3] %vm396_vm2, %v10715_v2  ;;  %v7366_v8 = vld [vmem:[#allocation2] sm:$0xff]  ;;  %v7368_v9 = vld [vmem:[#allocation2 + $0x8] sm:$0xff] }
  0x14   : > { %410 = vst.msk [vmem:[#allocation2 + $0x78] sm:$0xff] %vm393_vm1, %v10715_v2  ;;  %411 = vst.msk [vmem:[#allocation2 + $0x80] sm:$0xff] %vm393_vm1, %v10715_v2  ;;  %v7370_v10 = vld [vmem:[#allocation2 + $0x10] sm:$0x3]  ;;  %v602_v11 = vrot.slane %v7366_v8, 1  ;;  %v603_v12 = vrot.slane %v7368_v9, 1 }
  0x15   : > { %413 = vst.msk [vmem:[#allocation2 + $0x90] sm:$0xff] %vm393_vm1, %v10715_v2  ;;  %414 = vst.msk [vmem:[#allocation2 + $0x98] sm:$0xff] %vm393_vm1, %v10715_v2  ;;  %v605_v13 = vrot.slane %v7370_v10, 1  ;;  %v7385_v15 = vld [vmem:[%s7355_s24 + $0x80] sm:$0xff]  ;;  %v7390_v16 = vld [vmem:[%s7355_s24 + $0x88] sm:$0xff] }
  0x16   : > { %415 = vst.msk [vmem:[#allocation2 + $0xa0] sm:$0x3] %vm396_vm2, %v10715_v2  ;;  %418 = vst.msk [vmem:[#allocation2 + $0xb8] sm:$0x3] %vm396_vm2, %v10715_v2  ;;  %v7395_v17 = vld [vmem:[%s7355_s24 + $0x10] sm:$0xff]  ;;  %v7398_v18 = vld [vmem:[%s7355_s24 + $0x18] sm:$0xff]  ;;  %v604_v19 = vsel %vm601_vm3, %v602_v11, %v603_v12 }
  0x17   : > { %416 = vst.msk [vmem:[#allocation2 + $0xa8] sm:$0xff] %vm393_vm1, %v10715_v2  ;;  %417 = vst.msk [vmem:[#allocation2 + $0xb0] sm:$0xff] %vm393_vm1, %v10715_v2  ;;  %v606_v20 = vsel %vm601_vm3, %v603_v12, %v605_v13  ;;  %v7409_v21 = vld [vmem:[%s7355_s24 + $0x20] sm:$0xff]  ;;  %v7412_v22 = vld [vmem:[%s7355_s24 + $0x28] sm:$0xff] }
  0x18   : > { %419 = vst.msk [vmem:[#allocation2 + $0xc0] sm:$0xff] %vm393_vm1, %v10715_v2  ;;  %420 = vst.msk [vmem:[#allocation2 + $0xc8] sm:$0xff] %vm393_vm1, %v10715_v2  ;;  %v7415_v23 = vld [vmem:[%s7355_s24 + $0x90] sm:$0xff]  ;;  %v714_v24 = vpack.c.bf16 %v606_v20, %v604_v19  ;;  %v7422_v25 = vld [vmem:[%s7355_s24 + $0x98] sm:$0xff] }
  0x19   : > { %421 = vst.msk [vmem:[#allocation2 + $0xd0] sm:$0x3] %vm396_vm2, %v10715_v2  ;;  %424 = vst.msk [vmem:[#allocation2 + $0xe8] sm:$0x3] %vm396_vm2, %v10715_v2  ;;  %v7427_v26 = vld [vmem:[%s7355_s24 + $0xa0] sm:$0xff]  ;;  %v7430_v27 = vld [vmem:[%s7355_s24 + $0xa8] sm:$0xff] }
  0x1a   : > { %422 = vst.msk [vmem:[#allocation2 + $0xd8] sm:$0xff] %vm393_vm1, %v10715_v2  ;;  %423 = vst.msk [vmem:[#allocation2 + $0xe0] sm:$0xff] %vm393_vm1, %v10715_v2  ;;  %v7439_v28 = vld [vmem:[%s7355_s24 + $0x30] sm:$0xff]  ;;  %v7442_v29 = vld [vmem:[%s7355_s24 + $0x38] sm:$0xff]  ;;  %6471 = vmatprep.mubr.msk.bf16.mxu0 %vm393_vm1, %v714_v24 }
  0x1b   : > { %425 = vst.msk [vmem:[#allocation2 + $0xf0] sm:$0xff] %vm393_vm1, %v10715_v2  ;;  %426 = vst.msk [vmem:[#allocation2 + $0xf8] sm:$0xff] %vm393_vm1, %v10715_v2  ;;  %v7445_v30 = vld [vmem:[%s7355_s24 + $0x40] sm:$0xff]  ;;  %v7453_v31 = vld [vmem:[%s7355_s24 + $0x48] sm:$0xff] }
  0x1c   : > { %427 = vst.msk [vmem:[#allocation2 + $0x100] sm:$0x3] %vm396_vm2, %v10715_v2  ;;  %430 = vst.msk [vmem:[#allocation2 + $0x118] sm:$0x3] %vm396_vm2, %v10715_v2  ;;  %v7458_v32 = vld [vmem:[%s7355_s24 + $0xb0] sm:$0xff]  ;;  %v7461_v33 = vld [vmem:[%s7355_s24 + $0xb8] sm:$0xff] }
  0x1d   : > { %428 = vst.msk [vmem:[#allocation2 + $0x108] sm:$0xff] %vm393_vm1, %v10715_v2  ;;  %429 = vst.msk [vmem:[#allocation2 + $0x110] sm:$0xff] %vm393_vm1, %v10715_v2  ;;  %v7486_v43 = vld [vmem:[%s7355_s24 + $0xc0] sm:$0xff] }
  0x1e   : > { %431 = vst.msk [vmem:[#allocation2 + $0x120] sm:$0xff] %vm393_vm1, %v10715_v2  ;;  %432 = vst.msk [vmem:[#allocation2 + $0x128] sm:$0xff] %vm393_vm1, %v10715_v2 }
  0x1f   : > { %433 = vst.msk [vmem:[#allocation2 + $0x130] sm:$0x3] %vm396_vm2, %v10715_v2  ;;  %436 = vst.msk [vmem:[#allocation2 + $0x148] sm:$0x3] %vm396_vm2, %v10715_v2 }
  0x20   : > { %434 = vst.msk [vmem:[#allocation2 + $0x138] sm:$0xff] %vm393_vm1, %v10715_v2  ;;  %435 = vst.msk [vmem:[#allocation2 + $0x140] sm:$0xff] %vm393_vm1, %v10715_v2 }
  0x21   : > { %437 = vst.msk [vmem:[#allocation2 + $0x150] sm:$0xff] %vm393_vm1, %v10715_v2  ;;  %438 = vst.msk [vmem:[#allocation2 + $0x158] sm:$0xff] %vm393_vm1, %v10715_v2 }
  0x22   : > { %439 = vst.msk [vmem:[#allocation2 + $0x160] sm:$0x3] %vm396_vm2, %v10715_v2  ;;  %442 = vst.msk [vmem:[#allocation2 + $0x178] sm:$0x3] %vm396_vm2, %v10715_v2 }
  0x23   : > { %440 = vst.msk [vmem:[#allocation2 + $0x168] sm:$0xff] %vm393_vm1, %v10715_v2  ;;  %441 = vst.msk [vmem:[#allocation2 + $0x170] sm:$0xff] %vm393_vm1, %v10715_v2 }
  0x24   : > { %443 = vst.msk [vmem:[#allocation2 + $0x180] sm:$0xff] %vm393_vm1, %v10715_v2  ;;  %444 = vst.msk [vmem:[#allocation2 + $0x188] sm:$0xff] %vm393_vm1, %v10715_v2 }
  0x25   : > { %445 = vst.msk [vmem:[#allocation2 + $0x190] sm:$0x3] %vm396_vm2, %v10715_v2  ;;  %448 = vst.msk [vmem:[#allocation2 + $0x1a8] sm:$0x3] %vm396_vm2, %v10715_v2 }
  0x26   : > { %446 = vst.msk [vmem:[#allocation2 + $0x198] sm:$0xff] %vm393_vm1, %v10715_v2  ;;  %447 = vst.msk [vmem:[#allocation2 + $0x1a0] sm:$0xff] %vm393_vm1, %v10715_v2 }
  0x27   : > { %10827 = vst [vmem:[#allocation4_spill] sm:$0xff] %v7358_v5  ;;  %10828 = vst [vmem:[#allocation5_spill] sm:$0xff] %v7361_v6 }
  0x28   : > { %10829 = vst [vmem:[#allocation6_spill] sm:$0xff] %v7364_v7  ;;  %450 = vst.msk [vmem:[#allocation2 + $0x19] sm:$0xff] %vm393_vm1, %v7358_v5 }
  0x29   : > { %451 = vst.msk [vmem:[#allocation2 + $0x21] sm:$0xff] %vm393_vm1, %v7361_v6  ;;  %464 = vst.msk [vmem:[#allocation2 + $0xc1] sm:$0xff] %vm393_vm1, %v7364_v7  ;;  %v7615_v7 = vld [vmem:[%s7355_s24 + $0x50] sm:$0xff] }
  0x2a   : > { %10830 = vst [vmem:[#allocation7_spill] sm:$0xff] %v7382_v14  ;;  %10831 = vst [vmem:[#allocation8_spill] sm:$0xff] %v7385_v15 }
  0x2b   : > { %465 = vst.msk [vmem:[#allocation2 + $0xc9] sm:$0xff] %vm393_vm1, %v7382_v14  ;;  %10832 = vst [vmem:[#allocation9_spill] sm:$0xff] %v7390_v16  ;;  %v7612_v14 = vld [vmem:[%s7355_s24 + $0xc8] sm:$0xff] }
  0x2c   : > { %466 = vst.msk [vmem:[#allocation2 + $0xd9] sm:$0xff] %vm393_vm1, %v7385_v15  ;;  %10833 = vst [vmem:[#allocation10_spill] sm:$0xff] %v7395_v17 }
  0x2d   : > { %10834 = vst [vmem:[#allocation11_spill] sm:$0xff] %v7398_v18  ;;  %467 = vst.msk [vmem:[#allocation2 + $0xe1] sm:$0xff] %vm393_vm1, %v7390_v16 }
  0x2e   : > { %452 = vst.msk [vmem:[#allocation2 + $0x31] sm:$0xff] %vm393_vm1, %v7395_v17  ;;  %453 = vst.msk [vmem:[#allocation2 + $0x39] sm:$0xff] %vm393_vm1, %v7398_v18 }
  0x2f   : > { %10835 = vst [vmem:[#allocation12_spill] sm:$0xff] %v7409_v21  ;;  %10836 = vst [vmem:[#allocation13_spill] sm:$0xff] %v7412_v22  ;;  %v7463_v34 = vld [vmem:[#allocation2 + $0x18] sm:$0xff] }
  0x30   : > { %10837 = vst [vmem:[#allocation14_spill] sm:$0xff] %v7415_v23  ;;  %454 = vst.msk [vmem:[#allocation2 + $0x49] sm:$0xff] %vm393_vm1, %v7409_v21  ;;  %v7465_v35 = vld [vmem:[#allocation2 + $0x20] sm:$0xff]  ;;  %v7467_v36 = vld [vmem:[#allocation2 + $0x28] sm:$0x3]  ;;  %v607_v38 = vrot.slane %v7463_v34, 1 }
  0x31   : > { %455 = vst.msk [vmem:[#allocation2 + $0x51] sm:$0xff] %vm393_vm1, %v7412_v22  ;;  %10838 = vst [vmem:[#allocation15_spill] sm:$0xff] %v7422_v25  ;;  %v608_v39 = vrot.slane %v7465_v35, 1  ;;  %v610_v40 = vrot.slane %v7467_v36, 1  ;;  %v7481_v41 = vld [vmem:[#allocation2 + $0xc0] sm:$0xff] }
  0x32   : > { %468 = vst.msk [vmem:[#allocation2 + $0xf1] sm:$0xff] %vm393_vm1, %v7415_v23  ;;  %10839 = vst [vmem:[#allocation16_spill] sm:$0xff] %v7427_v26  ;;  %v7490_v46 = vld [vmem:[#allocation2 + $0xc8] sm:$0xff]  ;;  %v7492_v47 = vld [vmem:[#allocation2 + $0xd0] sm:$0x3]  ;;  %v642_v48 = vrot.slane %v7481_v41, 1 }
  0x33   : > { %10840 = vst [vmem:[#allocation17_spill] sm:$0xff] %v7430_v27  ;;  %469 = vst.msk [vmem:[#allocation2 + $0xf9] sm:$0xff] %vm393_vm1, %v7422_v25  ;;  %v609_v49 = vsel %vm601_vm3, %v607_v38, %v608_v39  ;;  %v611_v50 = vsel %vm601_vm3, %v608_v39, %v610_v40  ;;  %v643_v51 = vrot.slane %v7490_v46, 1  ;;  %v645_v52 = vrot.slane %v7492_v47, 1  ;;  %v7501_v53 = vld [vmem:[#allocation2 + $0xd8] sm:$0xff] }
  0x34   : > { %470 = vst.msk [vmem:[#allocation2 + $0x109] sm:$0xff] %vm393_vm1, %v7427_v26  ;;  %471 = vst.msk [vmem:[#allocation2 + $0x111] sm:$0xff] %vm393_vm1, %v7430_v27  ;;  %v7503_v54 = vld [vmem:[#allocation2 + $0xe0] sm:$0xff]  ;;  %v7505_v55 = vld [vmem:[#allocation2 + $0xe8] sm:$0x3]  ;;  %v7513_v58 = vpack.c.bf16 %v611_v50, %v609_v49  ;;  %v647_v59 = vrot.slane %v7501_v53, 1 }
  0x35   : > { %10841 = vst [vmem:[#allocation18_spill] sm:$0xff] %v7439_v28  ;;  %10842 = vst [vmem:[#allocation19_spill] sm:$0xff] %v7442_v29  ;;  %v648_v60 = vrot.slane %v7503_v54, 1  ;;  %v7517_v61 = vld [vmem:[#allocation2 + $0x30] sm:$0xff]  ;;  %v7519_v62 = vld [vmem:[#allocation2 + $0x38] sm:$0xff]  ;;  %v644_v0 = vsel %vm601_vm3, %v642_v48, %v643_v51  ;;  %v646_v1 = vsel %vm601_vm3, %v643_v51, %v645_v52  ;;  %v650_v3 = vrot.slane %v7505_v55, 1 }
  0x36   : > { %10843 = vst [vmem:[#allocation20_spill] sm:$0xff] %v7445_v30  ;;  %456 = vst.msk [vmem:[#allocation2 + $0x61] sm:$0xff] %vm393_vm1, %v7439_v28  ;;  %v7526_v4 = vld [vmem:[#allocation2 + $0x40] sm:$0x3]  ;;  %v612_v11 = vrot.slane %v7517_v61, 1  ;;  %6472 = vmatmul.mubr.msk.bf16.vlgmr.msra.gmra.mxu0 %vm393_vm1, %v7513_v58  ;;  %v7535_v19 = vpack.c.bf16 %v646_v1, %v644_v0  ;;  %v613_v24 = vrot.slane %v7519_v62, 1 }
  0x37   : > { %457 = vst.msk [vmem:[#allocation2 + $0x69] sm:$0xff] %vm393_vm1, %v7442_v29  ;;  %10844 = vst [vmem:[#allocation21_spill] sm:$0xff] %v7453_v31  ;;  %v7521_v63 = vld [vmem:[#allocation2 + $0x48] sm:$0xff]  ;;  %v649_v20 = vsel %vm601_vm3, %v647_v59, %v648_v60  ;;  %v615_v38 = vrot.slane %v7526_v4, 1  ;;  %v651_v49 = vsel %vm601_vm3, %v648_v60, %v650_v3  ;;  %6538 = vmatpush3.bf16.msra.mxu0 %v1337_v42  ;;  %v7632_v29 = vld [vmem:[%s7355_s24 + $0x60] sm:$0xff] }
  0x38   : > { %458 = vst.msk [vmem:[#allocation2 + $0x79] sm:$0xff] %vm393_vm1, %v7445_v30  ;;  %10845 = vst [vmem:[#allocation22_spill] sm:$0xff] %v7458_v32  ;;  %v7529_v12 = vld [vmem:[#allocation2 + $0x50] sm:$0xff]  ;;  %v7540_v39 = vld [vmem:[#allocation2 + $0x58] sm:$0x3]  ;;  %v617_v50 = vrot.slane %v7521_v63, 1  ;;  %6487 = vmatprep.mubr.msk.bf16.mxu1 %vm393_vm1, %v7535_v19  ;;  %v7556_v1 = vpack.c.bf16 %v651_v49, %v649_v20  ;;  %v614_v2 = vsel %vm601_vm3, %v612_v11, %v613_v24  ;;  %7122 = vmatprep.subr.msk.bf16.mxu0 %vm780_vm0, %v7510_v56 }
  0x39   : > { %10846 = vst [vmem:[#allocation23_spill] sm:$0xff] %v7461_v33  ;;  %459 = vst.msk [vmem:[#allocation2 + $0x81] sm:$0xff] %vm393_vm1, %v7453_v31  ;;  %v7531_v13 = vld [vmem:[#allocation2 + $0xf0] sm:$0xff]  ;;  %v618_v51 = vrot.slane %v7529_v12, 1  ;;  %v620_v52 = vrot.slane %v7540_v39, 1  ;;  %v616_v60 = vsel %vm601_vm3, %v613_v24, %v615_v38  ;;  %v7627_v30 = vld [vmem:[%s7355_s24 + $0x58] sm:$0xff] }
  0x3a   : > { %472 = vst.msk [vmem:[#allocation2 + $0x121] sm:$0xff] %vm393_vm1, %v7458_v32  ;;  %473 = vst.msk [vmem:[#allocation2 + $0x129] sm:$0xff] %vm393_vm1, %v7461_v33  ;;  %v7542_v40 = vld [vmem:[#allocation2 + $0xf8] sm:$0xff]  ;;  %v7550_v59 = vld [vmem:[#allocation2 + $0x100] sm:$0x3]  ;;  %v652_v42 = vrot.slane %v7531_v13, 1  ;;  %v7569_v45 = vpack.c.bf16 %v616_v60, %v614_v2  ;;  %6488 = vmatmul.mubr.msk.bf16.vlgmr.msra.gmra.mxu1 %vm393_vm1, %v7556_v1 }
  0x3b   : > { %10847 = vst [vmem:[#allocation24_spill] sm:$0xff] %v7486_v43  ;;  %474 = vst.msk [vmem:[#allocation2 + $0x139] sm:$0xff] %vm393_vm1, %v7486_v43  ;;  %v7544_v48 = vld [vmem:[#allocation2 + $0x108] sm:$0xff]  ;;  %v7552_v0 = vld [vmem:[#allocation2 + $0x110] sm:$0xff]  ;;  %v619_v20 = vsel %vm601_vm3, %v617_v50, %v618_v51  ;;  %v621_v49 = vsel %vm601_vm3, %v618_v51, %v620_v52  ;;  %v653_v11 = vrot.slane %v7542_v40, 1  ;;  %v655_v50 = vrot.slane %v7550_v59, 1  ;;  %6504 = vmatpush3.bf16.msra.mxu1 %v7470_v37 }
  0x3c   : > { %10848 = vst [vmem:[#allocation25_spill] sm:$0xff] %v7513_v58  ;;  %10849 = vst [vmem:[#allocation26_spill] sm:$0xff] %v7535_v19  ;;  %v7561_v3 = vld [vmem:[#allocation2 + $0x118] sm:$0x3]  ;;  %v7581_v43 = vld [vmem:[%s10705_s1 + $0x6] sm:$0x3]  ;;  %v7585_v2 = vpack.c.bf16 %v621_v49, %v619_v20  ;;  %6475 = vmatprep.mubr.msk.bf16.mxu0 %vm393_vm1, %v7569_v45 }
  0x3d   : > { %10850 = vst [vmem:[#allocation27_spill] sm:$0xff] %v7556_v1  ;;  %v7563_v57 = vld [vmem:[#allocation2 + $0x60] sm:$0xff]  ;;  %10851 = vst [vmem:[#allocation28_spill] sm:$0xff] %v7569_v45  ;;  %v657_v51 = vrot.slane %v7544_v48, 1  ;;  %v658_v52 = vrot.slane %v7552_v0, 1  ;;  %v654_v20 = vsel %vm601_vm3, %v652_v42, %v653_v11  ;;  %v660_v49 = vrot.slane %v7561_v3, 1  ;;  %7121 = vmatprep.subr.msk.bf16.mxu1 %vm780_vm0, %v7581_v43 }
  0x3e   : > { %v7565_v44 = vld [vmem:[#allocation2 + $0x68] sm:$0xff]  ;;  %v7574_v24 = vld [vmem:[#allocation2 + $0x70] sm:$0x3]  ;;  %10852 = vst [vmem:[#allocation29_spill] sm:$0xff] %v7585_v2  ;;  %v622_v32 = vrot.slane %v7563_v57, 1  ;;  %v656_v23 = vsel %vm601_vm3, %v653_v11, %v655_v50  ;;  %10853 = vst [vmem:[#allocation30_spill] sm:$0xff] %v7612_v14  ;;  %6476 = vmatmul.mubr.msk.bf16.gmra.mxu0 %vm393_vm1, %v7585_v2 }
  0x3f   : > { %v7576_v38 = vld [vmem:[#allocation2 + $0x78] sm:$0xff]  ;;  %v623_v27 = vrot.slane %v7565_v44, 1  ;;  %v659_v37 = vsel %vm601_vm3, %v657_v51, %v658_v52  ;;  %v625_v16 = vrot.slane %v7574_v24, 1  ;;  %10854 = vst [vmem:[#allocation31_spill] sm:$0xff] %v7615_v7  ;;  %v7619_v31 = vpack.c.bf16 %v656_v23, %v654_v20  ;;  %475 = vst.msk [vmem:[#allocation2 + $0x141] sm:$0xff] %vm393_vm1, %v7612_v14  ;;  %v7635_v23 = vld [vmem:[%s7355_s24 + $0x68] sm:$0xff] }
  0x40   : > { %v7590_v60 = vld [vmem:[#allocation2 + $0x80] sm:$0xff]  ;;  %v7592_v33 = vld [vmem:[#allocation2 + $0x88] sm:$0x3]  ;;  %v627_v42 = vrot.slane %v7576_v38, 1  ;;  %v661_v11 = vsel %vm601_vm3, %v658_v52, %v660_v49  ;;  %10856 = vst [vmem:[#allocation33_spill] sm:$0xff] %v7627_v30  ;;  %460 = vst.msk [vmem:[#allocation2 + $0x91] sm:$0xff] %vm393_vm1, %v7615_v7 }
  0x41   : > { %v7601_v26 = vld [vmem:[#allocation2 + $0x120] sm:$0xff]  ;;  %v7603_v25 = vld [vmem:[#allocation2 + $0x128] sm:$0xff]  ;;  %v7609_v15 = vld [vmem:[#allocation2 + $0x130] sm:$0x3]  ;;  %10855 = vst [vmem:[#allocation32_spill] sm:$0xff] %v7619_v31  ;;  %v624_v50 = vsel %vm601_vm3, %v622_v32, %v623_v27  ;;  %v628_v51 = vrot.slane %v7590_v60, 1  ;;  %v7639_v32 = vpack.c.bf16 %v661_v11, %v659_v37  ;;  %v626_v52 = vsel %vm601_vm3, %v623_v27, %v625_v16  ;;  %6491 = vmatprep.mubr.msk.bf16.mxu1 %vm393_vm1, %v7619_v31 }
  0x42   : > { %10857 = vst [vmem:[#allocation34_spill] sm:$0xff] %v7632_v29  ;;  %10858 = vst [vmem:[#allocation35_spill] sm:$0xff] %v7635_v23  ;;  %v630_v20 = vrot.slane %v7592_v33, 1  ;;  %v662_v49 = vrot.slane %v7601_v26, 1  ;;  %v7651_v14 = vld [vmem:[%s7355_s24 + $0xd0] sm:$0xff]  ;;  %v7654_v37 = vld [vmem:[%s7355_s24 + $0xd8] sm:$0xff]  ;;  %v7661_v16 = vpack.c.bf16 %v626_v52, %v624_v50 }
  0x43   : > { %10859 = vst [vmem:[#allocation36_spill] sm:$0xff] %v7639_v32  ;;  %461 = vst.msk [vmem:[#allocation2 + $0x99] sm:$0xff] %vm393_vm1, %v7627_v30  ;;  %v7657_v11 = vld [vmem:[%s7355_s24 + $0xe0] sm:$0xff]  ;;  %v629_v27 = vsel %vm601_vm3, %v627_v42, %v628_v51  ;;  %v663_v30 = vrot.slane %v7603_v25, 1  ;;  %v7676_v42 = vld [vmem:[#allocation2 + $0x138] sm:$0xff]  ;;  %6492 = vmatmul.mubr.msk.bf16.gmra.mxu1 %vm393_vm1, %v7639_v32  ;;  %v10868_v7 = vrot.slane %v7366_v8, 2 }
  0x44   : > { %462 = vst.msk [vmem:[#allocation2 + $0xa9] sm:$0xff] %vm393_vm1, %v7632_v29  ;;  %463 = vst.msk [vmem:[#allocation2 + $0xb1] sm:$0xff] %vm393_vm1, %v7635_v23  ;;  %v665_v29 = vrot.slane %v7609_v15, 1  ;;  %v7671_v23 = vld [vmem:[%s7355_s24 + $0xe8] sm:$0xff]  ;;  %v631_v50 = vsel %vm601_vm3, %v628_v51, %v630_v20  ;;  %6479 = vmatprep.mubr.msk.bf16.mxu0 %vm393_vm1, %v7661_v16  ;;  %v667_v20 = vrot.slane %v7676_v42, 1 }
  0x45   : > { %10860 = vst [vmem:[#allocation37_spill] sm:$0xff] %v7651_v14  ;;  %10861 = vst [vmem:[#allocation38_spill] sm:$0xff] %v7654_v37  ;;  %v664_v52 = vsel %vm601_vm3, %v662_v49, %v663_v30  ;;  %v10869_v49 = vrot.slane %v7370_v10, 2 }
  0x46   : > { %10862 = vst [vmem:[#allocation39_spill] sm:$0xff] %v7657_v11  ;;  %10863 = vst [vmem:[#allocation40_spill] sm:$0xff] %v7661_v16  ;;  %v7712_v51 = vld [vmem:[#allocation2 + $0x140] sm:$0xff] }
  0x47   : > { %476 = vst.msk [vmem:[#allocation2 + $0x151] sm:$0xff] %vm393_vm1, %v7651_v14  ;;  %477 = vst.msk [vmem:[#allocation2 + $0x159] sm:$0xff] %vm393_vm1, %v7654_v37  ;;  %v666_v37 = vsel %vm601_vm3, %v663_v30, %v665_v29  ;;  %v7716_v10 = vld [vmem:[#allocation2 + $0x90] sm:$0xff] }
  0x48   : > { %10864 = vst [vmem:[#allocation41_spill] sm:$0xff] %v7671_v23  ;;  %478 = vst.msk [vmem:[#allocation2 + $0x169] sm:$0xff] %vm393_vm1, %v7657_v11  ;;  %v7686_v11 = vpack.c.bf16 %v631_v50, %v629_v27  ;;  %v7688_v14 = vpack.c.bf16 %v666_v37, %v664_v52  ;;  %v7703_v27 = vld [vmem:[%s7355_s24 + $0xf0] sm:$0xff]  ;;  %v7706_v37 = vld [vmem:[%s7355_s24 + $0xf8] sm:$0xff]  ;;  %v1164_v50 = vrot.slane %v7465_v35, 2  ;;  %v1166_v52 = vrot.slane %v7467_v36, 2 }
  0x49   : > { %479 = vst.msk [vmem:[#allocation2 + $0x171] sm:$0xff] %vm393_vm1, %v7671_v23  ;;  %v10867_v23 = vrot.slane %v7368_v9, 2  ;;  %10871 = vst [vmem:[#allocation44_spill] sm:$0xff] %v7703_v27  ;;  %v632_v22 = vrot.slane %v7716_v10, 1 }
  0x4a   : > { %10865 = vst [vmem:[#allocation42_spill] sm:$0xff] %v7686_v11  ;;  %10866 = vst [vmem:[#allocation43_spill] sm:$0xff] %v7688_v14  ;;  %6495 = vmatprep.mubr.msk.bf16.mxu1 %vm393_vm1, %v7688_v14  ;;  %v7724_v36 = vld [vmem:[#allocation2 + $0x98] sm:$0xff]  ;;  %6480 = vmatmul.mubr.msk.bf16.gmra.mxu0 %vm393_vm1, %v7686_v11 }
  0x4b   : > { %v1160_v28 = vsel %vm1157_vm4, %v10868_v7, %v10867_v23  ;;  %v10870_v29 = vmov %v10867_v23  ;;  %10872 = vst [vmem:[#allocation45_spill] sm:$0xff] %v7706_v37  ;;  %v7714_v7 = vld [vmem:[#allocation2 + $0x148] sm:$0x3]  ;;  %480 = vst.msk [vmem:[#allocation2 + $0x181] sm:$0xff] %vm393_vm1, %v7703_v27  ;;  %v668_v23 = vrot.slane %v7712_v51, 1  ;;  %v633_v21 = vrot.slane %v7724_v36, 1 }
  0x4c   : > { %v1162_v30 = vsel %vm1157_vm4, %v10870_v29, %v10869_v49  ;;  %10873 = vst [vmem:[#allocation46_spill] sm:$0xff] %v7714_v7  ;;  %481 = vst.msk [vmem:[#allocation2 + $0x189] sm:$0xff] %vm393_vm1, %v7706_v37  ;;  %v670_v49 = vrot.slane %v7714_v7, 1  ;;  %v7726_v29 = vld [vmem:[#allocation2 + $0xa0] sm:$0x3]  ;;  %v7733_v18 = vld [vmem:[#allocation2 + $0xa8] sm:$0xff] }
  0x4d   : > { %v635_v27 = vrot.slane %v7726_v29, 1  ;;  %v7735_v37 = vld [vmem:[#allocation2 + $0xb0] sm:$0xff]  ;;  %v7737_v17 = vld [vmem:[#allocation2 + $0xb8] sm:$0x3]  ;;  %v1270_v6 = vpack.c.bf16 %v1162_v30, %v1160_v28  ;;  %v669_v5 = vsel %vm601_vm3, %v667_v20, %v668_v23  ;;  %v637_v32 = vrot.slane %v7733_v18, 1 }
  0x4e   : > { %v671_v14 = vsel %vm601_vm3, %v668_v23, %v670_v49  ;;  %v638_v31 = vrot.slane %v7735_v37, 1  ;;  %v7743_v1 = vld [vmem:[#allocation2 + $0x150] sm:$0xff]  ;;  %v7745_v19 = vld [vmem:[#allocation2 + $0x158] sm:$0xff]  ;;  %v7747_v11 = vld [vmem:[#allocation2 + $0x160] sm:$0x3]  ;;  %v634_v2 = vsel %vm601_vm3, %v632_v22, %v633_v21  ;;  %v640_v20 = vrot.slane %v7737_v17, 1 }
  0x4f   : > { %10874 = vst [vmem:[#allocation47_spill] sm:$0xff] %v7743_v1  ;;  %10875 = vst [vmem:[#allocation48_spill] sm:$0xff] %v7745_v19  ;;  %v7749_v16 = vpack.c.bf16 %v671_v14, %v669_v5  ;;  %v636_v28 = vsel %vm601_vm3, %v633_v21, %v635_v27  ;;  %v7754_v30 = vld [vmem:[#allocation2 + $0x168] sm:$0xff]  ;;  %v672_v7 = vrot.slane %v7743_v1, 1  ;;  %v673_v5 = vrot.slane %v7745_v19, 1 }
  0x50   : > { %10876 = vst [vmem:[#allocation49_spill] sm:$0xff] %v7747_v11  ;;  %v7756_v23 = vld [vmem:[#allocation2 + $0x170] sm:$0xff]  ;;  %v7758_v49 = vld [vmem:[#allocation2 + $0x178] sm:$0x3]  ;;  %v7760_v45 = vpack.c.bf16 %v636_v28, %v634_v2  ;;  %v639_v58 = vsel %vm601_vm3, %v637_v32, %v638_v31  ;;  %v641_v14 = vsel %vm601_vm3, %v638_v31, %v640_v20  ;;  %v675_v21 = vrot.slane %v7747_v11, 1 }
  0x51   : > { %10877 = vst [vmem:[#allocation50_spill] sm:$0xff] %v7749_v16  ;;  %6496 = vmatmul.mubr.msk.bf16.gmra.mxu1 %vm393_vm1, %v7749_v16  ;;  %v677_v22 = vrot.slane %v7754_v30, 1  ;;  %v678_v27 = vrot.slane %v7756_v23, 1  ;;  %v7773_v2 = vpack.c.bf16 %v641_v14, %v639_v58  ;;  %v674_v32 = vsel %vm601_vm3, %v672_v7, %v673_v5 }
  0x52   : > { %10878 = vst [vmem:[#allocation51_spill] sm:$0xff] %v7760_v45  ;;  %6483 = vmatprep.mubr.msk.bf16.mxu0 %vm393_vm1, %v7760_v45  ;;  %v680_v28 = vrot.slane %v7758_v49, 1  ;;  %v1168_v19 = vrot.slane %v7517_v61, 2  ;;  %v676_v16 = vsel %vm601_vm3, %v673_v5, %v675_v21  ;;  %v1169_v20 = vrot.slane %v7519_v62, 2 }
  0x53   : > { %v679_v31 = vsel %vm601_vm3, %v677_v22, %v678_v27  ;;  %v1171_v11 = vrot.slane %v7526_v4, 2  ;;  %v7782_v1 = vpack.c.bf16 %v676_v16, %v674_v32  ;;  %6484 = vmatmul.mubr.msk.bf16.gmra.mxu0 %vm393_vm1, %v7773_v2  ;;  %v536_v7 = vpack.c.bf16 %v7368_v9, %v7366_v8  ;;  %v7822_v32 = vld [vmem:[%s10705_s1 + $0xc] sm:$0x3] }
  0x54   : > { %v681_v45 = vsel %vm601_vm3, %v678_v27, %v680_v28  ;;  %6539 = vmatprep.mubr.msk.bf16.mxu0 %vm393_vm1, %v1270_v6  ;;  %v10879_v5 = vrot.slane %v7463_v34, 2  ;;  %v1167_v16 = vsel %vm1157_vm4, %v1164_v50, %v1166_v52  ;;  %v1170_v14 = vsel %vm1157_vm4, %v1168_v19, %v1169_v20 }
  0x55   : > { %v7787_v58 = vpack.c.bf16 %v681_v45, %v679_v31  ;;  %6499 = vmatprep.mubr.msk.bf16.mxu1 %vm393_vm1, %v7782_v1  ;;  %v1172_v21 = vsel %vm1157_vm4, %v1169_v20, %v1171_v11  ;;  %v1173_v8 = vrot.slane %v7521_v63, 2  ;;  %v1174_v9 = vrot.slane %v7529_v12, 2 }
  0x56   : > { %v1165_v4 = vsel %vm1157_vm4, %v10879_v5, %v1164_v50  ;;  %v7805_v6 = vpack.c.bf16 %v1172_v21, %v1170_v14  ;;  %v1176_v22 = vrot.slane %v7540_v39, 2  ;;  %v1751_v19 = vsel %vm780_vm0, %v7510_v56, 0 }
  0x57   : > { %v7802_v45 = vpack.c.bf16 %v1167_v16, %v1165_v4  ;;  %v1178_v11 = vrot.slane %v7563_v57, 2  ;;  %v1179_v50 = vrot.slane %v7565_v44, 2  ;;  %v1181_v52 = vrot.slane %v7574_v24, 2 }
  0x58   : > { %v7817_v27 = vpack.c.bf16 %v7503_v54, %v7501_v53  ;;  %v7828_v56 = vpack.c.bf16 %v7465_v35, %v7463_v34  ;;  %v7834_v39 = vpack.c.bf16 %v7519_v62, %v7517_v61  ;;  %v1175_v24 = vsel %vm1157_vm4, %v1173_v8, %v1174_v9  ;;  %v7851_v61 = vld [vmem:[%s10705_s1 + $0xa] sm:$0x3] }
  0x59   : > { %6500 = vmatmul.mubr.msk.bf16.gmra.mxu1 %vm393_vm1, %v7787_v58  ;;  %v1177_v28 = vsel %vm1157_vm4, %v1174_v9, %v1176_v22  ;;  %v1539_v31 = vsel %vm780_vm0, %v7581_v43, 0  ;;  %v1180_v20 = vsel %vm1157_vm4, %v1178_v11, %v1179_v50  ;;  %v1182_v34 = vsel %vm1157_vm4, %v1179_v50, %v1181_v52 }
  0x5a   : > { %6505 = vmatprep.mubr.msk.bf16.mxu1 %vm393_vm1, %v536_v7  ;;  %v7846_v35 = vpack.c.bf16 %v7552_v0, %v7544_v48  ;;  %v7855_v43 = vpack.c.bf16 %v1177_v28, %v1175_v24  ;;  %v7859_v62 = vpack.c.bf16 %v7603_v25, %v7601_v26  ;;  %v7863_v7 = vpack.c.bf16 %v1182_v34, %v1180_v20 }
  0x5b   : > { %6540 = vmatmul.mubr.msk.bf16.vlgmr.msra.gmra.mxu0 %vm393_vm1, %v7802_v45  ;;  %v1183_v5 = vrot.slane %v7576_v38, 2  ;;  %v1184_v4 = vrot.slane %v7590_v60, 2  ;;  %v1186_v16 = vrot.slane %v7592_v33, 2  ;;  %v1188_v14 = vrot.slane %v7716_v10, 2 }
  0x5c   : > { %6606 = vmatpush3.bf16.msra.mxu0 %v1751_v19  ;;  %6543 = vmatprep.mubr.msk.bf16.mxu0 %vm393_vm1, %v7805_v6  ;;  %v1189_v21 = vrot.slane %v7724_v36, 2  ;;  %v1191_v8 = vrot.slane %v7726_v29, 2  ;;  %v7875_v9 = vpack.c.bf16 %v7712_v51, %v7676_v42  ;;  %v7881_v22 = vpack.c.bf16 %v7529_v12, %v7521_v63 }
  0x5d   : > { %7124 = vmatprep.subr.msk.bf16.mxu0 %vm780_vm0, %v7822_v32  ;;  %v7887_v33 = vpack.c.bf16 %v7565_v44, %v7563_v57  ;;  %v1185_v29 = vsel %vm1157_vm4, %v1183_v5, %v1184_v4  ;;  %v1187_v19 = vsel %vm1157_vm4, %v1184_v4, %v1186_v16  ;;  %v7895_v52 = vpack.c.bf16 %v7756_v23, %v7754_v30 }
  0x5e   : > { %v1190_v11 = vsel %vm1157_vm4, %v1188_v14, %v1189_v21  ;;  %v1192_v50 = vsel %vm1157_vm4, %v1189_v21, %v1191_v8  ;;  %v7899_v63 = vpack.c.bf16 %v1187_v19, %v1185_v29  ;;  %v1193_v57 = vrot.slane %v7733_v18, 2 }
  0x5f   : > { %v7903_v44 = vpack.c.bf16 %v1192_v50, %v1190_v11  ;;  %v1194_v12 = vrot.slane %v7735_v37, 2  ;;  %v1196_v24 = vrot.slane %v7737_v17, 2  ;;  %v1201_v28 = vrot.slane %v7492_v47, 2 }
  0x60   : > { %v1199_v20 = vrot.slane %v7490_v46, 2  ;;  %v7915_v34 = vpack.c.bf16 %v7590_v60, %v7576_v38  ;;  %v7921_v5 = vpack.c.bf16 %v7724_v36, %v7716_v10  ;;  %v1203_v10 = vrot.slane %v7501_v53, 2 }
  0x61   : > { %6506 = vmatmul.mubr.msk.bf16.vlgmr.msra.gmra.mxu1 %vm393_vm1, %v7828_v56  ;;  %v1195_v17 = vsel %vm1157_vm4, %v1193_v57, %v1194_v12  ;;  %v1197_v47 = vsel %vm1157_vm4, %v1194_v12, %v1196_v24  ;;  %v1204_v36 = vrot.slane %v7503_v54, 2  ;;  %v1206_v14 = vrot.slane %v7505_v55, 2 }
  0x62   : > { %6572 = vmatpush3.bf16.msra.mxu1 %v1539_v31  ;;  %6509 = vmatprep.mubr.msk.bf16.mxu1 %vm393_vm1, %v7834_v39  ;;  %v1198_v31 = vrot.slane %v7481_v41, 2  ;;  %v1202_v16 = vsel %vm1157_vm4, %v1199_v20, %v1201_v28  ;;  %v7929_v38 = vpack.c.bf16 %v1197_v47, %v1195_v17  ;;  %v1208_v21 = vrot.slane %v7531_v13, 2  ;;  %v10881_v17 = vld [vmem:[#allocation47_spill] sm:$0xff] }
  0x63   : > { %7123 = vmatprep.subr.msk.bf16.mxu1 %vm780_vm0, %v7851_v61  ;;  %6544 = vmatmul.mubr.msk.bf16.gmra.mxu0 %vm393_vm1, %v7855_v43  ;;  %v1209_v8 = vrot.slane %v7542_v40, 2  ;;  %v1211_v29 = vrot.slane %v7550_v59, 2  ;;  %v7945_v19 = vpack.c.bf16 %v7735_v37, %v7733_v18  ;;  %v7951_v53 = vpack.c.bf16 %v7490_v46, %v7481_v41 }
  0x64   : > { %6547 = vmatprep.mubr.msk.bf16.mxu0 %vm393_vm1, %v7863_v7  ;;  %v1200_v4 = vsel %vm1157_vm4, %v1198_v31, %v1199_v20  ;;  %v1205_v54 = vsel %vm1157_vm4, %v1203_v10, %v1204_v36  ;;  %v1207_v55 = vsel %vm1157_vm4, %v1204_v36, %v1206_v14  ;;  %v1213_v41 = vrot.slane %v7544_v48, 2  ;;  %v10880_v31 = vld [vmem:[#allocation46_spill] sm:$0xff]  ;;  %v10883_v10 = vld [vmem:[#allocation49_spill] sm:$0xff] }
  0x65   : > { %v7933_v60 = vpack.c.bf16 %v1202_v16, %v1200_v4  ;;  %v1210_v59 = vsel %vm1157_vm4, %v1208_v21, %v1209_v8  ;;  %v1212_v11 = vsel %vm1157_vm4, %v1209_v8, %v1211_v29  ;;  %v7959_v18 = vpack.c.bf16 %v1207_v55, %v1205_v54  ;;  %v10882_v4 = vld [vmem:[#allocation48_spill] sm:$0xff] }
  0x66   : > { %v7963_v37 = vpack.c.bf16 %v1212_v11, %v1210_v59  ;;  %v1214_v46 = vrot.slane %v7552_v0, 2  ;;  %v1216_v50 = vrot.slane %v7561_v3, 2  ;;  %v1218_v57 = vrot.slane %v7601_v26, 2 }
  0x67   : > { %v1219_v12 = vrot.slane %v7603_v25, 2  ;;  %v1221_v24 = vrot.slane %v7609_v15, 2  ;;  %v7977_v28 = vpack.c.bf16 %v7542_v40, %v7531_v13  ;;  %v1223_v13 = vrot.slane %v7676_v42, 2 }
  0x68   : > { %v1215_v48 = vsel %vm1157_vm4, %v1213_v41, %v1214_v46  ;;  %v1217_v0 = vsel %vm1157_vm4, %v1214_v46, %v1216_v50  ;;  %v1224_v40 = vrot.slane %v7712_v51, 2  ;;  %v1226_v20 = vrot.slane %v10880_v31, 2  ;;  %v532_v50 = vld [vmem:[#allocation2 + $0x190] sm:$0x3]  ;;  %v10885_v31 = vld [vmem:[#allocation28_spill] sm:$0xff] }
  0x69   : > { %6510 = vmatmul.mubr.msk.bf16.gmra.mxu1 %vm393_vm1, %v7881_v22  ;;  %v1220_v26 = vsel %vm1157_vm4, %v1218_v57, %v1219_v12  ;;  %v1222_v25 = vsel %vm1157_vm4, %v1219_v12, %v1221_v24  ;;  %v7985_v15 = vpack.c.bf16 %v1217_v0, %v1215_v48  ;;  %v1228_v47 = vrot.slane %v10881_v17, 2  ;;  %v10884_v48 = vld [vmem:[#allocation25_spill] sm:$0xff] }
  0x6a   : > { %6513 = vmatprep.mubr.msk.bf16.mxu1 %vm393_vm1, %v7887_v33  ;;  %v7989_v3 = vpack.c.bf16 %v1222_v25, %v1220_v26  ;;  %v1229_v16 = vrot.slane %v10882_v4, 2  ;;  %v1231_v36 = vrot.slane %v10883_v10, 2  ;;  %v1225_v14 = vsel %vm1157_vm4, %v1223_v13, %v1224_v40  ;;  %v10892_v10 = vld [vmem:[#allocation32_spill] sm:$0xff] }
  0x6b   : > { %6548 = vmatmul.mubr.msk.bf16.gmra.mxu0 %vm393_vm1, %v7899_v63  ;;  %v1227_v42 = vsel %vm1157_vm4, %v1224_v40, %v1226_v20  ;;  %v1233_v54 = vrot.slane %v7754_v30, 2  ;;  %v1234_v55 = vrot.slane %v7756_v23, 2  ;;  %v1236_v59 = vrot.slane %v7758_v49, 2  ;;  %v530_v23 = vld [vmem:[#allocation2 + $0x180] sm:$0xff]  ;;  %v531_v49 = vld [vmem:[#allocation2 + $0x188] sm:$0xff] }
  0x6c   : > { %6551 = vmatprep.mubr.msk.bf16.mxu0 %vm393_vm1, %v7903_v44  ;;  %v1230_v51 = vsel %vm1157_vm4, %v1228_v47, %v1229_v16  ;;  %v1232_v21 = vsel %vm1157_vm4, %v1229_v16, %v1231_v36  ;;  %v8007_v8 = vpack.c.bf16 %v1227_v42, %v1225_v14  ;;  %v8022_v11 = vpack.c.bf16 %v10882_v4, %v10881_v17  ;;  %v5951_v40 = vld [vmem:[%s10705_s1 + $0x10] sm:$0x3]  ;;  %v10886_v20 = vld [vmem:[#allocation29_spill] sm:$0xff]  ;;  %v10891_v16 = vld [vmem:[#allocation27_spill] sm:$0xff] }
  0x6d   : > { %v8011_v29 = vpack.c.bf16 %v1232_v21, %v1230_v51  ;;  %v1235_v41 = vsel %vm1157_vm4, %v1233_v54, %v1234_v55  ;;  %v1237_v46 = vsel %vm1157_vm4, %v1234_v55, %v1236_v59  ;;  %v1946_v57 = vrot.slane %v530_v23, 2  ;;  %v10888_v47 = vld [vmem:[#allocation42_spill] sm:$0xff]  ;;  %v10893_v36 = vld [vmem:[#allocation36_spill] sm:$0xff]  ;;  %v10894_v14 = vld [vmem:[#allocation43_spill] sm:$0xff] }
  0x6e   : > { %v8028_v30 = vpack.c.bf16 %v1237_v46, %v1235_v41  ;;  %v1947_v12 = vrot.slane %v531_v49, 2  ;;  %v1949_v24 = vrot.slane %v532_v50, 2  ;;  %v2162_v13 = vsel %vm780_vm0, %v7822_v32, 0  ;;  %v5934_v32 = vld [vmem:[%s10705_s1 + $0xe] sm:$0x3]  ;;  %v10890_v4 = vld [vmem:[#allocation26_spill] sm:$0xff] }
  0x6f   : > { %v1960_v17 = vsel %vm780_vm0, %v7851_v61, 0  ;;  %v10889_v61 = vld [vmem:[#allocation51_spill] sm:$0xff]  ;;  %v10895_v42 = vld [vmem:[#allocation50_spill] sm:$0xff]  ;;  %v1737_v51 = vrot.slane %v530_v23, 1  ;;  %v1738_v21 = vrot.slane %v531_v49, 1  ;;  %v1740_v54 = vrot.slane %v532_v50, 1 }
  0x70   : > { %v1948_v0 = vsel %vm1157_vm4, %v1946_v57, %v1947_v12  ;;  %v1950_v26 = vsel %vm1157_vm4, %v1947_v12, %v1949_v24  ;;  %v8114_v46 = vld [vmem:[#allocation2 + $0x198] sm:$0xff]  ;;  %v8116_v57 = vld [vmem:[#allocation2 + $0x1a0] sm:$0xff]  ;;  %v8122_v24 = vld [vmem:[#allocation2 + $0x1a8] sm:$0x3] }
  0x71   : > { %6514 = vmatmul.mubr.msk.bf16.gmra.mxu1 %vm393_vm1, %v7915_v34  ;;  %v8038_v25 = vpack.c.bf16 %v1950_v26, %v1948_v0  ;;  %v1739_v55 = vsel %vm601_vm3, %v1737_v51, %v1738_v21  ;;  %v1741_v59 = vsel %vm601_vm3, %v1738_v21, %v1740_v54  ;;  %v2360_v50 = vrot.slane %v8114_v46, 1 }
  0x72   : > { %6517 = vmatprep.mubr.msk.bf16.mxu1 %vm393_vm1, %v7921_v5  ;;  %v8112_v41 = vpack.c.bf16 %v1741_v59, %v1739_v55  ;;  %v2361_v12 = vrot.slane %v8116_v57, 1  ;;  %v1532_v0 = vpack.c.bf16 %v531_v49, %v530_v23  ;;  %v2583_v51 = vsel %vm780_vm0, %v5951_v40, 0 }
  0x73   : > { %6552 = vmatmul.mubr.msk.bf16.gmra.mxu0 %vm393_vm1, %v7929_v38  ;;  %v2155_v59 = vpack.c.bf16 %v8116_v57, %v8114_v46 }
  0x74   : > { %6555 = vmatprep.mubr.msk.bf16.mxu0 %vm393_vm1, %v7933_v60  ;;  %10896 = vst [vmem:[#allocation46_spill] sm:$0xff] %v8112_v41  ;;  %v8130_v26 = vsel %vm601_vm3, %v2360_v50, %v2361_v12 }
  0x75   : > { %10897 = vst [vmem:[#allocation47_spill] sm:$0xff] %v8130_v26 }
  0x79   : > { %6518 = vmatmul.mubr.msk.bf16.gmra.mxu1 %vm393_vm1, %v7945_v19 }
  0x7a   : > { %6521 = vmatprep.mubr.msk.bf16.mxu1 %vm393_vm1, %v7951_v53 }
  0x7b   : > { %6556 = vmatmul.mubr.msk.bf16.gmra.mxu0 %vm393_vm1, %v7959_v18 }
  0x7c   : > { %6559 = vmatprep.mubr.msk.bf16.mxu0 %vm393_vm1, %v7963_v37 }
  0x81   : > { %6522 = vmatmul.mubr.msk.bf16.gmra.mxu1 %vm393_vm1, %v7817_v27 }
  0x82   : > { %6525 = vmatprep.mubr.msk.bf16.mxu1 %vm393_vm1, %v7977_v28 }
  0x83   : > { %6560 = vmatmul.mubr.msk.bf16.gmra.mxu0 %vm393_vm1, %v7985_v15 }
  0x84   : > { %6563 = vmatprep.mubr.msk.bf16.mxu0 %vm393_vm1, %v7989_v3 }
  0x89   : > { %6526 = vmatmul.mubr.msk.bf16.gmra.mxu1 %vm393_vm1, %v7846_v35 }
  0x8a   : > { %6529 = vmatprep.mubr.msk.bf16.mxu1 %vm393_vm1, %v7859_v62 }
  0x8b   : > { %6564 = vmatmul.mubr.msk.bf16.gmra.mxu0 %vm393_vm1, %v8007_v8 }
  0x8c   : > { %6567 = vmatprep.mubr.msk.bf16.mxu0 %vm393_vm1, %v8011_v29 }
  0x91   : > { %6530 = vmatmul.mubr.msk.bf16.gmra.mxu1 %vm393_vm1, %v7875_v9 }
  0x92   : > { %6533 = vmatprep.mubr.msk.bf16.mxu1 %vm393_vm1, %v8022_v11 }
  0x93   : > { %6568 = vmatmul.mubr.msk.bf16.gmra.mxu0 %vm393_vm1, %v8028_v30 }
  0x94   : > { %6607 = vmatprep.mubr.msk.bf16.mxu0 %vm393_vm1, %v10884_v48  ;;  %v2363_v48 = vrot.slane %v8122_v24, 1 }
  0x99   : > { %6534 = vmatmul.mubr.msk.bf16.gmra.mxu1 %vm393_vm1, %v7895_v52 }
  0x9a   : > { %6573 = vmatprep.mubr.msk.bf16.mxu1 %vm393_vm1, %v7828_v56  ;;  %v10887_v56 = vld [vmem:[#allocation40_spill] sm:$0xff] }
  0x9b   : > { %6608 = vmatmul.mubr.msk.bf16.vlgmr.msra.gmra.mxu0 %vm393_vm1, %v10885_v31 }
  0x9c   : > { %6674 = vmatpush3.bf16.msra.mxu0 %v2162_v13  ;;  %6611 = vmatprep.mubr.msk.bf16.mxu0 %vm393_vm1, %v10886_v20  ;;  %v8133_v13 = vsel %vm601_vm3, %v2361_v12, %v2363_v48 }
  0x9d   : > { %7126 = vmatprep.subr.msk.bf16.mxu0 %vm780_vm0, %v5951_v40  ;;  %10898 = vst [vmem:[#allocation48_spill] sm:$0xff] %v8133_v13 }
  0xa1   : > { %6574 = vmatmul.mubr.msk.bf16.vlgmr.msra.gmra.mxu1 %vm393_vm1, %v7834_v39 }
  0xa2   : > { %6640 = vmatpush3.bf16.msra.mxu1 %v1960_v17  ;;  %6577 = vmatprep.mubr.msk.bf16.mxu1 %vm393_vm1, %v7881_v22 }
  0xa3   : > { %7125 = vmatprep.subr.msk.bf16.mxu1 %vm780_vm0, %v5934_v32  ;;  %6612 = vmatmul.mubr.msk.bf16.gmra.mxu0 %vm393_vm1, %v10887_v56 }
  0xa4   : > { %6615 = vmatprep.mubr.msk.bf16.mxu0 %vm393_vm1, %v10888_v47 }
  0xa9   : > { %6578 = vmatmul.mubr.msk.bf16.gmra.mxu1 %vm393_vm1, %v7887_v33 }
  0xaa   : > { %6581 = vmatprep.mubr.msk.bf16.mxu1 %vm393_vm1, %v7915_v34 }
  0xab   : > { %6616 = vmatmul.mubr.msk.bf16.gmra.mxu0 %vm393_vm1, %v10889_v61 }
  0xac   : > { %6619 = vmatprep.mubr.msk.bf16.mxu0 %vm393_vm1, %v7773_v2 }
  0xb1   : > { %6582 = vmatmul.mubr.msk.bf16.gmra.mxu1 %vm393_vm1, %v7921_v5 }
  0xb2   : > { %6585 = vmatprep.mubr.msk.bf16.mxu1 %vm393_vm1, %v7945_v19 }
  0xb3   : > { %6620 = vmatmul.mubr.msk.bf16.gmra.mxu0 %vm393_vm1, %v10890_v4 }
  0xb4   : > { %6623 = vmatprep.mubr.msk.bf16.mxu0 %vm393_vm1, %v10891_v16 }
  0xb9   : > { %6586 = vmatmul.mubr.msk.bf16.gmra.mxu1 %vm393_vm1, %v7951_v53 }
  0xba   : > { %6589 = vmatprep.mubr.msk.bf16.mxu1 %vm393_vm1, %v7817_v27 }
  0xbb   : > { %6624 = vmatmul.mubr.msk.bf16.gmra.mxu0 %vm393_vm1, %v10892_v10 }
  0xbc   : > { %6627 = vmatprep.mubr.msk.bf16.mxu0 %vm393_vm1, %v10893_v36 }
  0xc1   : > { %6590 = vmatmul.mubr.msk.bf16.gmra.mxu1 %vm393_vm1, %v7977_v28 }
  0xc2   : > { %6593 = vmatprep.mubr.msk.bf16.mxu1 %vm393_vm1, %v7846_v35 }
  0xc3   : > { %6628 = vmatmul.mubr.msk.bf16.gmra.mxu0 %vm393_vm1, %v10894_v14 }
  0xc4   : > { %6631 = vmatprep.mubr.msk.bf16.mxu0 %vm393_vm1, %v10895_v42 }
  0xc9   : > { %6594 = vmatmul.mubr.msk.bf16.gmra.mxu1 %vm393_vm1, %v7859_v62 }
  0xca   : > { %6597 = vmatprep.mubr.msk.bf16.mxu1 %vm393_vm1, %v7875_v9 }
  0xcb   : > { %6632 = vmatmul.mubr.msk.bf16.gmra.mxu0 %vm393_vm1, %v7782_v1 }
  0xcc   : > { %6635 = vmatprep.mubr.msk.bf16.mxu0 %vm393_vm1, %v7787_v58 }
  0xd1   : > { %6598 = vmatmul.mubr.msk.bf16.gmra.mxu1 %vm393_vm1, %v8022_v11 }
  0xd2   : > { %6601 = vmatprep.mubr.msk.bf16.mxu1 %vm393_vm1, %v7895_v52 }
  0xd3   : > { %6636 = vmatmul.mubr.msk.bf16.gmra.mxu0 %vm393_vm1, %v8112_v41 }
  0xd4   : > { %6675 = vmatprep.mubr.msk.bf16.mxu0 %vm393_vm1, %v7834_v39  ;;  %v2374_v39 = vsel %vm780_vm0, %v5934_v32, 0 }
  0xd9   : > { %6602 = vmatmul.mubr.msk.bf16.gmra.mxu1 %vm393_vm1, %v1532_v0 }
  0xda   : > { %6641 = vmatprep.mubr.msk.bf16.mxu1 %vm393_vm1, %v7802_v45 }
  0xdb   : > { %6676 = vmatmul.mubr.msk.bf16.vlgmr.msra.gmra.mxu0 %vm393_vm1, %v7881_v22 }
  0xdc   : > { %6742 = vmatpush3.bf16.msra.mxu0 %v2583_v51  ;;  %6679 = vmatprep.mubr.msk.bf16.mxu0 %vm393_vm1, %v7887_v33 }
  0xe1   : > { %6642 = vmatmul.mubr.msk.bf16.vlgmr.msra.gmra.mxu1 %vm393_vm1, %v7805_v6 }
  0xe2   : > { %6708 = vmatpush3.bf16.msra.mxu1 %v2374_v39  ;;  %6645 = vmatprep.mubr.msk.bf16.mxu1 %vm393_vm1, %v7855_v43 }
  0xe3   : > { %6680 = vmatmul.mubr.msk.bf16.gmra.mxu0 %vm393_vm1, %v7915_v34 }
  0xe4   : > { %6683 = vmatprep.mubr.msk.bf16.mxu0 %vm393_vm1, %v7921_v5 }
  0xe9   : > { %6646 = vmatmul.mubr.msk.bf16.gmra.mxu1 %vm393_vm1, %v7863_v7 }
  0xea   : > { %6649 = vmatprep.mubr.msk.bf16.mxu1 %vm393_vm1, %v7899_v63 }
  0xeb   : > { %6684 = vmatmul.mubr.msk.bf16.gmra.mxu0 %vm393_vm1, %v7945_v19 }
  0xec   : > { %6687 = vmatprep.mubr.msk.bf16.mxu0 %vm393_vm1, %v7951_v53 }
  0xf1   : > { %6650 = vmatmul.mubr.msk.bf16.gmra.mxu1 %vm393_vm1, %v7903_v44 }
  0xf2   : > { %6653 = vmatprep.mubr.msk.bf16.mxu1 %vm393_vm1, %v7929_v38 }
  0xf3   : > { %6688 = vmatmul.mubr.msk.bf16.gmra.mxu0 %vm393_vm1, %v7817_v27 }
  0xf4   : > { %6691 = vmatprep.mubr.msk.bf16.mxu0 %vm393_vm1, %v7977_v28 }
  0xf6   : > { %v6473_v45 = vpop.f32.mrf.mxu0 }
  0xf8   : > { %v818_v22 = vpop.f32.mrf.mxu0 }
  0xf9   : > { %6654 = vmatmul.mubr.msk.bf16.gmra.mxu1 %vm393_vm1, %v7933_v60 }
  0xfa   : > { %6657 = vmatprep.mubr.msk.bf16.mxu1 %vm393_vm1, %v7959_v18  ;;  %v8178_v33 = vpop.f32.mrf.mxu1  ;;  %v6474_v27 = vpop.f32.mrf.mxu0 }
  0xfb   : > { %6692 = vmatmul.mubr.msk.bf16.gmra.mxu0 %vm393_vm1, %v7846_v35 }
  0xfc   : > { %6695 = vmatprep.mubr.msk.bf16.mxu0 %vm393_vm1, %v7859_v62  ;;  %v8184_v34 = vpop.f32.mrf.mxu1  ;;  %v821_v5 = vpop.f32.mrf.mxu0 }
  0xfe   : > { %v8186_v19 = vpop.f32.mrf.mxu1  ;;  %v8188_v53 = vpop.f32.mrf.mxu0 }
 0x100   : > { %v8194_v35 = vpop.f32.mrf.mxu1  ;;  %v8196_v62 = vpop.f32.mrf.mxu0 }
 0x101   : > { %6658 = vmatmul.mubr.msk.bf16.gmra.mxu1 %vm393_vm1, %v7963_v37  ;;  %10899 = vst [vmem:[#allocation49_spill] sm:$0xff] %v8194_v35 }
 0x102   : > { %6661 = vmatprep.mubr.msk.bf16.mxu1 %vm393_vm1, %v7985_v15  ;;  %v8202_v23 = vpop.f32.mrf.mxu0 }
 0x103   : > { %6696 = vmatmul.mubr.msk.bf16.gmra.mxu0 %vm393_vm1, %v7875_v9  ;;  %v8198_v28 = vpop.f32.mrf.mxu1 }
 0x104   : > { %6699 = vmatprep.mubr.msk.bf16.mxu0 %vm393_vm1, %v8022_v11  ;;  %v8208_v9 = vpop.f32.mrf.mxu0 }
 0x105   : > { %v8206_v49 = vpop.f32.mrf.mxu1 }
 0x107   : > { %v8210_v40 = vpop.f32.mrf.mxu1 }
 0x109   : > { %6662 = vmatmul.mubr.msk.bf16.gmra.mxu1 %vm393_vm1, %v7989_v3  ;;  %v8217_v32 = vpop.f32.mrf.mxu1 }
 0x10a   : > { %6665 = vmatprep.mubr.msk.bf16.mxu1 %vm393_vm1, %v8007_v8  ;;  %v8212_v11 = vpop.f32.mrf.mxu0  ;;  %10900 = vst [vmem:[#allocation25_spill] sm:$0xff] %v8217_v32 }
 0x10b   : > { %6700 = vmatmul.mubr.msk.bf16.gmra.mxu0 %vm393_vm1, %v7895_v52 }
 0x10c   : > { %6703 = vmatprep.mubr.msk.bf16.mxu0 %vm393_vm1, %v1532_v0  ;;  %v8219_v21 = vpop.f32.mrf.mxu0 }
 0x10e   : > { %v8225_v55 = vpop.f32.mrf.mxu0 }
 0x110   : > { %v8233_v50 = vpop.f32.mrf.mxu0 }
 0x111   : > { %v8221_v54 = vpop.f32.mrf.mxu1  ;;  %6666 = vmatmul.mubr.msk.bf16.gmra.mxu1 %vm393_vm1, %v8011_v29 }
 0x112   : > { %10901 = vst [vmem:[#allocation28_spill] sm:$0xff] %v8221_v54  ;;  %6669 = vmatprep.mubr.msk.bf16.mxu1 %vm393_vm1, %v8028_v30 }
 0x113   : > { %v8231_v52 = vpop.f32.mrf.mxu1  ;;  %v8237_v48 = vpop.f32.mrf.mxu0  ;;  %6704 = vmatmul.mubr.msk.bf16.gmra.mxu0 %vm393_vm1, %v2155_v59 }
 0x114   : > { %10902 = vst [vmem:[#allocation29_spill] sm:$0xff] %v8231_v52  ;;  %6743 = vmatprep.mubr.msk.bf16.mxu0 %vm393_vm1, %v7805_v6 }
 0x115   : > { %v8235_v12 = vpop.f32.mrf.mxu1  ;;  %v8244_v51 = vpop.f32.mrf.mxu0 }
 0x116   : > { %10903 = vst [vmem:[#allocation40_spill] sm:$0xff] %v8235_v12 }
 0x117   : > { %v8242_v0 = vpop.f32.mrf.mxu1  ;;  %v8250_v17 = vpop.f32.mrf.mxu0 }
 0x118   : > { %10904 = vst [vmem:[#allocation42_spill] sm:$0xff] %v8242_v0 }
 0x119   : > { %v8246_v39 = vpop.f32.mrf.mxu1  ;;  %6670 = vmatmul.mubr.msk.bf16.gmra.mxu1 %vm393_vm1, %v8038_v25  ;;  %v8256_v59 = vpop.f32.mrf.mxu0 }
 0x11a   : > { %10905 = vst [vmem:[#allocation51_spill] sm:$0xff] %v8246_v39  ;;  %6709 = vmatprep.mubr.msk.bf16.mxu1 %vm393_vm1, %v10885_v31 }
 0x11b   : > { %v8254_v32 = vpop.f32.mrf.mxu1  ;;  %v6541_v6 = vpop.f32.mrf.mxu0  ;;  %6744 = vmatmul.mubr.msk.bf16.vlgmr.msra.gmra.mxu0 %vm393_vm1, %v7855_v43 }
 0x11c   : > { %10906 = vst [vmem:[#allocation26_spill] sm:$0xff] %v8254_v32  ;;  %6747 = vmatprep.mubr.msk.bf16.mxu0 %vm393_vm1, %v7863_v7 }
 0x11d   : > { %v8258_v35 = vpop.f32.mrf.mxu1  ;;  %v1373_v39 = vpop.f32.mrf.mxu0 }
 0x11e   : > { %10907 = vst [vmem:[#allocation27_spill] sm:$0xff] %v8258_v35 }
 0x11f   : > { %v8264_v0 = vpop.f32.mrf.mxu1  ;;  %v6542_v31 = vpop.f32.mrf.mxu0 }
 0x120   : > { %10908 = vst [vmem:[#allocation32_spill] sm:$0xff] %v8264_v0 }
 0x121   : > { %v6507_v26 = vpop.f32.mrf.mxu1  ;;  %6710 = vmatmul.mubr.msk.bf16.vlgmr.msra.gmra.mxu1 %vm393_vm1, %v10886_v20  ;;  %v1376_v13 = vpop.f32.mrf.mxu0 }
 0x122   : > { %v1039_v32 = vadd.f32 %v6507_v26, %v6473_v45  ;;  %6713 = vmatprep.mubr.msk.bf16.mxu1 %vm393_vm1, %v10887_v56 }
 0x123   : > { %v1030_v35 = vpop.f32.mrf.mxu1  ;;  %v6545_v41 = vpop.f32.mrf.mxu0  ;;  %6748 = vmatmul.mubr.msk.bf16.gmra.mxu0 %vm393_vm1, %v7899_v63 }
 0x124   : > { %v1031_v12 = vadd.f32 %v1030_v35, %v818_v22  ;;  %v8270_v52 = vadd.f32 %v6541_v6, %v1039_v32  ;;  %6751 = vmatprep.mubr.msk.bf16.mxu0 %vm393_vm1, %v7903_v44 }
 0x125   : > { %v6508_v43 = vpop.f32.mrf.mxu1  ;;  %v1389_v45 = vpop.f32.mrf.mxu0 }
 0x126   : > { %v1042_v7 = vadd.f32 %v6508_v43, %v6474_v27  ;;  %v8276_v20 = vadd.f32 %v1373_v39, %v1031_v12 }
 0x127   : > { %v1033_v26 = vpop.f32.mrf.mxu1  ;;  %v6546_v22 = vpop.f32.mrf.mxu0 }
 0x128   : > { %v1034_v0 = vadd.f32 %v1033_v26, %v821_v5  ;;  %v8278_v56 = vadd.f32 %v6542_v31, %v1042_v7 }
 0x129   : > { %v6511_v54 = vpop.f32.mrf.mxu1  ;;  %6714 = vmatmul.mubr.msk.bf16.gmra.mxu1 %vm393_vm1, %v10888_v47  ;;  %v1392_v27 = vpop.f32.mrf.mxu0 }
 0x12a   : > { %v1055_v35 = vadd.f32 %v6511_v54, %v8188_v53  ;;  %6717 = vmatprep.mubr.msk.bf16.mxu1 %vm393_vm1, %v10889_v61  ;;  %v8285_v63 = vadd.f32 %v1376_v13, %v1034_v0 }
 0x12b   : > { %v1046_v44 = vpop.f32.mrf.mxu1  ;;  %v6549_v39 = vpop.f32.mrf.mxu0  ;;  %6752 = vmatmul.mubr.msk.bf16.gmra.mxu0 %vm393_vm1, %v7929_v38 }
 0x12c   : > { %v1047_v32 = vadd.f32 %v1046_v44, %v8196_v62  ;;  %v8288_v12 = vadd.f32 %v6545_v41, %v1055_v35  ;;  %6755 = vmatprep.mubr.msk.bf16.mxu0 %vm393_vm1, %v7933_v60 }
 0x12d   : > { %v6512_v5 = vpop.f32.mrf.mxu1  ;;  %v1405_v13 = vpop.f32.mrf.mxu0 }
 0x12e   : > { %v1058_v47 = vadd.f32 %v6512_v5, %v8202_v23  ;;  %v8295_v53 = vadd.f32 %v1389_v45, %v1047_v32 }
 0x12f   : > { %v1049_v61 = vpop.f32.mrf.mxu1  ;;  %v6550_v62 = vpop.f32.mrf.mxu0 }
 0x130   : > { %v1050_v54 = vadd.f32 %v1049_v61, %v8208_v9  ;;  %v8298_v0 = vadd.f32 %v6546_v22, %v1058_v47 }
 0x131   : > { %v6515_v41 = vpop.f32.mrf.mxu1  ;;  %6718 = vmatmul.mubr.msk.bf16.gmra.mxu1 %vm393_vm1, %v7773_v2  ;;  %v1408_v6 = vpop.f32.mrf.mxu0 }
 0x132   : > { %v1071_v38 = vadd.f32 %v6515_v41, %v8212_v11  ;;  %6721 = vmatprep.mubr.msk.bf16.mxu1 %vm393_vm1, %v10890_v4  ;;  %v8305_v23 = vadd.f32 %v1392_v27, %v1050_v54 }
 0x133   : > { %v1062_v60 = vpop.f32.mrf.mxu1  ;;  %v6553_v7 = vpop.f32.mrf.mxu0  ;;  %6756 = vmatmul.mubr.msk.bf16.gmra.mxu0 %vm393_vm1, %v7959_v18 }
 0x134   : > { %v1063_v31 = vadd.f32 %v1062_v60, %v8219_v21  ;;  %v8308_v43 = vadd.f32 %v6549_v39, %v1071_v38  ;;  %6759 = vmatprep.mubr.msk.bf16.mxu0 %vm393_vm1, %v7963_v37 }
 0x135   : > { %v6516_v9 = vpop.f32.mrf.mxu1  ;;  %v1421_v26 = vpop.f32.mrf.mxu0 }
 0x136   : > { %v1074_v2 = vadd.f32 %v6516_v9, %v8225_v55  ;;  %v8315_v11 = vadd.f32 %v1405_v13, %v1063_v31 }
 0x137   : > { %v1065_v4 = vpop.f32.mrf.mxu1  ;;  %v6554_v35 = vpop.f32.mrf.mxu0 }
 0x138   : > { %v1066_v45 = vadd.f32 %v1065_v4, %v8233_v50  ;;  %v8318_v22 = vadd.f32 %v6550_v62, %v1074_v2 }
 0x139   : > { %v6519_v21 = vpop.f32.mrf.mxu1  ;;  %6722 = vmatmul.mubr.msk.bf16.gmra.mxu1 %vm393_vm1, %v10891_v16  ;;  %v1424_v44 = vpop.f32.mrf.mxu0 }
 0x13a   : > { %v1087_v18 = vadd.f32 %v6519_v21, %v8237_v48  ;;  %6725 = vmatprep.mubr.msk.bf16.mxu1 %vm393_vm1, %v10892_v10  ;;  %v8325_v55 = vadd.f32 %v1408_v6, %v1066_v45  ;;  %v5970_v10 = vld [vmem:[%s10708_s4 + $0x4] sm:$0xf] }
 0x13b   : > { %v1078_v37 = vpop.f32.mrf.mxu1  ;;  %v6557_v5 = vpop.f32.mrf.mxu0  ;;  %6760 = vmatmul.mubr.msk.bf16.gmra.mxu0 %vm393_vm1, %v7985_v15  ;;  %7127 = vmatprep.subr.msk.bf16.mxu1 %vm3274_vm5, %v5970_v10  ;;  %v3276_v15 = vsel %vm3274_vm5, %v5970_v10, 0 }
 0x13c   : > { %v1079_v27 = vadd.f32 %v1078_v37, %v8244_v51  ;;  %v8328_v32 = vadd.f32 %v6553_v7, %v1087_v18  ;;  %6763 = vmatprep.mubr.msk.bf16.mxu0 %vm393_vm1, %v7989_v3  ;;  %v3047_v3 = vld [vmem:[%s10708_s4] sm:$0xf]  ;;  %6776 = vmatpush3.bf16.msra.mxu1 %v3276_v15 }
 0x13d   : > { %v6520_v50 = vpop.f32.mrf.mxu1  ;;  %v1437_v39 = vpop.f32.mrf.mxu0  ;;  %7128 = vmatprep.subr.msk.bf16.mxu0 %vm3274_vm5, %v3047_v3  ;;  %v3488_v41 = vsel %vm3274_vm5, %v3047_v3, 0 }
 0x13e   : > { %v1090_v16 = vadd.f32 %v6520_v50, %v8250_v17  ;;  %v8335_v48 = vadd.f32 %v1421_v26, %v1079_v27  ;;  %6810 = vmatpush3.bf16.msra.mxu0 %v3488_v41  ;;  %v2569_v26 = vrot.slane %v8114_v46, 2  ;;  %v10909_v50 = vld [vmem:[#allocation28_spill] sm:$0xff] }
 0x13f   : > { %v1081_v51 = vpop.f32.mrf.mxu1  ;;  %v6558_v13 = vpop.f32.mrf.mxu0 }
 0x140   : > { %v1082_v47 = vadd.f32 %v1081_v51, %v8256_v59  ;;  %v8342_v61 = vadd.f32 %v6554_v35, %v1090_v16  ;;  %v10911_v51 = vld [vmem:[#allocation29_spill] sm:$0xff] }
 0x141   : > { %v6523_v17 = vpop.f32.mrf.mxu1  ;;  %6726 = vmatmul.mubr.msk.bf16.gmra.mxu1 %vm393_vm1, %v10893_v36  ;;  %v8357_v38 = vpop.f32.mrf.mxu0 }
 0x142   : > { %v1103_v54 = vadd.f32 %v6523_v17, %v8178_v33  ;;  %6729 = vmatprep.mubr.msk.bf16.mxu1 %vm393_vm1, %v10894_v14  ;;  %v8354_v59 = vadd.f32 %v1424_v44, %v1082_v47  ;;  %v10912_v17 = vld [vmem:[#allocation40_spill] sm:$0xff] }
 0x143   : > { %v1094_v62 = vpop.f32.mrf.mxu1  ;;  %v6561_v31 = vpop.f32.mrf.mxu0  ;;  %6764 = vmatmul.mubr.msk.bf16.gmra.mxu0 %vm393_vm1, %v8007_v8  ;;  %v2570_v8 = vrot.slane %v8116_v57, 2 }
 0x144   : > { %v1095_v60 = vadd.f32 %v1094_v62, %v8184_v34  ;;  %v8360_v36 = vadd.f32 %v6557_v5, %v1103_v54  ;;  %6767 = vmatprep.mubr.msk.bf16.mxu0 %vm393_vm1, %v8011_v29  ;;  %v2572_v29 = vrot.slane %v8122_v24, 2 }
 0x145   : > { %v6524_v6 = vpop.f32.mrf.mxu1  ;;  %v1453_v7 = vpop.f32.mrf.mxu0 }
 0x146   : > { %v1106_v14 = vadd.f32 %v6524_v6, %v8186_v19  ;;  %v8367_v33 = vadd.f32 %v1437_v39, %v1095_v60  ;;  %v2573_v57 = vsel %vm1157_vm4, %v2570_v8, %v2572_v29  ;;  %v10913_v6 = vld [vmem:[#allocation48_spill] sm:$0xff] }
 0x147   : > { %v8369_v9 = vpop.f32.mrf.mxu1  ;;  %v6562_v4 = vpop.f32.mrf.mxu0 }
 0x148   : > { %v8371_v2 = vadd.f32 %v6558_v13, %v1106_v14 }
 0x149   : > { %v6527_v34 = vpop.f32.mrf.mxu1  ;;  %6730 = vmatmul.mubr.msk.bf16.gmra.mxu1 %vm393_vm1, %v10895_v42  ;;  %v8381_v21 = vpop.f32.mrf.mxu0 }
 0x14a   : > { %v1119_v19 = vadd.f32 %v6527_v34, %v8198_v28  ;;  %6733 = vmatprep.mubr.msk.bf16.mxu1 %vm393_vm1, %v7782_v1  ;;  %v2571_v1 = vsel %vm1157_vm4, %v2569_v26, %v2570_v8  ;;  %v10916_v34 = vld [vmem:[#allocation51_spill] sm:$0xff] }
 0x14b   : > { %v1110_v45 = vpop.f32.mrf.mxu1  ;;  %v6565_v37 = vpop.f32.mrf.mxu0  ;;  %6768 = vmatmul.mubr.msk.bf16.gmra.mxu0 %vm393_vm1, %v8028_v30 }
 0x14c   : > { %v1111_v35 = vadd.f32 %v1110_v45, %v8206_v49  ;;  %v8384_v18 = vadd.f32 %v6561_v31, %v1119_v19  ;;  %6771 = vmatprep.mubr.msk.bf16.mxu0 %vm393_vm1, %v8038_v25  ;;  %v10910_v25 = vld [vmem:[#allocation46_spill] sm:$0xff]  ;;  %v10914_v31 = vld [vmem:[#allocation47_spill] sm:$0xff] }
 0x14d   : > { %v6528_v42 = vpop.f32.mrf.mxu1  ;;  %v1469_v49 = vpop.f32.mrf.mxu0  ;;  %v10915_v14 = vpack.c.bf16 %v10913_v6, %v10914_v31  ;;  %v10917_v19 = vld [vmem:[#allocation26_spill] sm:$0xff] }
 0x14e   : > { %v1122_v46 = vadd.f32 %v6528_v42, %v8210_v40  ;;  %v8393_v24 = vadd.f32 %v1453_v7, %v1111_v35  ;;  %v2576_v40 = vpack.c.bf16 %v2573_v57, %v2571_v1 }
 0x14f   : > { %v8395_v28 = vpop.f32.mrf.mxu1  ;;  %v6566_v30 = vpop.f32.mrf.mxu0 }
 0x150   : > { %v8397_v44 = vadd.f32 %v6562_v4, %v1122_v46 }
 0x151   : > { %v6531_v27 = vpop.f32.mrf.mxu1  ;;  %6734 = vmatmul.mubr.msk.bf16.gmra.mxu1 %vm393_vm1, %v7787_v58  ;;  %v8404_v10 = vpop.f32.mrf.mxu0 }
 0x152   : > { %v1135_v5 = vadd.f32 %v6531_v27, %v10909_v50  ;;  %6737 = vmatprep.mubr.msk.bf16.mxu1 %vm393_vm1, %v10910_v25 }
 0x153   : > { %v1126_v16 = vpop.f32.mrf.mxu1  ;;  %v6569_v3 = vpop.f32.mrf.mxu0  ;;  %6772 = vmatmul.mubr.msk.bf16.gmra.mxu0 %vm393_vm1, %v2576_v40 }
 0x154   : > { %v1127_v39 = vadd.f32 %v1126_v16, %v10911_v51  ;;  %v8407_v47 = vadd.f32 %v6565_v37, %v1135_v5  ;;  %v10918_v37 = vld [vmem:[#allocation27_spill] sm:$0xff] }
 0x155   : > { %v6532_v15 = vpop.f32.mrf.mxu1  ;;  %v1485_v41 = vpop.f32.mrf.mxu0 }
 0x156   : > { %v1138_v58 = vadd.f32 %v6532_v15, %v10912_v17  ;;  %v8411_v13 = vadd.f32 %v1469_v49, %v1127_v39 }
 0x157   : > { %v8413_v54 = vpop.f32.mrf.mxu1  ;;  %v6570_v7 = vpop.f32.mrf.mxu0 }
 0x158   : > { %v8415_v62 = vadd.f32 %v6566_v30, %v1138_v58 }
 0x159   : > { %v6535_v60 = vpop.f32.mrf.mxu1  ;;  %6738 = vmatmul.mubr.msk.bf16.gmra.mxu1 %vm393_vm1, %v10915_v14  ;;  %v8422_v8 = vpop.f32.mrf.mxu0 }
 0x15a   : > { %v1151_v4 = vadd.f32 %v6535_v60, %v10916_v34 }
 0x15b   : > { %v1142_v26 = vpop.f32.mrf.mxu1  ;;  %v6609_v42 = vpop.f32.mrf.mxu0 }
 0x15c   : > { %v1143_v29 = vadd.f32 %v1142_v26, %v10917_v19  ;;  %v8425_v45 = vadd.f32 %v6569_v3, %v1151_v4 }
 0x15d   : > { %v6536_v35 = vpop.f32.mrf.mxu1  ;;  %v1787_v49 = vpop.f32.mrf.mxu0 }
 0x15e   : > { %v1154_v46 = vadd.f32 %v6536_v35, %v10918_v37  ;;  %v8428_v1 = vadd.f32 %v1485_v41, %v1143_v29 }
 0x15f   : > { %v8430_v57 = vpop.f32.mrf.mxu1  ;;  %v6610_v40 = vpop.f32.mrf.mxu0 }
 0x160   : > { %v8432_v27 = vadd.f32 %v6570_v7, %v1154_v46  ;;  %v10919_v7 = vmov 0.0  }
 0x161   : > { %v6575_v30 = vpop.f32.mrf.mxu1  ;;  %v8435_v25 = vpop.f32.mrf.mxu0  ;;  %2896 = vst.msk [vmem:[#allocation3 + $0x30] sm:$0xff] %vm2888_vm6, %v10919_v7  ;;  %2897 = vst.msk [vmem:[#allocation3 + $0x38] sm:$0xff] %vm2888_vm6, %v10919_v7 }
 0x162   : > { %v1704_v50 = vadd.f32 %v6575_v30, %v8270_v52  ;;  %2889 = vst.msk [vmem:[#allocation3] sm:$0xff] %vm2888_vm6, %v10919_v7  ;;  %2890 = vst.msk [vmem:[#allocation3 + $0x8] sm:$0xff] %vm2888_vm6, %v10919_v7 }
 0x163   : > { %v1575_v5 = vpop.f32.mrf.mxu1  ;;  %v6613_v15 = vpop.f32.mrf.mxu0  ;;  %2893 = vst.msk [vmem:[#allocation3 + $0x18] sm:$0xff] %vm2888_vm6, %v10919_v7  ;;  %2894 = vst.msk [vmem:[#allocation3 + $0x20] sm:$0xff] %vm2888_vm6, %v10919_v7 }
 0x164   : > { %v1702_v16 = vadd.f32 %v1575_v5, %v8276_v20  ;;  %v8438_v51 = vadd.f32 %v6609_v42, %v1704_v50  ;;  %2899 = vst.msk [vmem:[#allocation3 + $0x48] sm:$0xff] %vm2888_vm6, %v10919_v7  ;;  %2900 = vst.msk [vmem:[#allocation3 + $0x50] sm:$0xff] %vm2888_vm6, %v10919_v7 }
 0x165   : > { %v6576_v39 = vpop.f32.mrf.mxu1  ;;  %v1803_v41 = vpop.f32.mrf.mxu0  ;;  %2902 = vst.msk [vmem:[#allocation3 + $0x60] sm:$0xff] %vm2888_vm6, %v10919_v7  ;;  %2903 = vst.msk [vmem:[#allocation3 + $0x68] sm:$0xff] %vm2888_vm6, %v10919_v7 }
 0x166   : > { %v1705_v3 = vadd.f32 %v6576_v39, %v8278_v56  ;;  %v8441_v17 = vadd.f32 %v1787_v49, %v1702_v16  ;;  %2905 = vst.msk [vmem:[#allocation3 + $0x78] sm:$0xff] %vm2888_vm6, %v10919_v7  ;;  %2906 = vst.msk [vmem:[#allocation3 + $0x80] sm:$0xff] %vm2888_vm6, %v10919_v7 }
 0x167   : > { %v8443_v58 = vpop.f32.mrf.mxu1  ;;  %v8447_v52 = vpop.f32.mrf.mxu0  ;;  %2908 = vst.msk [vmem:[#allocation3 + $0x90] sm:$0xff] %vm2888_vm6, %v10919_v7  ;;  %2909 = vst.msk [vmem:[#allocation3 + $0x98] sm:$0xff] %vm2888_vm6, %v10919_v7 }
 0x168   : > { %v8445_v60 = vadd.f32 %v6610_v40, %v1705_v3  ;;  %2911 = vst.msk [vmem:[#allocation3 + $0xa8] sm:$0xff] %vm2888_vm6, %v10919_v7  ;;  %2912 = vst.msk [vmem:[#allocation3 + $0xb0] sm:$0xff] %vm2888_vm6, %v10919_v7 }
 0x169   : > { %v6579_v6 = vpop.f32.mrf.mxu1  ;;  %v8450_v14 = vpop.f32.mrf.mxu0  ;;  %2914 = vst.msk [vmem:[#allocation3 + $0xc0] sm:$0xff] %vm2888_vm6, %v10919_v7  ;;  %2915 = vst.msk [vmem:[#allocation3 + $0xc8] sm:$0xff] %vm2888_vm6, %v10919_v7 }
 0x16a   : > { %v1708_v31 = vadd.f32 %v6579_v6, %v8288_v12  ;;  %2917 = vst.msk [vmem:[#allocation3 + $0xd8] sm:$0xff] %vm2888_vm6, %v10919_v7  ;;  %2918 = vst.msk [vmem:[#allocation3 + $0xe0] sm:$0xff] %vm2888_vm6, %v10919_v7 }
 0x16b   : > { %v1591_v20 = vpop.f32.mrf.mxu1  ;;  %2920 = vst.msk [vmem:[#allocation3 + $0xf0] sm:$0xff] %vm2888_vm6, %v10919_v7  ;;  %2921 = vst.msk [vmem:[#allocation3 + $0xf8] sm:$0xff] %vm2888_vm6, %v10919_v7  ;;  %v6617_v4 = vpop.f32.mrf.mxu0 }
 0x16c   : > { %2923 = vst.msk [vmem:[#allocation3 + $0x108] sm:$0xff] %vm2888_vm6, %v10919_v7  ;;  %2924 = vst.msk [vmem:[#allocation3 + $0x110] sm:$0xff] %vm2888_vm6, %v10919_v7  ;;  %v1706_v56 = vadd.f32 %v1591_v20, %v8295_v53  ;;  %v8525_v12 = vadd.f32 %v6613_v15, %v1708_v31  ;;  %v8586_v31 = vld [vmem:[#allocation3 + $0x8] sm:$0xff] }
 0x16d   : > { %2926 = vst.msk [vmem:[#allocation3 + $0x120] sm:$0xff] %vm2888_vm6, %v10919_v7  ;;  %2927 = vst.msk [vmem:[#allocation3 + $0x128] sm:$0xff] %vm2888_vm6, %v10919_v7  ;;  %v6580_v34 = vpop.f32.mrf.mxu1  ;;  %v1819_v35 = vpop.f32.mrf.mxu0 }
 0x16e   : > { %2929 = vst.msk [vmem:[#allocation3 + $0x138] sm:$0xff] %vm2888_vm6, %v10919_v7  ;;  %2930 = vst.msk [vmem:[#allocation3 + $0x140] sm:$0xff] %vm2888_vm6, %v10919_v7  ;;  %v1709_v26 = vadd.f32 %v6580_v34, %v8298_v0  ;;  %v8528_v19 = vadd.f32 %v1803_v41, %v1706_v56 }
 0x16f   : > { %2932 = vst.msk [vmem:[#allocation3 + $0x150] sm:$0xff] %vm2888_vm6, %v10919_v7  ;;  %2933 = vst.msk [vmem:[#allocation3 + $0x158] sm:$0xff] %vm2888_vm6, %v10919_v7  ;;  %v8530_v29 = vpop.f32.mrf.mxu1  ;;  %v6618_v42 = vpop.f32.mrf.mxu0 }
 0x170   : > { %2935 = vst.msk [vmem:[#allocation3 + $0x168] sm:$0xff] %vm2888_vm6, %v10919_v7  ;;  %2936 = vst.msk [vmem:[#allocation3 + $0x170] sm:$0xff] %vm2888_vm6, %v10919_v7  ;;  %v8569_v53 = vadd.f32 %v8447_v52, %v1709_v26  ;;  %v8584_v52 = vld [vmem:[#allocation3] sm:$0xff] }
 0x171   : > { %2938 = vst.msk [vmem:[#allocation3 + $0x180] sm:$0xff] %vm2888_vm6, %v10919_v7  ;;  %2939 = vst.msk [vmem:[#allocation3 + $0x188] sm:$0xff] %vm2888_vm6, %v10919_v7  ;;  %v6583_v0 = vpop.f32.mrf.mxu1  ;;  %v8572_v49 = vpop.f32.mrf.mxu0 }
 0x172   : > { %2941 = vst.msk [vmem:[#allocation3 + $0x198] sm:$0xff] %vm2888_vm6, %v10919_v7  ;;  %2942 = vst.msk [vmem:[#allocation3 + $0x1a0] sm:$0xff] %vm2888_vm6, %v10919_v7  ;;  %v1712_v37 = vadd.f32 %v6583_v0, %v8308_v43 }
 0x173   : > { %2898 = vst.msk [vmem:[#allocation3 + $0x40] sm:$0x3] %vm2891_vm7, %v10919_v7  ;;  %2892 = vst.msk [vmem:[#allocation3 + $0x10] sm:$0x3] %vm2891_vm7, %v10919_v7  ;;  %v1607_v46 = vpop.f32.mrf.mxu1  ;;  %v6621_v5 = vpop.f32.mrf.mxu0 }
 0x174   : > { %2895 = vst.msk [vmem:[#allocation3 + $0x28] sm:$0x3] %vm2891_vm7, %v10919_v7  ;;  %2901 = vst.msk [vmem:[#allocation3 + $0x58] sm:$0x3] %vm2891_vm7, %v10919_v7  ;;  %v1710_v30 = vadd.f32 %v1607_v46, %v8315_v11  ;;  %v8575_v40 = vadd.f32 %v6617_v4, %v1712_v37  ;;  %v3097_v4 = vrot.slane %v8586_v31, 1 }
 0x175   : > { %2904 = vst.msk [vmem:[#allocation3 + $0x70] sm:$0x3] %vm2891_vm7, %v10919_v7  ;;  %2907 = vst.msk [vmem:[#allocation3 + $0x88] sm:$0x3] %vm2891_vm7, %v10919_v7  ;;  %v6584_v50 = vpop.f32.mrf.mxu1  ;;  %v1835_v3 = vpop.f32.mrf.mxu0 }
 0x176   : > { %2910 = vst.msk [vmem:[#allocation3 + $0xa0] sm:$0x3] %vm2891_vm7, %v10919_v7  ;;  %2913 = vst.msk [vmem:[#allocation3 + $0xb8] sm:$0x3] %vm2891_vm7, %v10919_v7  ;;  %v1713_v16 = vadd.f32 %v6584_v50, %v8318_v22  ;;  %v8578_v39 = vadd.f32 %v1819_v35, %v1710_v30  ;;  %v3031_v22 = vpack.c.bf16 %v8586_v31, %v8584_v52 }
 0x177   : > { %2916 = vst.msk [vmem:[#allocation3 + $0xd0] sm:$0x3] %vm2891_vm7, %v10919_v7  ;;  %2919 = vst.msk [vmem:[#allocation3 + $0xe8] sm:$0x3] %vm2891_vm7, %v10919_v7  ;;  %v8580_v15 = vpop.f32.mrf.mxu1  ;;  %v6622_v43 = vpop.f32.mrf.mxu0 }
 0x178   : > { %2922 = vst.msk [vmem:[#allocation3 + $0x100] sm:$0x3] %vm2891_vm7, %v10919_v7  ;;  %2925 = vst.msk [vmem:[#allocation3 + $0x118] sm:$0x3] %vm2891_vm7, %v10919_v7  ;;  %v8582_v41 = vadd.f32 %v6618_v42, %v1713_v16  ;;  %6811 = vmatprep.mubr.msk.bf16.mxu0 %vm2888_vm6, %v3031_v22 }
 0x179   : > { %2928 = vst.msk [vmem:[#allocation3 + $0x130] sm:$0x3] %vm2891_vm7, %v10919_v7  ;;  %2931 = vst.msk [vmem:[#allocation3 + $0x148] sm:$0x3] %vm2891_vm7, %v10919_v7  ;;  %v6587_v6 = vpop.f32.mrf.mxu1  ;;  %v8594_v34 = vpop.f32.mrf.mxu0 }
 0x17a   : > { %2934 = vst.msk [vmem:[#allocation3 + $0x160] sm:$0x3] %vm2891_vm7, %v10919_v7  ;;  %2937 = vst.msk [vmem:[#allocation3 + $0x178] sm:$0x3] %vm2891_vm7, %v10919_v7  ;;  %v8588_v11 = vld [vmem:[#allocation3 + $0x10] sm:$0x3]  ;;  %v1716_v20 = vadd.f32 %v6587_v6, %v8328_v32 }
 0x17b   : > { %2940 = vst.msk [vmem:[#allocation3 + $0x190] sm:$0x3] %vm2891_vm7, %v10919_v7  ;;  %2943 = vst.msk [vmem:[#allocation3 + $0x1a8] sm:$0x3] %vm2891_vm7, %v10919_v7  ;;  %v3096_v7 = vrot.slane %v8584_v52, 1  ;;  %v1623_v56 = vpop.f32.mrf.mxu1  ;;  %v3099_v26 = vrot.slane %v8588_v11, 1  ;;  %v6625_v32 = vpop.f32.mrf.mxu0 }
 0x17c   : > { %10920 = vst [vmem:[#allocation36_spill] sm:$0xff] %v8578_v39  ;;  %10921 = vst [vmem:[#allocation43_spill] sm:$0xff] %v8582_v41  ;;  %v1714_v35 = vadd.f32 %v1623_v56, %v8335_v48  ;;  %v8599_v0 = vadd.f32 %v6621_v5, %v1716_v20 }
 0x17d   : > { %v6588_v42 = vpop.f32.mrf.mxu1  ;;  %v3098_v37 = vsel %vm601_vm3, %v3096_v7, %v3097_v4  ;;  %v3100_v46 = vsel %vm601_vm3, %v3097_v4, %v3099_v26  ;;  %v1851_v41 = vpop.f32.mrf.mxu0 }
 0x17e   : > { %10922 = vst [vmem:[#allocation50_spill] sm:$0xff] %v8599_v0  ;;  %v1717_v30 = vadd.f32 %v6588_v42, %v8342_v61  ;;  %v8605_v50 = vadd.f32 %v1835_v3, %v1714_v35  ;;  %v3208_v16 = vpack.c.bf16 %v3100_v46, %v3098_v37 }
 0x17f   : > { %v8607_v6 = vpop.f32.mrf.mxu1  ;;  %v6626_v5 = vpop.f32.mrf.mxu0 }
 0x180   : > { %10923 = vst [vmem:[#allocation28_spill] sm:$0xff] %v8605_v50  ;;  %v8609_v39 = vadd.f32 %v6622_v43, %v1717_v30  ;;  %6777 = vmatprep.mubr.msk.bf16.mxu1 %vm2888_vm6, %v3208_v16  ;;  %v8628_v30 = vld [vmem:[%s10708_s4 + $0x8] sm:$0xf] }
 0x181   : > { %v6591_v48 = vpop.f32.mrf.mxu1  ;;  %v8613_v7 = vpop.f32.mrf.mxu0  ;;  %7129 = vmatprep.subr.msk.bf16.mxu1 %vm3274_vm5, %v8628_v30 }
 0x182   : > { %10924 = vst [vmem:[#allocation46_spill] sm:$0xff] %v8609_v39  ;;  %v1720_v20 = vadd.f32 %v6591_v48, %v8360_v36 }
 0x183   : > { %v1639_v22 = vpop.f32.mrf.mxu1  ;;  %v6629_v4 = vpop.f32.mrf.mxu0 }
 0x184   : > { %v1718_v56 = vadd.f32 %v1639_v22, %v8367_v33  ;;  %v8616_v61 = vadd.f32 %v6625_v32, %v1720_v20 }
 0x185   : > { %v6592_v3 = vpop.f32.mrf.mxu1  ;;  %v1867_v42 = vpop.f32.mrf.mxu0 }
 0x186   : > { %10925 = vst [vmem:[#allocation29_spill] sm:$0xff] %v8616_v61  ;;  %v1721_v26 = vadd.f32 %v6592_v3, %v8371_v2  ;;  %v8619_v35 = vadd.f32 %v1851_v41, %v1718_v56  ;;  %v8636_v2 = vld [vmem:[%s10708_s4 + $0xc] sm:$0xf] }
 0x187   : > { %v8621_v43 = vpop.f32.mrf.mxu1  ;;  %v6630_v36 = vpop.f32.mrf.mxu0  ;;  %7130 = vmatprep.subr.msk.bf16.mxu0 %vm3274_vm5, %v8636_v2 }
 0x188   : > { %10926 = vst [vmem:[#allocation40_spill] sm:$0xff] %v8619_v35  ;;  %v8623_v37 = vadd.f32 %v6626_v5, %v1721_v26 }
 0x189   : > { %v6595_v46 = vpop.f32.mrf.mxu1  ;;  %v8638_v32 = vpop.f32.mrf.mxu0 }
 0x18a   : > { %10927 = vst [vmem:[#allocation48_spill] sm:$0xff] %v8623_v37  ;;  %v1724_v33 = vadd.f32 %v6595_v46, %v8384_v18 }
 0x18b   : > { %v1655_v41 = vpop.f32.mrf.mxu1  ;;  %v6633_v18 = vpop.f32.mrf.mxu0 }
 0x18c   : > { %v1722_v16 = vadd.f32 %v1655_v41, %v8393_v24  ;;  %v8643_v48 = vadd.f32 %v6629_v4, %v1724_v33 }
 0x18d   : > { %v6596_v5 = vpop.f32.mrf.mxu1  ;;  %v1883_v3 = vpop.f32.mrf.mxu0 }
 0x18e   : > { %10928 = vst [vmem:[#allocation47_spill] sm:$0xff] %v8643_v48  ;;  %v1725_v20 = vadd.f32 %v6596_v5, %v8397_v44  ;;  %v8646_v22 = vadd.f32 %v1867_v42, %v1722_v16 }
 0x18f   : > { %v8648_v56 = vpop.f32.mrf.mxu1  ;;  %v6634_v37 = vpop.f32.mrf.mxu0 }
 0x190   : > { %10929 = vst [vmem:[#allocation51_spill] sm:$0xff] %v8646_v22  ;;  %v8650_v26 = vadd.f32 %v6630_v36, %v1725_v20 }
 0x191   : > { %v6599_v46 = vpop.f32.mrf.mxu1  ;;  %v8653_v39 = vpop.f32.mrf.mxu0 }
 0x192   : > { %10930 = vst [vmem:[#allocation26_spill] sm:$0xff] %v8650_v26  ;;  %v1728_v35 = vadd.f32 %v6599_v46, %v8407_v47 }
 0x193   : > { %v1671_v61 = vpop.f32.mrf.mxu1  ;;  %v6637_v44 = vpop.f32.mrf.mxu0 }
 0x194   : > { %v1726_v24 = vadd.f32 %v1671_v61, %v8411_v13  ;;  %v8656_v4 = vadd.f32 %v6633_v18, %v1728_v35 }
 0x195   : > { %v6600_v33 = vpop.f32.mrf.mxu1  ;;  %v1899_v36 = vpop.f32.mrf.mxu0 }
 0x196   : > { %10931 = vst [vmem:[#allocation27_spill] sm:$0xff] %v8656_v4  ;;  %v1729_v42 = vadd.f32 %v6600_v33, %v8415_v62  ;;  %v8659_v41 = vadd.f32 %v1883_v3, %v1726_v24 }
 0x197   : > { %v8661_v16 = vpop.f32.mrf.mxu1  ;;  %v6638_v47 = vpop.f32.mrf.mxu0 }
 0x198   : > { %10932 = vst [vmem:[#allocation52_spill] sm:$0xff] %v8659_v41  ;;  %v8663_v5 = vadd.f32 %v6634_v37, %v1729_v42 }
 0x199   : > { %v6603_v20 = vpop.f32.mrf.mxu1  ;;  %v8666_v22 = vpop.f32.mrf.mxu0 }
 0x19a   : > { %10933 = vst [vmem:[#allocation53_spill] sm:$0xff] %v8663_v5  ;;  %v1732_v46 = vadd.f32 %v6603_v20, %v8425_v45 }
 0x19b   : > { %v1687_v26 = vpop.f32.mrf.mxu1  ;;  %v8671_v62 = vpop.f32.mrf.mxu0 }
 0x19c   : > { %v1730_v13 = vadd.f32 %v1687_v26, %v8428_v1  ;;  %v8669_v61 = vadd.f32 %v6637_v44, %v1732_v46 }
 0x19d   : > { %v6604_v35 = vpop.f32.mrf.mxu1  ;;  %v8678_v24 = vpop.f32.mrf.mxu0 }
 0x19e   : > { %v1733_v18 = vadd.f32 %v6604_v35, %v8432_v27  ;;  %v8674_v3 = vadd.f32 %v1899_v36, %v1730_v13  ;;  %10935 = vst [vmem:[#allocation55_spill] sm:$0xff] %v8678_v24 }
 0x19f   : > { %v8676_v37 = vpop.f32.mrf.mxu1  ;;  %v8684_v42 = vpop.f32.mrf.mxu0 }
 0x1a0   : > { %10934 = vst [vmem:[#allocation54_spill] sm:$0xff] %v8674_v3  ;;  %v8680_v33 = vadd.f32 %v6638_v47, %v1733_v18  ;;  %10936 = vst [vmem:[#allocation56_spill] sm:$0xff] %v8684_v42 }
 0x1a1   : > { %v8682_v45 = vpop.f32.mrf.mxu1  ;;  %v8688_v26 = vpop.f32.mrf.mxu0 }
 0x1a2   : > { %10937 = vst [vmem:[#allocation57_spill] sm:$0xff] %v8688_v26 }
 0x1a3   : > { %v8686_v1 = vpop.f32.mrf.mxu1  ;;  %v8692_v20 = vpop.f32.mrf.mxu0 }
 0x1a4   : > { %10938 = vst [vmem:[#allocation58_spill] sm:$0xff] %v8692_v20 }
 0x1a5   : > { %v8690_v44 = vpop.f32.mrf.mxu1  ;;  %v8696_v36 = vpop.f32.mrf.mxu0 }
 0x1a6   : > { %10939 = vst [vmem:[#allocation59_spill] sm:$0xff] %v8696_v36 }
 0x1a7   : > { %v8694_v27 = vpop.f32.mrf.mxu1  ;;  %v8700_v47 = vpop.f32.mrf.mxu0 }
 0x1a8   : > { %10940 = vst [vmem:[#allocation60_spill] sm:$0xff] %v8700_v47 }
 0x1a9   : > { %v8698_v46 = vpop.f32.mrf.mxu1  ;;  %v8704_v35 = vpop.f32.mrf.mxu0 }
 0x1aa   : > { %10941 = vst [vmem:[#allocation61_spill] sm:$0xff] %v8704_v35 }
 0x1ab   : > { %v8702_v13 = vpop.f32.mrf.mxu1  ;;  %v8708_v3 = vpop.f32.mrf.mxu0 }
 0x1ac   : > { %10942 = vst [vmem:[#allocation62_spill] sm:$0xff] %v8708_v3 }
 0x1ad   : > { %v8706_v18 = vpop.f32.mrf.mxu1  ;;  %v8712_v41 = vpop.f32.mrf.mxu0 }
 0x1ae   : > { %10943 = vst [vmem:[#allocation63_spill] sm:$0xff] %v8712_v41 }
 0x1af   : > { %v8710_v5 = vpop.f32.mrf.mxu1  ;;  %v8716_v48 = vpop.f32.mrf.mxu0 }
 0x1b0   : > { %10944 = vst [vmem:[#allocation64_spill] sm:$0xff] %v8716_v48 }
 0x1b1   : > { %v8714_v4 = vpop.f32.mrf.mxu1  ;;  %v8720_v20 = vpop.f32.mrf.mxu0 }
 0x1b2   : > { %10945 = vst [vmem:[#allocation65_spill] sm:$0xff] %v8720_v20 }
 0x1b3   : > { %v8718_v36 = vpop.f32.mrf.mxu1  ;;  %v8724_v50 = vpop.f32.mrf.mxu0 }
 0x1b4   : > { %10947 = vst [vmem:[#allocation67_spill] sm:$0xff] %v8724_v50  ;;  %v3651_v50 = vrot.slane %v8584_v52, 2 }
 0x1b5   : > { %v8722_v47 = vpop.f32.mrf.mxu1  ;;  %v8728_v0 = vpop.f32.mrf.mxu0 }
 0x1b6   : > { %10946 = vst [vmem:[#allocation66_spill] sm:$0xff] %v8722_v47  ;;  %10949 = vst [vmem:[#allocation69_spill] sm:$0xff] %v8728_v0  ;;  %v3652_v0 = vrot.slane %v8586_v31, 2  ;;  %v10975_v31 = vld [vmem:[#allocation49_spill] sm:$0xff] }
 0x1b7   : > { %v8726_v35 = vpop.f32.mrf.mxu1  ;;  %v8732_v26 = vpop.f32.mrf.mxu0 }
 0x1b8   : > { %10948 = vst [vmem:[#allocation68_spill] sm:$0xff] %v8726_v35  ;;  %10951 = vst [vmem:[#allocation71_spill] sm:$0xff] %v8732_v26 }
 0x1b9   : > { %v8730_v3 = vpop.f32.mrf.mxu1  ;;  %v8736_v42 = vpop.f32.mrf.mxu0 }
 0x1ba   : > { %10950 = vst [vmem:[#allocation70_spill] sm:$0xff] %v8730_v3  ;;  %10953 = vst [vmem:[#allocation73_spill] sm:$0xff] %v8736_v42  ;;  %v8757_v42 = vsel %vm1157_vm4, %v3651_v50, %v3652_v0 }
 0x1bb   : > { %v8734_v41 = vpop.f32.mrf.mxu1  ;;  %v8740_v24 = vpop.f32.mrf.mxu0  ;;  %10961 = vst [vmem:[#allocation81_spill] sm:$0xff] %v8757_v42  ;;  %v1098_v42 = vadd.f32 %v8369_v9, %v10975_v31  ;;  %v1703_v9 = vadd.f32 %v8443_v58, %v8285_v63  ;;  %v1707_v31 = vadd.f32 %v8530_v29, %v8305_v23 }
 0x1bc   : > { %10952 = vst [vmem:[#allocation72_spill] sm:$0xff] %v8734_v41  ;;  %10954 = vst [vmem:[#allocation74_spill] sm:$0xff] %v8740_v24  ;;  %v3654_v24 = vrot.slane %v8588_v11, 2 }
 0x1bd   : > { %v8738_v48 = vpop.f32.mrf.mxu1  ;;  %v8744_v47 = vpop.f32.mrf.mxu0 }
 0x1be   : > { %10956 = vst [vmem:[#allocation76_spill] sm:$0xff] %v8744_v47  ;;  %v8765_v52 = vsel %vm1157_vm4, %v3652_v0, %v3654_v24 }
 0x1bf   : > { %v8742_v20 = vpop.f32.mrf.mxu1  ;;  %v8750_v3 = vpop.f32.mrf.mxu0  ;;  %10964 = vst [vmem:[#allocation84_spill] sm:$0xff] %v8765_v52 }
 0x1c0   : > { %10955 = vst [vmem:[#allocation75_spill] sm:$0xff] %v8742_v20  ;;  %10958 = vst [vmem:[#allocation78_spill] sm:$0xff] %v8750_v3 }
 0x1c1   : > { %v8748_v35 = vpop.f32.mrf.mxu1  ;;  %v8754_v41 = vpop.f32.mrf.mxu0 }
 0x1c2   : > { %10957 = vst [vmem:[#allocation77_spill] sm:$0xff] %v8748_v35  ;;  %10960 = vst [vmem:[#allocation80_spill] sm:$0xff] %v8754_v41 }
 0x1c3   : > { %v8752_v26 = vpop.f32.mrf.mxu1  ;;  %v8762_v47 = vpop.f32.mrf.mxu0 }
 0x1c4   : > { %10959 = vst [vmem:[#allocation79_spill] sm:$0xff] %v8752_v26  ;;  %10963 = vst [vmem:[#allocation83_spill] sm:$0xff] %v8762_v47 }
 0x1c5   : > { %v8760_v20 = vpop.f32.mrf.mxu1  ;;  %v8771_v26 = vpop.f32.mrf.mxu0 }
 0x1c6   : > { %10962 = vst [vmem:[#allocation82_spill] sm:$0xff] %v8760_v20  ;;  %10966 = vst [vmem:[#allocation86_spill] sm:$0xff] %v8771_v26 }
 0x1c7   : > { %v8769_v3 = vpop.f32.mrf.mxu1  ;;  %v8775_v50 = vpop.f32.mrf.mxu0 }
 0x1c8   : > { %10965 = vst [vmem:[#allocation85_spill] sm:$0xff] %v8769_v3  ;;  %10968 = vst [vmem:[#allocation88_spill] sm:$0xff] %v8775_v50  ;;  %v10977_v50 = vld [vmem:[#allocation25_spill] sm:$0xff] }
 0x1c9   : > { %v8773_v41 = vpop.f32.mrf.mxu1  ;;  %v8779_v11 = vpop.f32.mrf.mxu0 }
 0x1ca   : > { %10967 = vst [vmem:[#allocation87_spill] sm:$0xff] %v8773_v41  ;;  %10970 = vst [vmem:[#allocation90_spill] sm:$0xff] %v8779_v11  ;;  %v10978_v41 = vld [vmem:[#allocation42_spill] sm:$0xff] }
 0x1cb   : > { %v8777_v35 = vpop.f32.mrf.mxu1  ;;  %v8783_v47 = vpop.f32.mrf.mxu0  ;;  %v1130_v11 = vadd.f32 %v8413_v54, %v10978_v41  ;;  %v1711_v54 = vadd.f32 %v8580_v15, %v8325_v55 }
 0x1cc   : > { %10969 = vst [vmem:[#allocation89_spill] sm:$0xff] %v8777_v35  ;;  %10972 = vst [vmem:[#allocation92_spill] sm:$0xff] %v8783_v47  ;;  %v1114_v35 = vadd.f32 %v8395_v28, %v10977_v50  ;;  %v10982_v50 = vld [vmem:[#allocation56_spill] sm:$0xff] }
 0x1cd   : > { %v8781_v20 = vpop.f32.mrf.mxu1  ;;  %v8787_v24 = vpop.f32.mrf.mxu0  ;;  %v1525_v63 = vadd.f32 %v8404_v10, %v1130_v11  ;;  %v2125_v10 = vadd.f32 %v8682_v45, %v8438_v51  ;;  %v8845_v51 = vsel %vm3274_vm5, %v8628_v30, 0 }
 0x1ce   : > { %10971 = vst [vmem:[#allocation91_spill] sm:$0xff] %v8781_v20  ;;  %10974 = vst [vmem:[#allocation94_spill] sm:$0xff] %v8787_v24  ;;  %v10979_v20 = vld [vmem:[#allocation32_spill] sm:$0xff]  ;;  %v1521_v41 = vadd.f32 %v8381_v21, %v1114_v35  ;;  %v1919_v21 = vadd.f32 %v8450_v14, %v1707_v31  ;;  %v10986_v31 = vld [vmem:[#allocation57_spill] sm:$0xff] }
 0x1cf   : > { %v8785_v0 = vpop.f32.mrf.mxu1  ;;  %v8793_v26 = vpop.f32.mrf.mxu0  ;;  %v1146_v47 = vadd.f32 %v8430_v57, %v10979_v20  ;;  %v1715_v57 = vadd.f32 %v8607_v6, %v8354_v59  ;;  %v1915_v59 = vadd.f32 %v8435_v25, %v1703_v9  ;;  %v10985_v9 = vld [vmem:[#allocation68_spill] sm:$0xff] }
 0x1d0   : > { %10973 = vst [vmem:[#allocation93_spill] sm:$0xff] %v8785_v0  ;;  %10976 = vst [vmem:[#allocation49_spill] sm:$0xff] %v8793_v26  ;;  %v1517_v26 = vadd.f32 %v8357_v38, %v1098_v42  ;;  %v1723_v29 = vadd.f32 %v8648_v56, %v1521_v41  ;;  %v1727_v42 = vadd.f32 %v8661_v16, %v1525_v63 }
 0x1d1   : > { %v8791_v52 = vpop.f32.mrf.mxu1  ;;  %v8803_v0 = vpop.f32.mrf.mxu0  ;;  %v1529_v58 = vadd.f32 %v8422_v8, %v1146_v47  ;;  %v1923_v8 = vadd.f32 %v8572_v49, %v1711_v54  ;;  %v2123_v56 = vadd.f32 %v8686_v1, %v8441_v17  ;;  %v2126_v16 = vadd.f32 %v8690_v44, %v8445_v60 }
 0x1d2   : > { %v1719_v20 = vadd.f32 %v8621_v43, %v1517_v26  ;;  %v1927_v43 = vadd.f32 %v8594_v34, %v1715_v57  ;;  %v2124_v49 = vadd.f32 %v8694_v27, %v1915_v59  ;;  %v8849_v34 = vadd.f32 %v8638_v32, %v1723_v29  ;;  %v10990_v57 = vld [vmem:[#allocation72_spill] sm:$0xff]  ;;  %v10993_v59 = vld [vmem:[#allocation46_spill] sm:$0xff] }
 0x1d3   : > { %v8801_v3 = vpop.f32.mrf.mxu1  ;;  %v6705_v28 = vpop.f32.mrf.mxu0  ;;  %v1731_v55 = vadd.f32 %v8676_v37, %v1529_v58  ;;  %v8853_v17 = vsel %vm3274_vm5, %v8636_v2, 0  ;;  %v8862_v30 = vadd.f32 %v8653_v39, %v1727_v42  ;;  %v2130_v2 = vadd.f32 %v8706_v18, %v8569_v53  ;;  %v10983_v53 = vld [vmem:[#allocation43_spill] sm:$0xff]  ;;  %v10984_v18 = vld [vmem:[#allocation66_spill] sm:$0xff] }
 0x1d4   : > { %v1931_v25 = vadd.f32 %v8613_v7, %v1719_v20  ;;  %v2129_v7 = vadd.f32 %v8698_v46, %v8525_v12  ;;  %v2128_v44 = vadd.f32 %v8710_v5, %v1919_v21  ;;  %v2327_v12 = vadd.f32 %v8671_v62, %v2125_v10  ;;  %v10980_v46 = vld [vmem:[#allocation36_spill] sm:$0xff]  ;;  %v10991_v58 = vld [vmem:[#allocation58_spill] sm:$0xff]  ;;  %v10992_v42 = vld [vmem:[#allocation59_spill] sm:$0xff] }
 0x1d5   : > { %v8810_v24 = vpop.f32.mrf.mxu1  ;;  %v8822_v38 = vpop.f32.mrf.mxu0  ;;  %v8865_v1 = vadd.f32 %v8666_v22, %v1731_v55  ;;  %v2131_v39 = vadd.f32 %v8718_v36, %v10980_v46  ;;  %v2328_v11 = vadd.f32 %v10982_v50, %v2126_v16  ;;  %v2134_v5 = vadd.f32 %v10984_v18, %v10983_v53  ;;  %v10989_v36 = vld [vmem:[#allocation28_spill] sm:$0xff]  ;;  %v11002_v18 = vld [vmem:[#allocation65_spill] sm:$0xff] }
 0x1d6   : > { %v2326_v62 = vadd.f32 %v10986_v31, %v2124_v49  ;;  %v2135_v41 = vadd.f32 %v10990_v57, %v10989_v36  ;;  %v2331_v29 = vadd.f32 %v10991_v58, %v2129_v7  ;;  %v2138_v21 = vadd.f32 %v8738_v48, %v10993_v59  ;;  %v10994_v10 = vld [vmem:[#allocation60_spill] sm:$0xff]  ;;  %v10997_v49 = vld [vmem:[#allocation29_spill] sm:$0xff]  ;;  %v10999_v48 = vld [vmem:[#allocation62_spill] sm:$0xff] }
 0x1d7   : > { %v8820_v23 = vpop.f32.mrf.mxu1  ;;  %v6706_v6 = vpop.f32.mrf.mxu0  ;;  %v8906_v7 = vld [vmem:[%s10706_s2] ss:$0 sm:$0xff]  ;;  %v11006_v57 = vld [vmem:[#allocation82_spill] sm:$0xff] }
 0x1d8   : > { %v11001_v53 = vld [vmem:[#allocation64_spill] sm:$0xff] }
 0x1d9   : > { %v6671_v15 = vpop.f32.mrf.mxu1  ;;  %v8841_v37 = vpop.f32.mrf.mxu0  ;;  %v11003_v31 = vld [vmem:[#allocation40_spill] sm:$0xff] }
 0x1da   : > { %v2153_v26 = vadd.f32 %v6671_v15, %v8669_v61  ;;  %v2127_v61 = vadd.f32 %v8702_v13, %v8528_v19  ;;  %v2133_v19 = vadd.f32 %v8714_v4, %v8575_v40  ;;  %v10981_v13 = vld [vmem:[#allocation55_spill] sm:$0xff]  ;;  %v10987_v40 = vld [vmem:[#allocation50_spill] sm:$0xff]  ;;  %v11005_v36 = vld [vmem:[#allocation48_spill] sm:$0xff] }
 0x1db   : > { %v8839_v14 = vpop.f32.mrf.mxu1  ;;  %v6745_v32 = vpop.f32.mrf.mxu0  ;;  %v2325_v35 = vadd.f32 %v10981_v13, %v2123_v56  ;;  %v10988_v4 = vld [vmem:[#allocation70_spill] sm:$0xff]  ;;  %v10996_v56 = vld [vmem:[#allocation75_spill] sm:$0xff] }
 0x1dc   : > { %v8855_v60 = vadd.f32 %v6705_v28, %v2153_v26  ;;  %v2137_v54 = vadd.f32 %v10988_v4, %v10987_v40  ;;  %v2329_v55 = vadd.f32 %v10992_v42, %v2127_v61  ;;  %v2136_v16 = vadd.f32 %v10996_v56, %v1927_v43  ;;  %v11004_v40 = vld [vmem:[#allocation79_spill] sm:$0xff]  ;;  %v11010_v56 = vld [vmem:[#allocation85_spill] sm:$0xff] }
 0x1dd   : > { %v6672_v45 = vpop.f32.mrf.mxu1  ;;  %v2619_v22 = vpop.f32.mrf.mxu0  ;;  %v8915_v43 = vadd.f32 %v11001_v53, %v2134_v5  ;;  %v2139_v4 = vadd.f32 %v11004_v40, %v11003_v31  ;;  %v11008_v5 = vld [vmem:[#allocation69_spill] sm:$0xff]  ;;  %v11014_v31 = vld [vmem:[#allocation74_spill] sm:$0xff] }
 0x1de   : > { %v2154_v27 = vadd.f32 %v6672_v45, %v8680_v33  ;;  %v2132_v33 = vadd.f32 %v10985_v9, %v1923_v8  ;;  %v8895_v8 = vadd.f32 %v10994_v10, %v2130_v2  ;;  %v10998_v45 = vld [vmem:[#allocation77_spill] sm:$0xff]  ;;  %v11000_v2 = vld [vmem:[#allocation63_spill] sm:$0xff]  ;;  %v8933_v42 = vadd.f32 %v11008_v5, %v2135_v41 }
 0x1df   : > { %v8876_v47 = vpop.f32.mrf.mxu1  ;;  %v6746_v63 = vpop.f32.mrf.mxu0  ;;  %v8912_v13 = vadd.f32 %v11000_v2, %v2131_v39  ;;  %v11009_v10 = vld [vmem:[#allocation71_spill] sm:$0xff]  ;;  %v11016_v40 = vld [vmem:[#allocation89_spill] sm:$0xff] }
 0x1e0   : > { %v8884_v28 = vadd.f32 %v6706_v6, %v2154_v27  ;;  %v10995_v6 = vld [vmem:[#allocation61_spill] sm:$0xff]  ;;  %v2141_v27 = vadd.f32 %v10998_v45, %v10997_v49  ;;  %v8918_v9 = vadd.f32 %v11002_v18, %v2132_v33  ;;  %v2140_v49 = vadd.f32 %v11010_v56, %v1931_v25  ;;  %v11011_v45 = vld [vmem:[#allocation47_spill] sm:$0xff]  ;;  %v11020_v56 = vld [vmem:[#allocation78_spill] sm:$0xff] }
 0x1e1   : > { %v6711_v20 = vpop.f32.mrf.mxu1  ;;  %v8898_v26 = vadd.f32 %v10995_v6, %v2128_v44  ;;  %v2622_v46 = vpop.f32.mrf.mxu0  ;;  %v8937_v6 = vadd.f32 %v11009_v10, %v2138_v21  ;;  %v11013_v18 = vld [vmem:[#allocation73_spill] sm:$0xff]  ;;  %v11019_v10 = vld [vmem:[#allocation76_spill] sm:$0xff] }
 0x1e2   : > { %v2539_v15 = vadd.f32 %v6711_v20, %v2327_v12  ;;  %v8909_v12 = vadd.f32 %v10999_v48, %v2133_v19  ;;  %v2142_v20 = vadd.f32 %v11006_v57, %v11005_v36  ;;  %v8927_v19 = vld [vmem:[%s10707_s3] ss:$0 sm:$0xff]  ;;  %v8946_v41 = vadd.f32 %v11014_v31, %v2141_v27  ;;  %v11017_v36 = vld [vmem:[#allocation26_spill] sm:$0xff]  ;;  %v11018_v57 = vld [vmem:[#allocation91_spill] sm:$0xff] }
 0x1e3   : > { %v2410_v61 = vpop.f32.mrf.mxu1  ;;  %v11022_v31 = vld [vmem:[#allocation80_spill] sm:$0xff] }
 0x1e4   : > { %v2748_v44 = vadd.f32 %v6745_v32, %v2539_v15  ;;  %v2537_v50 = vadd.f32 %v2410_v61, %v2325_v35  ;;  %v6749_v32 = vpop.f32.mrf.mxu0  ;;  %v11007_v35 = vld [vmem:[#allocation67_spill] sm:$0xff]  ;;  %v8958_v27 = vadd.f32 %v11020_v56, %v2142_v20 }
 0x1e5   : > { %v6712_v39 = vpop.f32.mrf.mxu1  ;;  %v8930_v58 = vadd.f32 %v11007_v35, %v2137_v54  ;;  %v11012_v61 = vld [vmem:[#allocation87_spill] sm:$0xff]  ;;  %v8943_v54 = vadd.f32 %v11013_v18, %v2136_v16  ;;  %v8955_v16 = vadd.f32 %v11019_v10, %v2139_v4 }
 0x1e6   : > { %v2787_v33 = vmul.f32 %v8906_v7, %v2748_v44  ;;  %v2746_v59 = vadd.f32 %v2619_v22, %v2537_v50  ;;  %v2540_v15 = vadd.f32 %v6712_v39, %v2328_v11  ;;  %v2145_v48 = vadd.f32 %v11012_v61, %v11011_v45  ;;  %v2635_v53 = vpop.f32.mrf.mxu0  ;;  %v11015_v50 = vld [vmem:[#allocation51_spill] sm:$0xff] }
 0x1e7   : > { %v2413_v2 = vpop.f32.mrf.mxu1  ;;  %v2143_v25 = vadd.f32 %v11016_v40, %v11015_v50  ;;  %v2146_v39 = vadd.f32 %v11018_v57, %v11017_v36  ;;  %v8965_v50 = vadd.f32 %v11022_v31, %v2140_v49  ;;  %v11023_v4 = vld [vmem:[#allocation83_spill] sm:$0xff]  ;;  %v11025_v57 = vld [vmem:[#allocation86_spill] sm:$0xff] }
 0x1e8   : > { %v2826_v44 = vadd.f32 %v8927_v19, %v2787_v33  ;;  %v2785_v22 = vmul.f32 %v8906_v7, %v2746_v59  ;;  %v2749_v11 = vadd.f32 %v6746_v63, %v2540_v15  ;;  %v2538_v21 = vadd.f32 %v2413_v2, %v2326_v62  ;;  %v6750_v5 = vpop.f32.mrf.mxu0  ;;  %v11021_v59 = vld [vmem:[#allocation93_spill] sm:$0xff] }
 0x1e9   : > { %v6715_v35 = vpop.f32.mrf.mxu1  ;;  %v2144_v15 = vadd.f32 %v11021_v59, %v8849_v34  ;;  %v8968_v40 = vadd.f32 %v11023_v4, %v2145_v48  ;;  %v8976_v49 = vadd.f32 %v11025_v57, %v2143_v25  ;;  %v11030_v4 = vld [vmem:[#allocation54_spill] sm:$0xff]  ;;  %v11033_v57 = vld [vmem:[#allocation49_spill] sm:$0xff] }
 0x1ea   : > { %v2858_v45 = vmax.f32 %v2826_v44, 0.0  ;;  %v2824_v33 = vadd.f32 %v8927_v19, %v2785_v22  ;;  %v2788_v63 = vmul.f32 %v8906_v7, %v2749_v11  ;;  %v2747_v62 = vadd.f32 %v2622_v46, %v2538_v21  ;;  %v2638_v18 = vpop.f32.mrf.mxu0  ;;  %v11024_v11 = vld [vmem:[#allocation27_spill] sm:$0xff] }
 0x1eb   : > { %v2543_v61 = vadd.f32 %v6715_v35, %v2331_v29  ;;  %v2426_v2 = vpop.f32.mrf.mxu1  ;;  %v2149_v34 = vadd.f32 %v8791_v52, %v11024_v11  ;;  %v11026_v35 = vld [vmem:[#allocation88_spill] sm:$0xff] }
 0x1ec   : > { %2947 = vst.msk [vmem:[#allocation3 + $0x31] sm:$0xff] %vm2888_vm6, %v2858_v45  ;;  %v2856_v20 = vmax.f32 %v2824_v33, 0.0  ;;  %v2827_v44 = vadd.f32 %v8927_v19, %v2788_v63  ;;  %v2786_v22 = vmul.f32 %v8906_v7, %v2747_v62  ;;  %v2541_v46 = vadd.f32 %v2426_v2, %v2329_v55  ;;  %v6753_v36 = vpop.f32.mrf.mxu0  ;;  %v11027_v33 = vld [vmem:[#allocation52_spill] sm:$0xff] }
 0x1ed   : > { %v2752_v29 = vadd.f32 %v6749_v32, %v2543_v61  ;;  %v6716_v21 = vpop.f32.mrf.mxu1  ;;  %v8979_v48 = vadd.f32 %v11026_v35, %v2146_v39  ;;  %v2147_v52 = vadd.f32 %v8801_v3, %v11027_v33  ;;  %v11028_v32 = vld [vmem:[#allocation53_spill] sm:$0xff]  ;;  %v11029_v39 = vld [vmem:[#allocation90_spill] sm:$0xff]  ;;  %v2148_v3 = vadd.f32 %v8820_v23, %v8862_v30 }
 0x1ee   : > { %2945 = vst.msk [vmem:[#allocation3 + $0x19] sm:$0xff] %vm2888_vm6, %v2856_v20  ;;  %v2859_v10 = vmax.f32 %v2827_v44, 0.0  ;;  %v2825_v56 = vadd.f32 %v8927_v19, %v2786_v22  ;;  %v2750_v45 = vadd.f32 %v2635_v53, %v2541_v46  ;;  %v2544_v55 = vadd.f32 %v6716_v21, %v8895_v8  ;;  %v2651_v59 = vpop.f32.mrf.mxu0 }
 0x1ef   : > { %v2150_v63 = vadd.f32 %v8810_v24, %v11028_v32  ;;  %v2791_v25 = vmul.f32 %v8906_v7, %v2752_v29  ;;  %v2429_v62 = vpop.f32.mrf.mxu1  ;;  %v8990_v61 = vadd.f32 %v11029_v39, %v2144_v15  ;;  %v2151_v24 = vadd.f32 %v8839_v14, %v11030_v4  ;;  %v11031_v14 = vld [vmem:[#allocation92_spill] sm:$0xff] }
 0x1f0   : > { %2948 = vst.msk [vmem:[#allocation3 + $0x39] sm:$0xff] %vm2888_vm6, %v2859_v10  ;;  %v2857_v2 = vmax.f32 %v2825_v56, 0.0  ;;  %v2789_v53 = vmul.f32 %v8906_v7, %v2750_v45  ;;  %v2753_v31 = vadd.f32 %v6750_v5, %v2544_v55  ;;  %v2542_v8 = vadd.f32 %v2429_v62, %v8898_v26  ;;  %v6754_v22 = vpop.f32.mrf.mxu0 }
 0x1f1   : > { %v2152_v20 = vadd.f32 %v8876_v47, %v8865_v1  ;;  %v2830_v15 = vadd.f32 %v8927_v19, %v2791_v25  ;;  %v6719_v44 = vpop.f32.mrf.mxu1  ;;  %v9007_v21 = vadd.f32 %v11031_v14, %v2149_v34  ;;  %v11032_v1 = vld [vmem:[#allocation94_spill] sm:$0xff]  ;;  %v9013_v35 = vadd.f32 %v11033_v57, %v2150_v63 }
 0x1f2   : > { %2946 = vst.msk [vmem:[#allocation3 + $0x21] sm:$0xff] %vm2888_vm6, %v2857_v2  ;;  %v2828_v46 = vadd.f32 %v8927_v19, %v2789_v53  ;;  %v2792_v5 = vmul.f32 %v8906_v7, %v2753_v31  ;;  %v2751_v26 = vadd.f32 %v2638_v18, %v2542_v8  ;;  %v2547_v11 = vadd.f32 %v6719_v44, %v8909_v12  ;;  %v2654_v29 = vpop.f32.mrf.mxu0 }
 0x1f3   : > { %v2862_v23 = vmax.f32 %v2830_v15, 0.0  ;;  %v2442_v30 = vpop.f32.mrf.mxu1  ;;  %v9010_v47 = vadd.f32 %v11032_v1, %v2147_v52  ;;  %v9017_v55 = vld [vmem:[#allocation3 + $0x30] sm:$0xff]  ;;  %v9024_v52 = vadd.f32 %v8803_v0, %v2148_v3  ;;  %v9027_v63 = vadd.f32 %v8822_v38, %v2151_v24 }
 0x1f4   : > { %v2860_v10 = vmax.f32 %v2828_v46, 0.0  ;;  %v2831_v56 = vadd.f32 %v8927_v19, %v2792_v5  ;;  %v2790_v45 = vmul.f32 %v8906_v7, %v2751_v26  ;;  %v2756_v18 = vadd.f32 %v6753_v36, %v2547_v11  ;;  %v6757_v33 = vpop.f32.mrf.mxu0 }
 0x1f5   : > { %2951 = vst.msk [vmem:[#allocation3 + $0x61] sm:$0xff] %vm2888_vm6, %v2862_v23  ;;  %v2545_v12 = vadd.f32 %v2442_v30, %v8912_v13  ;;  %v6720_v34 = vpop.f32.mrf.mxu1  ;;  %v9021_v32 = vld [vmem:[#allocation3 + $0x18] sm:$0xff]  ;;  %v9030_v25 = vadd.f32 %v8841_v37, %v2152_v20  ;;  %v3106_v38 = vrot.slane %v9017_v55, 1 }
 0x1f6   : > { %2949 = vst.msk [vmem:[#allocation3 + $0x49] sm:$0xff] %vm2888_vm6, %v2860_v10  ;;  %v2863_v36 = vmax.f32 %v2831_v56, 0.0  ;;  %v2829_v62 = vadd.f32 %v8927_v19, %v2790_v45  ;;  %v2795_v13 = vmul.f32 %v8906_v7, %v2756_v18  ;;  %v2548_v39 = vadd.f32 %v6720_v34, %v8915_v43  ;;  %v2667_v31 = vpop.f32.mrf.mxu0 }
 0x1f7   : > { %v2754_v2 = vadd.f32 %v2651_v59, %v2545_v12  ;;  %v2445_v53 = vpop.f32.mrf.mxu1  ;;  %v3101_v0 = vrot.slane %v9021_v32, 1  ;;  %v9037_v8 = vld [vmem:[#allocation3 + $0x38] sm:$0xff]  ;;  %v9069_v34 = vld [vmem:[#allocation3 + $0x40] sm:$0x3] }
 0x1f8   : > { %2952 = vst.msk [vmem:[#allocation3 + $0x69] sm:$0xff] %vm2888_vm6, %v2863_v36  ;;  %v2861_v3 = vmax.f32 %v2829_v62, 0.0  ;;  %v2834_v4 = vadd.f32 %v8927_v19, %v2795_v13  ;;  %v2757_v24 = vadd.f32 %v6754_v22, %v2548_v39  ;;  %v2546_v20 = vadd.f32 %v2445_v53, %v8918_v9  ;;  %v6758_v15 = vpop.f32.mrf.mxu0  ;;  %v9074_v36 = vld [vmem:[%s10708_s4 + $0x14] sm:$0xf] }
 0x1f9   : > { %v2793_v43 = vmul.f32 %v8906_v7, %v2754_v2  ;;  %v6723_v59 = vpop.f32.mrf.mxu1  ;;  %v9045_v44 = vld [vmem:[#allocation3 + $0x20] sm:$0xff]  ;;  %v9050_v5 = vpack.c.bf16 %v9037_v8, %v9017_v55  ;;  %v3107_v26 = vrot.slane %v9037_v8, 1  ;;  %v9056_v30 = vld [vmem:[#allocation3 + $0x28] sm:$0x3] }
 0x1fa   : > { %2950 = vst.msk [vmem:[#allocation3 + $0x51] sm:$0xff] %vm2888_vm6, %v2861_v3  ;;  %v2866_v11 = vmax.f32 %v2834_v4, 0.0  ;;  %v2796_v22 = vmul.f32 %v8906_v7, %v2757_v24  ;;  %v2755_v9 = vadd.f32 %v2654_v29, %v2546_v20  ;;  %v2551_v23 = vadd.f32 %v6723_v59, %v8930_v58  ;;  %v2670_v45 = vpop.f32.mrf.mxu0 }
 0x1fb   : > { %v2832_v14 = vadd.f32 %v8927_v19, %v2793_v43  ;;  %v2458_v1 = vpop.f32.mrf.mxu1  ;;  %v9061_v57 = vpack.c.bf16 %v9045_v44, %v9021_v32  ;;  %v3102_v10 = vrot.slane %v9045_v44, 1 }
 0x1fc   : > { %2955 = vst.msk [vmem:[#allocation3 + $0x91] sm:$0xff] %vm2888_vm6, %v2866_v11  ;;  %v2835_v29 = vadd.f32 %v8927_v19, %v2796_v22  ;;  %v2794_v58 = vmul.f32 %v8906_v7, %v2755_v9  ;;  %v2760_v18 = vadd.f32 %v6757_v33, %v2551_v23  ;;  %v2549_v12 = vadd.f32 %v2458_v1, %v8933_v42  ;;  %v6761_v53 = vpop.f32.mrf.mxu0 }
 0x1fd   : > { %v2864_v62 = vmax.f32 %v2832_v14, 0.0  ;;  %6812 = vmatmul.mubr.msk.bf16.vlgmr.msra.gmra.mxu0 %vm2888_vm6, %v9061_v57  ;;  %v6724_v39 = vpop.f32.mrf.mxu1  ;;  %v3103_v2 = vsel %vm601_vm3, %v3101_v0, %v3102_v10  ;;  %v3104_v33 = vrot.slane %v9056_v30, 1  ;;  %v9086_v20 = vld [vmem:[#allocation3 + $0x48] sm:$0xff]  ;;  %v3108_v11 = vsel %vm601_vm3, %v3106_v38, %v3107_v26 }
 0x1fe   : > { %v2867_v42 = vmax.f32 %v2835_v29, 0.0  ;;  %v2833_v3 = vadd.f32 %v8927_v19, %v2794_v58  ;;  %v2799_v4 = vmul.f32 %v8906_v7, %v2760_v18  ;;  %v2758_v24 = vadd.f32 %v2667_v31, %v2549_v12  ;;  %6815 = vmatprep.mubr.msk.bf16.mxu0 %vm2888_vm6, %v9050_v5  ;;  %6878 = vmatpush3.bf16.msra.mxu0 %v8853_v17  ;;  %v2683_v9 = vpop.f32.mrf.mxu0 }
 0x1ff   : > { %2953 = vst.msk [vmem:[#allocation3 + $0x79] sm:$0xff] %vm2888_vm6, %v2864_v62  ;;  %v2552_v0 = vadd.f32 %v6724_v39, %v8937_v6  ;;  %v2461_v43 = vpop.f32.mrf.mxu1  ;;  %v3105_v59 = vsel %vm601_vm3, %v3102_v10, %v3104_v33  ;;  %v3109_v22 = vrot.slane %v9069_v34, 1  ;;  %7132 = vmatprep.subr.msk.bf16.mxu0 %vm3274_vm5, %v9074_v36  ;;  %v3111_v18 = vrot.slane %v9086_v20, 1 }
 0x200   : > { %2956 = vst.msk [vmem:[#allocation3 + $0x99] sm:$0xff] %vm2888_vm6, %v2867_v42  ;;  %v2865_v17 = vmax.f32 %v2833_v3, 0.0  ;;  %v2838_v31 = vadd.f32 %v8927_v19, %v2799_v4  ;;  %v2797_v23 = vmul.f32 %v8906_v7, %v2758_v24  ;;  %v2550_v6 = vadd.f32 %v2461_v43, %v8943_v54  ;;  %v6762_v29 = vpop.f32.mrf.mxu0  ;;  %v9109_v54 = vld [vmem:[#allocation3 + $0x68] sm:$0xff] }
 0x201   : > { %v2761_v14 = vadd.f32 %v6758_v15, %v2552_v0  ;;  %v9099_v1 = vpack.c.bf16 %v3105_v59, %v3103_v2  ;;  %v3110_v38 = vsel %vm601_vm3, %v3107_v26, %v3109_v22  ;;  %v6727_v10 = vpop.f32.mrf.mxu1  ;;  %v9102_v58 = vld [vmem:[#allocation3 + $0x50] sm:$0xff]  ;;  %v9114_v15 = vld [vmem:[%s10708_s4 + $0x10] sm:$0xf] }
 0x202   : > { %2954 = vst.msk [vmem:[#allocation3 + $0x81] sm:$0xff] %vm2888_vm6, %v2865_v17  ;;  %v2870_v12 = vmax.f32 %v2838_v31, 0.0  ;;  %v2836_v62 = vadd.f32 %v8927_v19, %v2797_v23  ;;  %v2759_v39 = vadd.f32 %v2670_v45, %v2550_v6  ;;  %v9107_v33 = vpack.c.bf16 %v3110_v38, %v3108_v11  ;;  %11036 = vst [vmem:[#allocation32_spill] sm:$0xff] %v9114_v15  ;;  %v2686_v4 = vpop.f32.mrf.mxu0  ;;  %v9132_v59 = vld [vmem:[#allocation3 + $0x60] sm:$0xff]  ;;  %v9148_v38 = vld [vmem:[#allocation3 + $0x58] sm:$0x3] }
 0x203   : > { %11034 = vst [vmem:[#allocation25_spill] sm:$0xff] %v9099_v1  ;;  %v2800_v26 = vmul.f32 %v8906_v7, %v2761_v14  ;;  %6778 = vmatmul.mubr.msk.bf16.vlgmr.msra.gmra.mxu1 %vm2888_vm6, %v9099_v1  ;;  %v2555_v2 = vadd.f32 %v6727_v10, %v8946_v41  ;;  %v2474_v42 = vpop.f32.mrf.mxu1  ;;  %v9122_v45 = vpack.c.bf16 %v9102_v58, %v9086_v20  ;;  %v3112_v43 = vrot.slane %v9102_v58, 1 }
 0x204   : > { %11035 = vst [vmem:[#allocation42_spill] sm:$0xff] %v9107_v33  ;;  %2959 = vst.msk [vmem:[#allocation3 + $0xc1] sm:$0xff] %vm2888_vm6, %v2870_v12  ;;  %v2868_v24 = vmax.f32 %v2836_v62, 0.0  ;;  %v2798_v0 = vmul.f32 %v8906_v7, %v2759_v39  ;;  %6844 = vmatpush3.bf16.msra.mxu1 %v8845_v51  ;;  %6781 = vmatprep.mubr.msk.bf16.mxu1 %vm2888_vm6, %v9107_v33  ;;  %v2553_v41 = vadd.f32 %v2474_v42, %v8955_v16  ;;  %v6765_v23 = vpop.f32.mrf.mxu0 }
 0x205   : > { %11037 = vst [vmem:[#allocation36_spill] sm:$0xff] %v9122_v45  ;;  %v2839_v11 = vadd.f32 %v8927_v19, %v2800_v26  ;;  %v2764_v22 = vadd.f32 %v6761_v53, %v2555_v2  ;;  %6816 = vmatmul.mubr.msk.bf16.gmra.mxu0 %vm2888_vm6, %v9122_v45  ;;  %v6728_v31 = vpop.f32.mrf.mxu1  ;;  %v9140_v51 = vpack.c.bf16 %v9109_v54, %v9132_v59  ;;  %v3117_v14 = vrot.slane %v9109_v54, 1  ;;  %v9155_v2 = vld [vmem:[#allocation3 + $0x70] sm:$0x3] }
 0x206   : > { %7131 = vmatprep.subr.msk.bf16.mxu1 %vm3274_vm5, %v9114_v15  ;;  %2957 = vst.msk [vmem:[#allocation3 + $0xa9] sm:$0xff] %vm2888_vm6, %v2868_v24  ;;  %v2837_v16 = vadd.f32 %v8927_v19, %v2798_v0  ;;  %v2762_v6 = vadd.f32 %v2683_v9, %v2553_v41  ;;  %v2556_v53 = vadd.f32 %v6728_v31, %v8958_v27  ;;  %v3116_v62 = vrot.slane %v9132_v59, 1  ;;  %v2699_v9 = vpop.f32.mrf.mxu0 }
 0x207   : > { %11038 = vst [vmem:[#allocation55_spill] sm:$0xff] %v9140_v51  ;;  %v2871_v10 = vmax.f32 %v2839_v11, 0.0  ;;  %v2803_v12 = vmul.f32 %v8906_v7, %v2764_v22  ;;  %6819 = vmatprep.mubr.msk.bf16.mxu0 %vm2888_vm6, %v9140_v51  ;;  %v2477_v26 = vpop.f32.mrf.mxu1  ;;  %v3113_v11 = vsel %vm601_vm3, %v3111_v18, %v3112_v43  ;;  %v3114_v22 = vrot.slane %v9148_v38, 1 }
 0x208   : > { %v2869_v42 = vmax.f32 %v2837_v16, 0.0  ;;  %v2801_v27 = vmul.f32 %v8906_v7, %v2762_v6  ;;  %v2765_v24 = vadd.f32 %v6762_v29, %v2556_v53  ;;  %v2554_v0 = vadd.f32 %v2477_v26, %v8965_v50  ;;  %v6766_v3 = vpop.f32.mrf.mxu0  ;;  %v9170_v53 = vld [vmem:[#allocation3 + $0x78] sm:$0xff] }
 0x209   : > { %2960 = vst.msk [vmem:[#allocation3 + $0xc9] sm:$0xff] %vm2888_vm6, %v2871_v10  ;;  %v2842_v41 = vadd.f32 %v8927_v19, %v2803_v12  ;;  %v3118_v31 = vsel %vm601_vm3, %v3116_v62, %v3117_v14  ;;  %v6731_v39 = vpop.f32.mrf.mxu1  ;;  %v9164_v17 = vld [vmem:[#allocation3 + $0x80] sm:$0xff]  ;;  %v3119_v6 = vrot.slane %v9155_v2, 1  ;;  %v3115_v10 = vsel %vm601_vm3, %v3112_v43, %v3114_v22  ;;  %v9188_v22 = vld [vmem:[#allocation3 + $0x98] sm:$0xff] }
 0x20a   : > { %2958 = vst.msk [vmem:[#allocation3 + $0xb1] sm:$0xff] %vm2888_vm6, %v2869_v42  ;;  %v2840_v29 = vadd.f32 %v8927_v19, %v2801_v27  ;;  %v2804_v50 = vmul.f32 %v8906_v7, %v2765_v24  ;;  %v2763_v16 = vadd.f32 %v2686_v4, %v2554_v0  ;;  %v2559_v12 = vadd.f32 %v6731_v39, %v8968_v40  ;;  %v2702_v42 = vpop.f32.mrf.mxu0 }
 0x20b   : > { %v2874_v18 = vmax.f32 %v2842_v41, 0.0  ;;  %v2490_v62 = vpop.f32.mrf.mxu1  ;;  %v9176_v26 = vpack.c.bf16 %v9164_v17, %v9170_v53  ;;  %v9180_v24 = vpack.c.bf16 %v3115_v10, %v3113_v11  ;;  %v3120_v43 = vsel %vm601_vm3, %v3117_v14, %v3119_v6 }
 0x20c   : > { %v2872_v37 = vmax.f32 %v2840_v29, 0.0  ;;  %v2843_v27 = vadd.f32 %v8927_v19, %v2804_v50  ;;  %v2802_v4 = vmul.f32 %v8906_v7, %v2763_v16  ;;  %v2768_v40 = vadd.f32 %v6765_v23, %v2559_v12  ;;  %v6769_v29 = vpop.f32.mrf.mxu0 }
 0x20d   : > { %11039 = vst [vmem:[#allocation56_spill] sm:$0xff] %v9176_v26  ;;  %11040 = vst [vmem:[#allocation43_spill] sm:$0xff] %v9180_v24  ;;  %v2557_v39 = vadd.f32 %v2490_v62, %v8976_v49  ;;  %6820 = vmatmul.mubr.msk.bf16.gmra.mxu0 %vm2888_vm6, %v9176_v26  ;;  %v6732_v41 = vpop.f32.mrf.mxu1  ;;  %6782 = vmatmul.mubr.msk.bf16.gmra.mxu1 %vm2888_vm6, %v9180_v24  ;;  %v9194_v16 = vpack.c.bf16 %v3120_v43, %v3118_v31  ;;  %v3122_v23 = vrot.slane %v9164_v17, 1  ;;  %v9197_v49 = vld [vmem:[#allocation3 + $0x90] sm:$0xff] }
 0x20e   : > { %2963 = vst.msk [vmem:[#allocation3 + $0xf1] sm:$0xff] %vm2888_vm6, %v2874_v18  ;;  %2961 = vst.msk [vmem:[#allocation3 + $0xd9] sm:$0xff] %vm2888_vm6, %v2872_v37  ;;  %v2875_v11 = vmax.f32 %v2843_v27, 0.0  ;;  %v2841_v50 = vadd.f32 %v8927_v19, %v2802_v4  ;;  %v2807_v14 = vmul.f32 %v8906_v7, %v2768_v40  ;;  %v3121_v18 = vrot.slane %v9170_v53, 1  ;;  %v2715_v12 = vpop.f32.mrf.mxu0 }
 0x20f   : > { %11041 = vst [vmem:[#allocation66_spill] sm:$0xff] %v9194_v16  ;;  %v2766_v6 = vadd.f32 %v2699_v9, %v2557_v39  ;;  %v2493_v37 = vpop.f32.mrf.mxu1  ;;  %6785 = vmatprep.mubr.msk.bf16.mxu1 %vm2888_vm6, %v9194_v16  ;;  %v2560_v27 = vadd.f32 %v6732_v41, %v8979_v48  ;;  %v9209_v4 = vpack.c.bf16 %v9188_v22, %v9197_v49  ;;  %v9211_v9 = vld [vmem:[#allocation3 + $0x88] sm:$0x3]  ;;  %v3126_v39 = vrot.slane %v9197_v49, 1 }
 0x210   : > { %2964 = vst.msk [vmem:[#allocation3 + $0xf9] sm:$0xff] %vm2888_vm6, %v2875_v11  ;;  %v2873_v62 = vmax.f32 %v2841_v50, 0.0  ;;  %v2846_v43 = vadd.f32 %v8927_v19, %v2807_v14  ;;  %v3127_v11 = vrot.slane %v9188_v22, 1  ;;  %v9217_v50 = vld [vmem:[#allocation3 + $0xa0] sm:$0x3]  ;;  %v2558_v31 = vadd.f32 %v2493_v37, %v8990_v61  ;;  %v9233_v37 = vld [vmem:[#allocation3 + $0xa8] sm:$0xff] }
 0x211   : > { %11042 = vst [vmem:[#allocation68_spill] sm:$0xff] %v9209_v4  ;;  %v2805_v40 = vmul.f32 %v8906_v7, %v2766_v6  ;;  %v6735_v10 = vpop.f32.mrf.mxu1  ;;  %v2769_v48 = vadd.f32 %v6766_v3, %v2560_v27  ;;  %6823 = vmatprep.mubr.msk.bf16.mxu0 %vm2888_vm6, %v9209_v4  ;;  %v3123_v14 = vsel %vm601_vm3, %v3121_v18, %v3122_v23  ;;  %v6770_v6 = vpop.f32.mrf.mxu0  ;;  %v9225_v0 = vld [vmem:[#allocation3 + $0xb0] sm:$0xff]  ;;  %v3124_v13 = vrot.slane %v9211_v9, 1 }
 0x212   : > { %2962 = vst.msk [vmem:[#allocation3 + $0xe1] sm:$0xff] %vm2888_vm6, %v2873_v62  ;;  %v2878_v56 = vmax.f32 %v2846_v43, 0.0  ;;  %v3128_v62 = vsel %vm601_vm3, %v3126_v39, %v3127_v11  ;;  %v2767_v16 = vadd.f32 %v2702_v42, %v2558_v31  ;;  %v3129_v41 = vrot.slane %v9217_v50, 1 }
 0x213   : > { %v2844_v46 = vadd.f32 %v8927_v19, %v2805_v40  ;;  %v2506_v3 = vpop.f32.mrf.mxu1  ;;  %v2808_v27 = vmul.f32 %v8906_v7, %v2769_v48  ;;  %v2563_v61 = vadd.f32 %v6735_v10, %v9007_v21  ;;  %v3125_v43 = vsel %vm601_vm3, %v3122_v23, %v3124_v13  ;;  %v2718_v10 = vpop.f32.mrf.mxu0  ;;  %v9253_v23 = vld [vmem:[#allocation3 + $0xc8] sm:$0xff] }
 0x214   : > { %2967 = vst.msk [vmem:[#allocation3 + $0x121] sm:$0xff] %vm2888_vm6, %v2878_v56  ;;  %v2561_v40 = vadd.f32 %v2506_v3, %v9010_v47  ;;  %v9240_v39 = vpack.c.bf16 %v9225_v0, %v9233_v37  ;;  %v2806_v31 = vmul.f32 %v8906_v7, %v2767_v16  ;;  %v9244_v48 = vpack.c.bf16 %v3125_v43, %v3123_v14 }
 0x215   : > { %v2876_v18 = vmax.f32 %v2844_v46, 0.0  ;;  %v6736_v24 = vpop.f32.mrf.mxu1  ;;  %v2847_v42 = vadd.f32 %v8927_v19, %v2808_v27  ;;  %v3130_v21 = vsel %vm601_vm3, %v3127_v11, %v3129_v41  ;;  %v2772_v47 = vadd.f32 %v6769_v29, %v2563_v61  ;;  %v9280_v46 = vld [vmem:[#allocation3 + $0xd0] sm:$0x3] }
 0x216   : > { %11043 = vst [vmem:[#allocation57_spill] sm:$0xff] %v9240_v39  ;;  %11044 = vst [vmem:[#allocation50_spill] sm:$0xff] %v9244_v48  ;;  %v9249_v56 = vpack.c.bf16 %v3130_v21, %v3128_v62  ;;  %v2770_v13 = vadd.f32 %v2715_v12, %v2561_v40  ;;  %6824 = vmatmul.mubr.msk.bf16.gmra.mxu0 %vm2888_vm6, %v9240_v39  ;;  %v2845_v14 = vadd.f32 %v8927_v19, %v2806_v31  ;;  %v9260_v62 = vld [vmem:[#allocation3 + $0xc0] sm:$0xff] }
 0x217   : > { %2965 = vst.msk [vmem:[#allocation3 + $0x109] sm:$0xff] %vm2888_vm6, %v2876_v18  ;;  %v2509_v3 = vpop.f32.mrf.mxu1  ;;  %v2879_v16 = vmax.f32 %v2847_v42, 0.0  ;;  %6786 = vmatmul.mubr.msk.bf16.gmra.mxu1 %vm2888_vm6, %v9244_v48  ;;  %v3131_v11 = vrot.slane %v9233_v37, 1  ;;  %v3132_v41 = vrot.slane %v9225_v0, 1  ;;  %v2811_v29 = vmul.f32 %v8906_v7, %v2772_v47  ;;  %v9268_v18 = vld [vmem:[#allocation3 + $0xb8] sm:$0x3]  ;;  %v6773_v47 = vpop.f32.mrf.mxu0 }
 0x218   : > { %11045 = vst [vmem:[#allocation70_spill] sm:$0xff] %v9249_v56  ;;  %6789 = vmatprep.mubr.msk.bf16.mxu1 %vm2888_vm6, %v9249_v56  ;;  %v2809_v12 = vmul.f32 %v8906_v7, %v2770_v13  ;;  %v2564_v61 = vadd.f32 %v6736_v24, %v9013_v35  ;;  %v2877_v40 = vmax.f32 %v2845_v14, 0.0  ;;  %v9274_v31 = vpack.c.bf16 %v9253_v23, %v9260_v62 }
 0x219   : > { %v6739_v43 = vpop.f32.mrf.mxu1  ;;  %2968 = vst.msk [vmem:[#allocation3 + $0x129] sm:$0xff] %vm2888_vm6, %v2879_v16  ;;  %v3137_v21 = vrot.slane %v9253_v23, 1  ;;  %v2850_v13 = vadd.f32 %v8927_v19, %v2811_v29  ;;  %v3136_v24 = vrot.slane %v9260_v62, 1  ;;  %v2562_v42 = vadd.f32 %v2509_v3, %v9024_v52  ;;  %v2731_v52 = vpop.f32.mrf.mxu0  ;;  %v9296_v3 = vld [vmem:[#allocation3 + $0xd8] sm:$0xff] }
 0x21a   : > { %11046 = vst [vmem:[#allocation28_spill] sm:$0xff] %v9274_v31  ;;  %v2848_v27 = vadd.f32 %v8927_v19, %v2809_v12  ;;  %v2773_v35 = vadd.f32 %v6770_v6, %v2564_v61  ;;  %2966 = vst.msk [vmem:[#allocation3 + $0x111] sm:$0xff] %vm2888_vm6, %v2877_v40  ;;  %6827 = vmatprep.mubr.msk.bf16.mxu0 %vm2888_vm6, %v9274_v31  ;;  %v3133_v56 = vsel %vm601_vm3, %v3131_v11, %v3132_v41  ;;  %v9289_v12 = vld [vmem:[#allocation3 + $0xe0] sm:$0xff] }
 0x21b   : > { %v2522_v16 = vpop.f32.mrf.mxu1  ;;  %v3134_v29 = vrot.slane %v9268_v18, 1  ;;  %v2882_v6 = vmax.f32 %v2850_v13, 0.0  ;;  %v3138_v33 = vsel %vm601_vm3, %v3136_v24, %v3137_v21  ;;  %v2771_v40 = vadd.f32 %v2718_v10, %v2562_v42  ;;  %v9311_v24 = vld [vmem:[#allocation3 + $0xf8] sm:$0xff] }
 0x21c   : > { %v2880_v61 = vmax.f32 %v2848_v27, 0.0  ;;  %v2812_v48 = vmul.f32 %v8906_v7, %v2773_v35  ;;  %v3139_v31 = vrot.slane %v9280_v46, 1  ;;  %v2567_v14 = vadd.f32 %v6739_v43, %v8855_v60 }
 0x21d   : > { %v3135_v1 = vsel %vm601_vm3, %v3132_v41, %v3134_v29  ;;  %v6740_v11 = vpop.f32.mrf.mxu1  ;;  %2971 = vst.msk [vmem:[#allocation3 + $0x151] sm:$0xff] %vm2888_vm6, %v2882_v6  ;;  %v2565_v10 = vadd.f32 %v2522_v16, %v9027_v63  ;;  %v9306_v41 = vpack.c.bf16 %v9289_v12, %v9296_v3  ;;  %v2810_v43 = vmul.f32 %v8906_v7, %v2771_v40 }
 0x21e   : > { %2969 = vst.msk [vmem:[#allocation3 + $0x139] sm:$0xff] %vm2888_vm6, %v2880_v61  ;;  %v2851_v27 = vadd.f32 %v8927_v19, %v2812_v48  ;;  %v9301_v13 = vpack.c.bf16 %v3135_v1, %v3133_v56  ;;  %v3140_v42 = vsel %vm601_vm3, %v3137_v21, %v3139_v31  ;;  %v2776_v35 = vadd.f32 %v6773_v47, %v2567_v14  ;;  %v9320_v56 = vld [vmem:[#allocation3 + $0xf0] sm:$0xff]  ;;  %v6774_v21 = vpop.f32.mrf.mxu0 }
 0x21f   : > { %11048 = vst [vmem:[#allocation58_spill] sm:$0xff] %v9306_v41  ;;  %v9315_v1 = vpack.c.bf16 %v3140_v42, %v3138_v33  ;;  %v2774_v63 = vadd.f32 %v2731_v52, %v2565_v10  ;;  %v3141_v48 = vrot.slane %v9296_v3, 1  ;;  %6828 = vmatmul.mubr.msk.bf16.gmra.mxu0 %vm2888_vm6, %v9306_v41  ;;  %v2849_v16 = vadd.f32 %v8927_v19, %v2810_v43  ;;  %v2525_v6 = vpop.f32.mrf.mxu1 }
 0x220   : > { %11047 = vst [vmem:[#allocation72_spill] sm:$0xff] %v9301_v13  ;;  %v2883_v29 = vmax.f32 %v2851_v27, 0.0  ;;  %6790 = vmatmul.mubr.msk.bf16.gmra.mxu1 %vm2888_vm6, %v9301_v13  ;;  %v2815_v31 = vmul.f32 %v8906_v7, %v2776_v35  ;;  %v3142_v47 = vrot.slane %v9289_v12, 1  ;;  %v2568_v40 = vadd.f32 %v6740_v11, %v8884_v28  ;;  %v9336_v27 = vld [vmem:[#allocation3 + $0xe8] sm:$0x3] }
 0x221   : > { %11049 = vst [vmem:[#allocation59_spill] sm:$0xff] %v9315_v1  ;;  %6793 = vmatprep.mubr.msk.bf16.mxu1 %vm2888_vm6, %v9315_v1  ;;  %v2813_v33 = vmul.f32 %v8906_v7, %v2774_v63  ;;  %v9334_v52 = vpack.c.bf16 %v9311_v24, %v9320_v56  ;;  %v2881_v10 = vmax.f32 %v2849_v16, 0.0  ;;  %v3146_v42 = vrot.slane %v9320_v56, 1  ;;  %v9348_v61 = vld [vmem:[#allocation3 + $0x110] sm:$0xff] }
 0x222   : > { %2972 = vst.msk [vmem:[#allocation3 + $0x159] sm:$0xff] %vm2888_vm6, %v2883_v29  ;;  %v2854_v43 = vadd.f32 %v8927_v19, %v2815_v31  ;;  %v3147_v35 = vrot.slane %v9311_v24, 1  ;;  %v9341_v29 = vld [vmem:[#allocation3 + $0x100] sm:$0x3]  ;;  %v2777_v14 = vadd.f32 %v6774_v21, %v2568_v40  ;;  %v2566_v11 = vadd.f32 %v2525_v6, %v9030_v25  ;;  %v2734_v31 = vpop.f32.mrf.mxu0  ;;  %v9358_v25 = vld [vmem:[#allocation3 + $0x128] sm:$0xff] }
 0x223   : > { %11050 = vst [vmem:[#allocation46_spill] sm:$0xff] %v9334_v52  ;;  %v2852_v63 = vadd.f32 %v8927_v19, %v2813_v33  ;;  %6831 = vmatprep.mubr.msk.bf16.mxu0 %vm2888_vm6, %v9334_v52  ;;  %2970 = vst.msk [vmem:[#allocation3 + $0x141] sm:$0xff] %vm2888_vm6, %v2881_v10  ;;  %v3143_v60 = vsel %vm601_vm3, %v3141_v48, %v3142_v47  ;;  %v3144_v1 = vrot.slane %v9336_v27, 1  ;;  %v3149_v28 = vrot.slane %v9341_v29, 1  ;;  %v9356_v52 = vld [vmem:[#allocation3 + $0x108] sm:$0xff] }
 0x224   : > { %v2886_v16 = vmax.f32 %v2854_v43, 0.0  ;;  %v3148_v33 = vsel %vm601_vm3, %v3146_v42, %v3147_v35  ;;  %v2816_v40 = vmul.f32 %v8906_v7, %v2777_v14  ;;  %v2775_v13 = vadd.f32 %v2734_v31, %v2566_v11  ;;  %v9368_v14 = vld [vmem:[#allocation3 + $0x120] sm:$0xff]  ;;  %v9376_v31 = vld [vmem:[#allocation3 + $0x118] sm:$0x3] }
 0x225   : > { %v2884_v21 = vmax.f32 %v2852_v63, 0.0  ;;  %v3145_v48 = vsel %vm601_vm3, %v3142_v47, %v3144_v1  ;;  %v9365_v10 = vpack.c.bf16 %v9348_v61, %v9356_v52  ;;  %v3152_v43 = vrot.slane %v9348_v61, 1 }
 0x226   : > { %2975 = vst.msk [vmem:[#allocation3 + $0x181] sm:$0xff] %vm2888_vm6, %v2886_v16  ;;  %v2855_v42 = vadd.f32 %v8927_v19, %v2816_v40  ;;  %v2814_v63 = vmul.f32 %v8906_v7, %v2775_v13  ;;  %v9373_v11 = vpack.c.bf16 %v3145_v48, %v3143_v60  ;;  %v3150_v16 = vsel %vm601_vm3, %v3147_v35, %v3149_v28  ;;  %v9388_v7 = vld [vmem:[#allocation3 + $0x130] sm:$0x3] }
 0x227   : > { %11051 = vst [vmem:[#allocation60_spill] sm:$0xff] %v9365_v10  ;;  %2973 = vst.msk [vmem:[#allocation3 + $0x169] sm:$0xff] %vm2888_vm6, %v2884_v21  ;;  %v9378_v1 = vpack.c.bf16 %v3150_v16, %v3148_v33  ;;  %v3151_v47 = vrot.slane %v9356_v52, 1  ;;  %6832 = vmatmul.mubr.msk.bf16.gmra.mxu0 %vm2888_vm6, %v9365_v10  ;;  %v9386_v21 = vpack.c.bf16 %v9358_v25, %v9368_v14  ;;  %v3156_v35 = vrot.slane %v9368_v14, 1  ;;  %v9395_v33 = vld [vmem:[#allocation3 + $0x138] sm:$0xff]  ;;  %v9411_v40 = vld [vmem:[#allocation3 + $0x150] sm:$0xff] }
 0x228   : > { %11052 = vst [vmem:[#allocation61_spill] sm:$0xff] %v9373_v11  ;;  %v2887_v13 = vmax.f32 %v2855_v42, 0.0  ;;  %v2853_v60 = vadd.f32 %v8927_v19, %v2814_v63  ;;  %6794 = vmatmul.mubr.msk.bf16.gmra.mxu1 %vm2888_vm6, %v9373_v11  ;;  %v3157_v28 = vrot.slane %v9358_v25, 1  ;;  %v3154_v42 = vrot.slane %v9376_v31, 1 }
 0x229   : > { %11053 = vst [vmem:[#allocation75_spill] sm:$0xff] %v9378_v1  ;;  %11054 = vst [vmem:[#allocation29_spill] sm:$0xff] %v9386_v21  ;;  %6797 = vmatprep.mubr.msk.bf16.mxu1 %vm2888_vm6, %v9378_v1  ;;  %6835 = vmatprep.mubr.msk.bf16.mxu0 %vm2888_vm6, %v9386_v21  ;;  %v3153_v19 = vsel %vm601_vm3, %v3151_v47, %v3152_v43  ;;  %v3159_v1 = vrot.slane %v9388_v7, 1  ;;  %v9413_v21 = vld [vmem:[#allocation3 + $0x158] sm:$0xff]  ;;  %v3166_v26 = vrot.slane %v9411_v40, 1  ;;  %v11060_v45 = vrot.slane %v9017_v55, 2 }
 0x22a   : > { %2976 = vst.msk [vmem:[#allocation3 + $0x189] sm:$0xff] %vm2888_vm6, %v2887_v13  ;;  %v2885_v63 = vmax.f32 %v2853_v60, 0.0  ;;  %v3158_v6 = vsel %vm601_vm3, %v3156_v35, %v3157_v28  ;;  %v9409_v11 = vld [vmem:[#allocation3 + $0x140] sm:$0xff]  ;;  %v3155_v48 = vsel %vm601_vm3, %v3152_v43, %v3154_v42  ;;  %v3161_v13 = vrot.slane %v9395_v33, 1  ;;  %v9422_v16 = vld [vmem:[#allocation3 + $0x148] sm:$0x3] }
 0x22b   : > { %v9418_v47 = vpack.c.bf16 %v9409_v11, %v9395_v33  ;;  %v3162_v60 = vrot.slane %v9409_v11, 1  ;;  %v9424_v35 = vld [vmem:[#allocation3 + $0x160] sm:$0x3]  ;;  %v9427_v10 = vpack.c.bf16 %v3155_v48, %v3153_v19  ;;  %v3160_v41 = vsel %vm601_vm3, %v3157_v28, %v3159_v1 }
 0x22c   : > { %2974 = vst.msk [vmem:[#allocation3 + $0x171] sm:$0xff] %vm2888_vm6, %v2885_v63  ;;  %v9432_v39 = vpack.c.bf16 %v3160_v41, %v3158_v6  ;;  %v9436_v4 = vpack.c.bf16 %v9413_v21, %v9411_v40  ;;  %v3167_v51 = vrot.slane %v9413_v21, 1  ;;  %v3164_v28 = vrot.slane %v9422_v16, 1 }
 0x22d   : > { %11055 = vst [vmem:[#allocation77_spill] sm:$0xff] %v9418_v47  ;;  %11056 = vst [vmem:[#allocation62_spill] sm:$0xff] %v9427_v10  ;;  %v3163_v1 = vsel %vm601_vm3, %v3161_v13, %v3162_v60  ;;  %v3169_v19 = vrot.slane %v9424_v35, 1  ;;  %v11057_v43 = vrot.slane %v9045_v44, 2  ;;  %v11058_v42 = vrot.slane %v9021_v32, 2 }
 0x22e   : > { %v9440_v15 = vld [vmem:[#allocation3 + $0x168] sm:$0xff]  ;;  %v3168_v6 = vsel %vm601_vm3, %v3166_v26, %v3167_v51  ;;  %v3165_v13 = vsel %vm601_vm3, %v3162_v60, %v3164_v28  ;;  %v3659_v26 = vrot.slane %v9056_v30, 2  ;;  %v11061_v60 = vrot.slane %v9102_v58, 2 }
 0x22f   : > { %6836 = vmatmul.mubr.msk.bf16.gmra.mxu0 %vm2888_vm6, %v9418_v47  ;;  %v3171_v63 = vrot.slane %v9440_v15, 1  ;;  %v3658_v48 = vsel %vm1157_vm4, %v11058_v42, %v11057_v43  ;;  %v3170_v41 = vsel %vm601_vm3, %v3167_v51, %v3169_v19  ;;  %v11059_v47 = vrot.slane %v9037_v8, 2 }
 0x230   : > { %6798 = vmatmul.mubr.msk.bf16.gmra.mxu1 %vm2888_vm6, %v9427_v10  ;;  %6839 = vmatprep.mubr.msk.bf16.mxu0 %vm2888_vm6, %v9436_v4  ;;  %v9470_v43 = vpack.c.bf16 %v3165_v13, %v3163_v1  ;;  %v9472_v42 = vpack.c.bf16 %v3170_v41, %v3168_v6  ;;  %v3664_v10 = vrot.slane %v9069_v34, 2  ;;  %v11062_v51 = vrot.slane %v9086_v20, 2 }
 0x231   : > { %v3663_v32 = vsel %vm1157_vm4, %v11060_v45, %v11059_v47  ;;  %6801 = vmatprep.mubr.msk.bf16.mxu1 %vm2888_vm6, %v9432_v39  ;;  %v11063_v28 = vrot.slane %v9045_v44, 2  ;;  %v3669_v45 = vrot.slane %v9148_v38, 2  ;;  %v11064_v47 = vrot.slane %v9109_v54, 2 }
 0x232   : > { %v3668_v30 = vsel %vm1157_vm4, %v11062_v51, %v11061_v60  ;;  %v11065_v1 = vrot.slane %v9132_v59, 2  ;;  %v3674_v34 = vrot.slane %v9155_v2, 2  ;;  %v11066_v44 = vrot.slane %v9037_v8, 2 }
 0x233   : > { %v3660_v55 = vsel %vm1157_vm4, %v11063_v28, %v3659_v26  ;;  %v9490_v41 = vld [vmem:[#allocation3 + $0x170] sm:$0xff]  ;;  %v9492_v6 = vld [vmem:[#allocation3 + $0x178] sm:$0x3]  ;;  %v11067_v38 = vrot.slane %v9164_v17, 2  ;;  %v11068_v26 = vrot.slane %v9170_v53, 2  ;;  %v3679_v60 = vrot.slane %v9211_v9, 2 }
 0x234   : > { %v3673_v19 = vsel %vm1157_vm4, %v11065_v1, %v11064_v47  ;;  %v9494_v20 = vpack.c.bf16 %v3660_v55, %v3658_v48  ;;  %v3665_v13 = vsel %vm1157_vm4, %v11066_v44, %v3664_v10  ;;  %v9507_v2 = vpack.c.bf16 %v9490_v41, %v9440_v15 }
 0x235   : > { %v3678_v59 = vsel %vm1157_vm4, %v11068_v26, %v11067_v38  ;;  %v3172_v51 = vrot.slane %v9490_v41, 1  ;;  %v3727_v48 = vrot.slane %v9490_v41, 2  ;;  %v3174_v8 = vrot.slane %v9492_v6, 1  ;;  %v11105_v41 = vld [vmem:[#allocation56_spill] sm:$0xff] }
 0x236   : > { %v9512_v28 = vpack.c.bf16 %v3665_v13, %v3663_v32  ;;  %v11069_v10 = vrot.slane %v9102_v58, 2  ;;  %v11070_v55 = vmov %v11064_v47  ;;  %v11071_v47 = vmov %v11067_v38 }
 0x237   : > { %v3675_v9 = vsel %vm1157_vm4, %v11070_v55, %v3674_v34  ;;  %v3680_v1 = vsel %vm1157_vm4, %v11071_v47, %v3679_v60  ;;  %v3173_v44 = vsel %vm601_vm3, %v3171_v63, %v3172_v51  ;;  %v3175_v38 = vsel %vm601_vm3, %v3172_v51, %v3174_v8  ;;  %6840 = vmatmul.mubr.msk.bf16.gmra.mxu0 %vm2888_vm6, %v9507_v2 }
 0x238   : > { %v3670_v53 = vsel %vm1157_vm4, %v11069_v10, %v3669_v45  ;;  %v9527_v32 = vpack.c.bf16 %v3675_v9, %v3673_v19  ;;  %v9531_v58 = vpack.c.bf16 %v3175_v38, %v3173_v44  ;;  %v9533_v54 = vpack.c.bf16 %v3680_v1, %v3678_v59  ;;  %6802 = vmatmul.mubr.msk.bf16.gmra.mxu1 %vm2888_vm6, %v9470_v43 }
 0x239   : > { %v9525_v26 = vpack.c.bf16 %v3670_v53, %v3668_v30  ;;  %v11072_v45 = vrot.slane %v9188_v22, 2  ;;  %v11073_v17 = vrot.slane %v9197_v49, 2  ;;  %v3684_v63 = vrot.slane %v9217_v50, 2  ;;  %6879 = vmatprep.mubr.msk.bf16.mxu0 %vm2888_vm6, %v9061_v57  ;;  %6805 = vmatprep.mubr.msk.bf16.mxu1 %vm2888_vm6, %v9472_v42 }
 0x23a   : > { %v11074_v30 = vrot.slane %v9225_v0, 2  ;;  %v11075_v19 = vrot.slane %v9233_v37, 2  ;;  %v3689_v59 = vrot.slane %v9268_v18, 2  ;;  %v11076_v49 = vrot.slane %v9253_v23, 2 }
 0x23b   : > { %v3683_v34 = vsel %vm1157_vm4, %v11073_v17, %v11072_v45  ;;  %v11077_v60 = vrot.slane %v9260_v62, 2  ;;  %v3694_v51 = vrot.slane %v9280_v46, 2  ;;  %v11078_v57 = vmov %v11072_v45 }
 0x23c   : > { %v3688_v13 = vsel %vm1157_vm4, %v11075_v19, %v11074_v30  ;;  %v3685_v8 = vsel %vm1157_vm4, %v11078_v57, %v3684_v63  ;;  %v11079_v37 = vrot.slane %v9289_v12, 2  ;;  %v11080_v10 = vrot.slane %v9296_v3, 2 }
 0x23d   : > { %v3693_v50 = vsel %vm1157_vm4, %v11077_v60, %v11076_v49  ;;  %v3699_v53 = vrot.slane %v9336_v27, 2  ;;  %v11081_v62 = vrot.slane %v9311_v24, 2  ;;  %v11082_v55 = vrot.slane %v9320_v56, 2 }
 0x23e   : > { %v3698_v18 = vsel %vm1157_vm4, %v11080_v10, %v11079_v37  ;;  %v9573_v9 = vpack.c.bf16 %v3685_v8, %v3683_v34  ;;  %v11083_v22 = vmov %v11074_v30  ;;  %v11084_v1 = vmov %v11076_v49  ;;  %v9627_v10 = vld [vmem:[#allocation3 + $0x180] sm:$0xff] }
 0x23f   : > { %v3703_v46 = vsel %vm1157_vm4, %v11082_v55, %v11081_v62  ;;  %v3690_v47 = vsel %vm1157_vm4, %v11083_v22, %v3689_v59  ;;  %v3695_v3 = vsel %vm1157_vm4, %v11084_v1, %v3694_v51  ;;  %v3704_v44 = vrot.slane %v9341_v29, 2  ;;  %v9614_v51 = vld [vmem:[#allocation3 + $0x188] sm:$0xff]  ;;  %6880 = vmatmul.mubr.msk.bf16.vlgmr.msra.gmra.mxu0 %vm2888_vm6, %v9050_v5  ;;  %v9655_v22 = vld [vmem:[#allocation3 + $0x190] sm:$0x3]  ;;  %v11101_v1 = vld [vmem:[#allocation81_spill] sm:$0xff] }
 0x240   : > { %v9582_v38 = vpack.c.bf16 %v3690_v47, %v3688_v13  ;;  %v9584_v27 = vpack.c.bf16 %v3695_v3, %v3693_v50  ;;  %v11085_v56 = vmov %v11079_v37  ;;  %v11086_v17 = vrot.slane %v9348_v61, 2  ;;  %6806 = vmatmul.mubr.msk.bf16.gmra.mxu1 %vm2888_vm6, %v9531_v58  ;;  %v11100_v47 = vld [vmem:[#allocation84_spill] sm:$0xff] }
 0x241   : > { %v3700_v45 = vsel %vm1157_vm4, %v11085_v56, %v3699_v53  ;;  %v11087_v0 = vrot.slane %v9356_v52, 2  ;;  %v11088_v23 = vmov %v11081_v62  ;;  %v3709_v30 = vrot.slane %v9376_v31, 2 }
 0x242   : > { %v9594_v63 = vpack.c.bf16 %v3700_v45, %v3698_v18  ;;  %v3705_v29 = vsel %vm1157_vm4, %v11088_v23, %v3704_v44  ;;  %v11089_v19 = vrot.slane %v9358_v25, 2  ;;  %v11090_v12 = vrot.slane %v9368_v14, 2 }
 0x243   : > { %v3708_v34 = vsel %vm1157_vm4, %v11087_v0, %v11086_v17  ;;  %v9605_v59 = vpack.c.bf16 %v3705_v29, %v3703_v46  ;;  %v3714_v52 = vrot.slane %v9388_v7, 2  ;;  %v11091_v49 = vrot.slane %v9409_v11, 2 }
 0x244   : > { %v3713_v13 = vsel %vm1157_vm4, %v11090_v12, %v11089_v19  ;;  %v11092_v60 = vrot.slane %v9395_v33, 2  ;;  %v3719_v50 = vrot.slane %v9422_v16, 2  ;;  %v4453_v31 = vsel %vm3274_vm5, %v9074_v36, 0 }
 0x245   : > { %v11093_v14 = vmov %v11086_v17  ;;  %v11094_v8 = vrot.slane %v9413_v21, 2  ;;  %v11095_v7 = vrot.slane %v9411_v40, 2  ;;  %v3724_v33 = vrot.slane %v9424_v35, 2  ;;  %v6088_v35 = vld [vmem:[%s10708_s4 + $0x1c] sm:$0xf]  ;;  %6946 = vmatpush3.bf16.msra.mxu0 %v4453_v31  ;;  %v11112_v31 = vld [vmem:[#allocation29_spill] sm:$0xff] }
 0x246   : > { %v3718_v24 = vsel %vm1157_vm4, %v11092_v60, %v11091_v49  ;;  %v3710_v57 = vsel %vm1157_vm4, %v11093_v14, %v3709_v30  ;;  %v3726_v16 = vrot.slane %v9440_v15, 2  ;;  %v11096_v61 = vmov %v11089_v19  ;;  %v11098_v15 = vld [vmem:[#allocation36_spill] sm:$0xff]  ;;  %7134 = vmatprep.subr.msk.bf16.mxu0 %vm3274_vm5, %v6088_v35  ;;  %v11109_v60 = vld [vmem:[#allocation58_spill] sm:$0xff]  ;;  %v11113_v14 = vld [vmem:[#allocation77_spill] sm:$0xff] }
 0x247   : > { %v3723_v37 = vsel %vm1157_vm4, %v11095_v7, %v11094_v8  ;;  %v9632_v36 = vpack.c.bf16 %v3710_v57, %v3708_v34  ;;  %v3715_v18 = vsel %vm1157_vm4, %v11096_v61, %v3714_v52  ;;  %v11097_v53 = vmov %v11091_v49  ;;  %6883 = vmatprep.mubr.msk.bf16.mxu0 %vm2888_vm6, %v11098_v15  ;;  %v11103_v30 = vld [vmem:[#allocation32_spill] sm:$0xff]  ;;  %v11107_v52 = vld [vmem:[#allocation57_spill] sm:$0xff]  ;;  %v11116_v61 = vld [vmem:[#allocation43_spill] sm:$0xff] }
 0x248   : > { %v3720_v40 = vsel %vm1157_vm4, %v11097_v53, %v3719_v50  ;;  %v9647_v62 = vpack.c.bf16 %v3715_v18, %v3713_v13  ;;  %v11099_v25 = vmov %v11094_v8  ;;  %v4231_v46 = vrot.slane %v9614_v51, 1  ;;  %v6071_v13 = vld [vmem:[%s10708_s4 + $0x18] sm:$0xf]  ;;  %v11108_v49 = vld [vmem:[#allocation28_spill] sm:$0xff]  ;;  %v11117_v18 = vld [vmem:[#allocation66_spill] sm:$0xff] }
 0x249   : > { %v9649_v55 = vpack.c.bf16 %v3720_v40, %v3718_v24  ;;  %v3725_v11 = vsel %vm1157_vm4, %v11099_v25, %v3724_v33  ;;  %v11102_v3 = vpack.c.bf16 %v11100_v47, %v11101_v1  ;;  %v4230_v56 = vrot.slane %v9627_v10, 1  ;;  %v11110_v24 = vld [vmem:[#allocation46_spill] sm:$0xff]  ;;  %v11111_v50 = vld [vmem:[#allocation60_spill] sm:$0xff]  ;;  %v11121_v25 = vld [vmem:[#allocation59_spill] sm:$0xff] }
 0x24a   : > { %v9661_v44 = vpack.c.bf16 %v3725_v11, %v3723_v37  ;;  %v3728_v21 = vsel %vm1157_vm4, %v3726_v16, %v3727_v48  ;;  %v3729_v45 = vrot.slane %v9492_v6, 2  ;;  %v4233_v0 = vrot.slane %v9655_v22, 1  ;;  %v11104_v6 = vld [vmem:[#allocation55_spill] sm:$0xff]  ;;  %v5365_v7 = vld [vmem:[%s10711_s7] sm:$0x3]  ;;  %v11114_v37 = vld [vmem:[#allocation25_spill] sm:$0xff] }
 0x24b   : > { %6845 = vmatprep.mubr.msk.bf16.mxu1 %vm2888_vm6, %v11102_v3  ;;  %v4232_v17 = vsel %vm601_vm3, %v4230_v56, %v4231_v46  ;;  %v4244_v19 = vsel %vm3274_vm5, %v11103_v30, 0  ;;  %6884 = vmatmul.mubr.msk.bf16.gmra.mxu0 %vm2888_vm6, %v11104_v6  ;;  %v9735_v57 = vpack.c.bf16 %v9614_v51, %v9627_v10  ;;  %v4867_v8 = vsel %vm3274_vm5, %v6088_v35, 0  ;;  %v6105_v33 = vld [vmem:[%s10708_s4 + $0x20] sm:$0xf]  ;;  %v11115_v16 = vld [vmem:[#allocation42_spill] sm:$0xff]  ;;  %v11122_v11 = vld [vmem:[#allocation61_spill] sm:$0xff] }
 0x24c   : > { %v3730_v34 = vsel %vm1157_vm4, %v3727_v48, %v3729_v45  ;;  %v4234_v29 = vsel %vm601_vm3, %v4231_v46, %v4233_v0  ;;  %6846 = vmatmul.mubr.msk.bf16.vlgmr.msra.gmra.mxu1 %vm2888_vm6, %v9494_v20  ;;  %6887 = vmatprep.mubr.msk.bf16.mxu0 %vm2888_vm6, %v11105_v41  ;;  %v11106_v48 = vld [vmem:[#allocation68_spill] sm:$0xff]  ;;  %v11118_v53 = vld [vmem:[#allocation50_spill] sm:$0xff]  ;;  %v11123_v46 = vld [vmem:[#allocation75_spill] sm:$0xff]  ;;  %v4440_v1 = vrot.slane %v9614_v51, 2  ;;  %v4442_v3 = vrot.slane %v9655_v22, 2 }
 0x24d   : > { %v9674_v23 = vpack.c.bf16 %v3730_v34, %v3728_v21  ;;  %v9679_v12 = vpack.c.bf16 %v4234_v29, %v4232_v17  ;;  %6912 = vmatpush3.bf16.msra.mxu1 %v4244_v19  ;;  %6849 = vmatprep.mubr.msk.bf16.mxu1 %vm2888_vm6, %v9512_v28  ;;  %v11119_v40 = vld [vmem:[#allocation70_spill] sm:$0xff]  ;;  %v11120_v35 = vld [vmem:[#allocation72_spill] sm:$0xff]  ;;  %v4439_v56 = vrot.slane %v9627_v10, 2  ;;  %v5415_v0 = vsel %vm780_vm0, %v5365_v7, 0 }
 0x24e   : > { %7133 = vmatprep.subr.msk.bf16.mxu1 %vm3274_vm5, %v6071_v13  ;;  %v11124_v47 = vld [vmem:[#allocation62_spill] sm:$0xff]  ;;  %v4443_v51 = vsel %vm1157_vm4, %v4440_v1, %v4442_v3 }
 0x24f   : > { %v4441_v21 = vsel %vm1157_vm4, %v4439_v56, %v4440_v1 }
 0x250   : > { %v9816_v45 = vpack.c.bf16 %v4443_v51, %v4441_v21 }
 0x253   : > { %6888 = vmatmul.mubr.msk.bf16.gmra.mxu0 %vm2888_vm6, %v11106_v48 }
 0x254   : > { %6850 = vmatmul.mubr.msk.bf16.gmra.mxu1 %vm2888_vm6, %v9525_v26  ;;  %6891 = vmatprep.mubr.msk.bf16.mxu0 %vm2888_vm6, %v11107_v52 }
 0x255   : > { %6853 = vmatprep.mubr.msk.bf16.mxu1 %vm2888_vm6, %v9527_v32 }
 0x25b   : > { %6892 = vmatmul.mubr.msk.bf16.gmra.mxu0 %vm2888_vm6, %v11108_v49 }
 0x25c   : > { %6854 = vmatmul.mubr.msk.bf16.gmra.mxu1 %vm2888_vm6, %v9533_v54  ;;  %6895 = vmatprep.mubr.msk.bf16.mxu0 %vm2888_vm6, %v11109_v60 }
 0x25d   : > { %6857 = vmatprep.mubr.msk.bf16.mxu1 %vm2888_vm6, %v9573_v9 }
 0x263   : > { %6896 = vmatmul.mubr.msk.bf16.gmra.mxu0 %vm2888_vm6, %v11110_v24 }
 0x264   : > { %6858 = vmatmul.mubr.msk.bf16.gmra.mxu1 %vm2888_vm6, %v9582_v38  ;;  %6899 = vmatprep.mubr.msk.bf16.mxu0 %vm2888_vm6, %v11111_v50 }
 0x265   : > { %6861 = vmatprep.mubr.msk.bf16.mxu1 %vm2888_vm6, %v9584_v27 }
 0x26b   : > { %6900 = vmatmul.mubr.msk.bf16.gmra.mxu0 %vm2888_vm6, %v11112_v31 }
 0x26c   : > { %6862 = vmatmul.mubr.msk.bf16.gmra.mxu1 %vm2888_vm6, %v9594_v63  ;;  %6903 = vmatprep.mubr.msk.bf16.mxu0 %vm2888_vm6, %v11113_v14 }
 0x26d   : > { %6865 = vmatprep.mubr.msk.bf16.mxu1 %vm2888_vm6, %v9605_v59 }
 0x273   : > { %6904 = vmatmul.mubr.msk.bf16.gmra.mxu0 %vm2888_vm6, %v9436_v4 }
 0x274   : > { %6866 = vmatmul.mubr.msk.bf16.gmra.mxu1 %vm2888_vm6, %v9632_v36  ;;  %6907 = vmatprep.mubr.msk.bf16.mxu0 %vm2888_vm6, %v9507_v2 }
 0x275   : > { %6869 = vmatprep.mubr.msk.bf16.mxu1 %vm2888_vm6, %v9647_v62 }
 0x27b   : > { %6908 = vmatmul.mubr.msk.bf16.gmra.mxu0 %vm2888_vm6, %v9735_v57 }
 0x27c   : > { %6870 = vmatmul.mubr.msk.bf16.gmra.mxu1 %vm2888_vm6, %v9649_v55  ;;  %6947 = vmatprep.mubr.msk.bf16.mxu0 %vm2888_vm6, %v9494_v20  ;;  %v4655_v20 = vsel %vm3274_vm5, %v6071_v13, 0 }
 0x27d   : > { %6873 = vmatprep.mubr.msk.bf16.mxu1 %vm2888_vm6, %v9661_v44 }
 0x283   : > { %6948 = vmatmul.mubr.msk.bf16.vlgmr.msra.gmra.mxu0 %vm2888_vm6, %v9512_v28 }
 0x284   : > { %6874 = vmatmul.mubr.msk.bf16.gmra.mxu1 %vm2888_vm6, %v9674_v23  ;;  %6951 = vmatprep.mubr.msk.bf16.mxu0 %vm2888_vm6, %v9525_v26 }
 0x285   : > { %6913 = vmatprep.mubr.msk.bf16.mxu1 %vm2888_vm6, %v11114_v37  ;;  %7014 = vmatpush3.bf16.msra.mxu0 %v4867_v8 }
 0x286   : > { %7136 = vmatprep.subr.msk.bf16.mxu0 %vm780_vm0, %v5365_v7 }
 0x28b   : > { %6952 = vmatmul.mubr.msk.bf16.gmra.mxu0 %vm2888_vm6, %v9527_v32 }
 0x28c   : > { %6914 = vmatmul.mubr.msk.bf16.vlgmr.msra.gmra.mxu1 %vm2888_vm6, %v11115_v16  ;;  %6955 = vmatprep.mubr.msk.bf16.mxu0 %vm2888_vm6, %v9533_v54 }
 0x28d   : > { %6980 = vmatpush3.bf16.msra.mxu1 %v4655_v20  ;;  %6917 = vmatprep.mubr.msk.bf16.mxu1 %vm2888_vm6, %v11116_v61 }
 0x28e   : > { %7135 = vmatprep.subr.msk.bf16.mxu1 %vm3274_vm5, %v6105_v33 }
 0x293   : > { %6956 = vmatmul.mubr.msk.bf16.gmra.mxu0 %vm2888_vm6, %v9573_v9 }
 0x294   : > { %6918 = vmatmul.mubr.msk.bf16.gmra.mxu1 %vm2888_vm6, %v11117_v18  ;;  %6959 = vmatprep.mubr.msk.bf16.mxu0 %vm2888_vm6, %v9582_v38 }
 0x295   : > { %6921 = vmatprep.mubr.msk.bf16.mxu1 %vm2888_vm6, %v11118_v53 }
 0x29b   : > { %6960 = vmatmul.mubr.msk.bf16.gmra.mxu0 %vm2888_vm6, %v9584_v27 }
 0x29c   : > { %6922 = vmatmul.mubr.msk.bf16.gmra.mxu1 %vm2888_vm6, %v11119_v40  ;;  %6963 = vmatprep.mubr.msk.bf16.mxu0 %vm2888_vm6, %v9594_v63 }
 0x29d   : > { %6925 = vmatprep.mubr.msk.bf16.mxu1 %vm2888_vm6, %v11120_v35 }
 0x2a3   : > { %6964 = vmatmul.mubr.msk.bf16.gmra.mxu0 %vm2888_vm6, %v9605_v59 }
 0x2a4   : > { %6926 = vmatmul.mubr.msk.bf16.gmra.mxu1 %vm2888_vm6, %v11121_v25  ;;  %6967 = vmatprep.mubr.msk.bf16.mxu0 %vm2888_vm6, %v9632_v36 }
 0x2a5   : > { %6929 = vmatprep.mubr.msk.bf16.mxu1 %vm2888_vm6, %v11122_v11 }
 0x2ab   : > { %6968 = vmatmul.mubr.msk.bf16.gmra.mxu0 %vm2888_vm6, %v9647_v62 }
 0x2ac   : > { %6930 = vmatmul.mubr.msk.bf16.gmra.mxu1 %vm2888_vm6, %v11123_v46  ;;  %6971 = vmatprep.mubr.msk.bf16.mxu0 %vm2888_vm6, %v9649_v55 }
 0x2ad   : > { %6933 = vmatprep.mubr.msk.bf16.mxu1 %vm2888_vm6, %v11124_v47 }
 0x2b3   : > { %6972 = vmatmul.mubr.msk.bf16.gmra.mxu0 %vm2888_vm6, %v9661_v44 }
 0x2b4   : > { %6934 = vmatmul.mubr.msk.bf16.gmra.mxu1 %vm2888_vm6, %v9432_v39  ;;  %6975 = vmatprep.mubr.msk.bf16.mxu0 %vm2888_vm6, %v9674_v23 }
 0x2b5   : > { %6937 = vmatprep.mubr.msk.bf16.mxu1 %vm2888_vm6, %v9470_v43 }
 0x2bb   : > { %6976 = vmatmul.mubr.msk.bf16.gmra.mxu0 %vm2888_vm6, %v9816_v45 }
 0x2bc   : > { %6938 = vmatmul.mubr.msk.bf16.gmra.mxu1 %vm2888_vm6, %v9472_v42  ;;  %7015 = vmatprep.mubr.msk.bf16.mxu0 %vm2888_vm6, %v11115_v16  ;;  %v5076_v16 = vsel %vm3274_vm5, %v6105_v33, 0 }
 0x2bd   : > { %6941 = vmatprep.mubr.msk.bf16.mxu1 %vm2888_vm6, %v9531_v58  ;;  %v6813_v10 = vpop.f32.mrf.mxu0 }
 0x2bf   : > { %v3524_v22 = vpop.f32.mrf.mxu0 }
 0x2c1   : > { %v6814_v17 = vpop.f32.mrf.mxu0 }
 0x2c3   : > { %7016 = vmatmul.mubr.msk.bf16.vlgmr.msra.gmra.mxu0 %vm2888_vm6, %v11116_v61  ;;  %v6779_v34 = vpop.f32.mrf.mxu1  ;;  %v3527_v29 = vpop.f32.mrf.mxu0 }
 0x2c4   : > { %6942 = vmatmul.mubr.msk.bf16.gmra.mxu1 %vm2888_vm6, %v9679_v12  ;;  %7019 = vmatprep.mubr.msk.bf16.mxu0 %vm2888_vm6, %v11117_v18  ;;  %v9835_v30 = vadd.f32 %v6813_v10, %v6779_v34 }
 0x2c5   : > { %6981 = vmatprep.mubr.msk.bf16.mxu1 %vm2888_vm6, %v9050_v5  ;;  %7082 = vmatpush3.bf16.msra.mxu0 %v5415_v0  ;;  %v3312_v19 = vpop.f32.mrf.mxu1  ;;  %v6817_v13 = vpop.f32.mrf.mxu0 }
 0x2c6   : > { %v9837_v8 = vadd.f32 %v3524_v22, %v3312_v19 }
 0x2c7   : > { %v6780_v7 = vpop.f32.mrf.mxu1  ;;  %v3540_v37 = vpop.f32.mrf.mxu0 }
 0x2c8   : > { %v9839_v20 = vadd.f32 %v6814_v17, %v6780_v7 }
 0x2c9   : > { %v3315_v61 = vpop.f32.mrf.mxu1  ;;  %v6818_v18 = vpop.f32.mrf.mxu0 }
 0x2ca   : > { %v9844_v1 = vadd.f32 %v3527_v29, %v3315_v61 }
 0x2cb   : > { %7020 = vmatmul.mubr.msk.bf16.gmra.mxu0 %vm2888_vm6, %v11118_v53  ;;  %v3543_v5 = vpop.f32.mrf.mxu0 }
 0x2cc   : > { %6982 = vmatmul.mubr.msk.bf16.vlgmr.msra.gmra.mxu1 %vm2888_vm6, %v11098_v15  ;;  %7023 = vmatprep.mubr.msk.bf16.mxu0 %vm2888_vm6, %v11119_v40 }
 0x2cd   : > { %7048 = vmatpush3.bf16.msra.mxu1 %v5076_v16  ;;  %6985 = vmatprep.mubr.msk.bf16.mxu1 %vm2888_vm6, %v11104_v6  ;;  %v6821_v3 = vpop.f32.mrf.mxu0  ;;  %v6783_v33 = vpop.f32.mrf.mxu1 }
 0x2ce   : > { %v9852_v56 = vadd.f32 %v6817_v13, %v6783_v33 }
 0x2cf   : > { %v3556_v21 = vpop.f32.mrf.mxu0  ;;  %v3328_v51 = vpop.f32.mrf.mxu1 }
 0x2d0   : > { %v9854_v53 = vadd.f32 %v3540_v37, %v3328_v51 }
 0x2d1   : > { %v6822_v10 = vpop.f32.mrf.mxu0  ;;  %v6784_v22 = vpop.f32.mrf.mxu1 }
 0x2d2   : > { %v9860_v15 = vadd.f32 %v6818_v18, %v6784_v22  ;;  %v9910_v22 = vld [vmem:[#allocation3 + $0x198] sm:$0xff] }
 0x2d3   : > { %7024 = vmatmul.mubr.msk.bf16.gmra.mxu0 %vm2888_vm6, %v11120_v35  ;;  %v3559_v6 = vpop.f32.mrf.mxu0  ;;  %v3331_v40 = vpop.f32.mrf.mxu1 }
 0x2d4   : > { %6986 = vmatmul.mubr.msk.bf16.gmra.mxu1 %vm2888_vm6, %v11105_v41  ;;  %7027 = vmatprep.mubr.msk.bf16.mxu0 %vm2888_vm6, %v11121_v25  ;;  %v9866_v17 = vadd.f32 %v3543_v5, %v3331_v40  ;;  %v9914_v40 = vld [vmem:[#allocation3 + $0x1a8] sm:$0x3] }
 0x2d5   : > { %6989 = vmatprep.mubr.msk.bf16.mxu1 %vm2888_vm6, %v11106_v48 }
 0x2d6   : > { %v6825_v0 = vpop.f32.mrf.mxu0 }
 0x2d7   : > { %v6787_v34 = vpop.f32.mrf.mxu1 }
 0x2d8   : > { %v9868_v29 = vadd.f32 %v6821_v3, %v6787_v34  ;;  %v3572_v35 = vpop.f32.mrf.mxu0 }
 0x2d9   : > { %v3344_v19 = vpop.f32.mrf.mxu1 }
 0x2da   : > { %v9874_v41 = vadd.f32 %v3556_v21, %v3344_v19  ;;  %v6826_v48 = vpop.f32.mrf.mxu0  ;;  %v4856_v19 = vrot.slane %v9914_v40, 1 }
 0x2db   : > { %7028 = vmatmul.mubr.msk.bf16.gmra.mxu0 %vm2888_vm6, %v11122_v11  ;;  %v6788_v25 = vpop.f32.mrf.mxu1 }
 0x2dc   : > { %6990 = vmatmul.mubr.msk.bf16.gmra.mxu1 %vm2888_vm6, %v11107_v52  ;;  %7031 = vmatprep.mubr.msk.bf16.mxu0 %vm2888_vm6, %v11123_v46  ;;  %v9880_v13 = vadd.f32 %v6822_v10, %v6788_v25  ;;  %v3575_v7 = vpop.f32.mrf.mxu0 }
 0x2dd   : > { %6993 = vmatprep.mubr.msk.bf16.mxu1 %vm2888_vm6, %v11108_v49  ;;  %v3347_v37 = vpop.f32.mrf.mxu1 }
 0x2de   : > { %v9882_v16 = vadd.f32 %v3559_v6, %v3347_v37  ;;  %v9912_v6 = vld [vmem:[#allocation3 + $0x1a0] sm:$0xff] }
 0x2df   : > { %v6829_v61 = vpop.f32.mrf.mxu0 }
 0x2e0   : > { %v6791_v11 = vpop.f32.mrf.mxu1 }
 0x2e1   : > { %v9884_v18 = vadd.f32 %v6825_v0, %v6791_v11  ;;  %v3588_v49 = vpop.f32.mrf.mxu0 }
 0x2e2   : > { %v3360_v52 = vpop.f32.mrf.mxu1 }
 0x2e3   : > { %7032 = vmatmul.mubr.msk.bf16.gmra.mxu0 %vm2888_vm6, %v11124_v47  ;;  %v9894_v46 = vadd.f32 %v3572_v35, %v3360_v52  ;;  %v6830_v3 = vpop.f32.mrf.mxu0  ;;  %v4853_v35 = vrot.slane %v9910_v22, 1 }
 0x2e4   : > { %6994 = vmatmul.mubr.msk.bf16.gmra.mxu1 %vm2888_vm6, %v11109_v60  ;;  %7035 = vmatprep.mubr.msk.bf16.mxu0 %vm2888_vm6, %v9432_v39  ;;  %v6792_v5 = vpop.f32.mrf.mxu1 }
 0x2e5   : > { %6997 = vmatprep.mubr.msk.bf16.mxu1 %vm2888_vm6, %v11110_v24  ;;  %v9896_v33 = vadd.f32 %v6826_v48, %v6792_v5  ;;  %v3591_v51 = vpop.f32.mrf.mxu0 }
 0x2e6   : > { %v3363_v21 = vpop.f32.mrf.mxu1 }
 0x2e7   : > { %v9898_v47 = vadd.f32 %v3575_v7, %v3363_v21  ;;  %v6833_v10 = vpop.f32.mrf.mxu0 }
 0x2e8   : > { %v6795_v60 = vpop.f32.mrf.mxu1 }
 0x2e9   : > { %v9906_v39 = vadd.f32 %v6829_v61, %v6795_v60  ;;  %v3604_v24 = vpop.f32.mrf.mxu0 }
 0x2eb   : > { %7036 = vmatmul.mubr.msk.bf16.gmra.mxu0 %vm2888_vm6, %v9470_v43  ;;  %v3376_v43 = vpop.f32.mrf.mxu1  ;;  %v6834_v34 = vpop.f32.mrf.mxu0 }
 0x2ec   : > { %6998 = vmatmul.mubr.msk.bf16.gmra.mxu1 %vm2888_vm6, %v11111_v50  ;;  %7039 = vmatprep.mubr.msk.bf16.mxu0 %vm2888_vm6, %v9472_v42  ;;  %v9916_v0 = vadd.f32 %v3588_v49, %v3376_v43  ;;  %v4854_v42 = vrot.slane %v9912_v6, 1  ;;  %v11126_v43 = vld [vmem:[#allocation5_spill] sm:$0xff] }
 0x2ed   : > { %7001 = vmatprep.mubr.msk.bf16.mxu1 %vm2888_vm6, %v11112_v31  ;;  %v6796_v50 = vpop.f32.mrf.mxu1  ;;  %v3607_v31 = vpop.f32.mrf.mxu0 }
 0x2ee   : > { %v9921_v48 = vadd.f32 %v6830_v3, %v6796_v50  ;;  %v4855_v61 = vsel %vm601_vm3, %v4853_v35, %v4854_v42  ;;  %v4857_v52 = vsel %vm601_vm3, %v4854_v42, %v4856_v19 }
 0x2ef   : > { %v3379_v25 = vpop.f32.mrf.mxu1  ;;  %v6837_v37 = vpop.f32.mrf.mxu0 }
 0x2f0   : > { %v9923_v7 = vadd.f32 %v3591_v51, %v3379_v25  ;;  %v4860_v51 = vpack.c.bf16 %v4857_v52, %v4855_v61  ;;  %v11127_v61 = vld [vmem:[#allocation10_spill] sm:$0xff]  ;;  %v11128_v52 = vld [vmem:[#allocation11_spill] sm:$0xff] }
 0x2f1   : > { %v6799_v11 = vpop.f32.mrf.mxu1  ;;  %v3620_v5 = vpop.f32.mrf.mxu0 }
 0x2f2   : > { %v9933_v49 = vadd.f32 %v6833_v10, %v6799_v11 }
 0x2f3   : > { %7040 = vmatmul.mubr.msk.bf16.gmra.mxu0 %vm2888_vm6, %v9531_v58  ;;  %v3392_v3 = vpop.f32.mrf.mxu1  ;;  %v6838_v58 = vpop.f32.mrf.mxu0 }
 0x2f4   : > { %7002 = vmatmul.mubr.msk.bf16.gmra.mxu1 %vm2888_vm6, %v11113_v14  ;;  %7043 = vmatprep.mubr.msk.bf16.mxu0 %vm2888_vm6, %v9679_v12  ;;  %v9937_v21 = vadd.f32 %v3604_v24, %v3392_v3  ;;  %v11125_v14 = vld [vmem:[#allocation4_spill] sm:$0xff]  ;;  %v5350_v3 = vpack.c.bf16 %v11128_v52, %v11127_v61 }
 0x2f5   : > { %7005 = vmatprep.mubr.msk.bf16.mxu1 %vm2888_vm6, %v9436_v4  ;;  %v6800_v60 = vpop.f32.mrf.mxu1  ;;  %v5349_v50 = vpack.c.bf16 %v11126_v43, %v11125_v14  ;;  %v3623_v35 = vpop.f32.mrf.mxu0  ;;  %v11130_v14 = vld [vmem:[#allocation13_spill] sm:$0xff] }
 0x2f6   : > { %v9941_v12 = vadd.f32 %v6834_v34, %v6800_v60  ;;  %v4648_v60 = vpack.c.bf16 %v9912_v6, %v9910_v22 }
 0x2f7   : > { %v3395_v25 = vpop.f32.mrf.mxu1  ;;  %v6841_v10 = vpop.f32.mrf.mxu0 }
 0x2f8   : > { %v9943_v42 = vadd.f32 %v3607_v31, %v3395_v25 }
 0x2f9   : > { %v6803_v4 = vpop.f32.mrf.mxu1  ;;  %v3636_v34 = vpop.f32.mrf.mxu0 }
 0x2fa   : > { %v9949_v24 = vadd.f32 %v6837_v37, %v6803_v4 }
 0x2fb   : > { %7044 = vmatmul.mubr.msk.bf16.gmra.mxu0 %vm2888_vm6, %v4860_v51  ;;  %v3408_v19 = vpop.f32.mrf.mxu1  ;;  %v6842_v31 = vpop.f32.mrf.mxu0 }
 0x2fc   : > { %7006 = vmatmul.mubr.msk.bf16.gmra.mxu1 %vm2888_vm6, %v9507_v2  ;;  %7083 = vmatprep.mubr.msk.bf16.mxu0 %vm393_vm1, %v5349_v50  ;;  %v9953_v11 = vadd.f32 %v3620_v5, %v3408_v19  ;;  %v11129_v2 = vld [vmem:[#allocation12_spill] sm:$0xff] }
 0x2fd   : > { %7009 = vmatprep.mubr.msk.bf16.mxu1 %vm2888_vm6, %v9735_v57  ;;  %v6804_v51 = vpop.f32.mrf.mxu1  ;;  %v5351_v43 = vpack.c.bf16 %v11130_v14, %v11129_v2  ;;  %v3639_v50 = vpop.f32.mrf.mxu0  ;;  %v11136_v2 = vld [vmem:[#allocation19_spill] sm:$0xff] }
 0x2fe   : > { %v9961_v37 = vadd.f32 %v6838_v58, %v6804_v51 }
 0x2ff   : > { %v3411_v25 = vpop.f32.mrf.mxu1  ;;  %v6881_v4 = vpop.f32.mrf.mxu0 }
 0x300   : > { %11131 = vst [vmem:[#allocation63_spill] sm:$0xff] %v9961_v37  ;;  %v9963_v57 = vadd.f32 %v3623_v35, %v3411_v25  ;;  %v11135_v35 = vld [vmem:[#allocation18_spill] sm:$0xff] }
 0x301   : > { %v6807_v5 = vpop.f32.mrf.mxu1  ;;  %v4068_v61 = vpop.f32.mrf.mxu0  ;;  %v5352_v14 = vpack.c.bf16 %v11136_v2, %v11135_v35  ;;  %v11141_v35 = vld [vmem:[#allocation31_spill] sm:$0xff]  ;;  %v11142_v2 = vld [vmem:[#allocation33_spill] sm:$0xff] }
 0x302   : > { %11132 = vst [vmem:[#allocation64_spill] sm:$0xff] %v9963_v57  ;;  %v9968_v19 = vadd.f32 %v6841_v10, %v6807_v5  ;;  %v11138_v57 = vld [vmem:[#allocation21_spill] sm:$0xff] }
 0x303   : > { %7084 = vmatmul.mubr.msk.bf16.vlgmr.msra.gmra.mxu0 %vm393_vm1, %v5350_v3  ;;  %v3424_v58 = vpop.f32.mrf.mxu1  ;;  %v6882_v51 = vpop.f32.mrf.mxu0  ;;  %v11137_v3 = vld [vmem:[#allocation20_spill] sm:$0xff] }
 0x304   : > { %7010 = vmatmul.mubr.msk.bf16.gmra.mxu1 %vm2888_vm6, %v4648_v60  ;;  %7087 = vmatprep.mubr.msk.bf16.mxu0 %vm393_vm1, %v5351_v43  ;;  %11133 = vst [vmem:[#allocation65_spill] sm:$0xff] %v9968_v19  ;;  %v9972_v52 = vadd.f32 %v3636_v34, %v3424_v58  ;;  %v5353_v37 = vpack.c.bf16 %v11138_v57, %v11137_v3 }
 0x305   : > { %7049 = vmatprep.mubr.msk.bf16.mxu1 %vm2888_vm6, %v9512_v28  ;;  %v6808_v25 = vpop.f32.mrf.mxu1  ;;  %v4071_v43 = vpop.f32.mrf.mxu0 }
 0x306   : > { %11134 = vst [vmem:[#allocation40_spill] sm:$0xff] %v9972_v52  ;;  %v9978_v60 = vadd.f32 %v6842_v31, %v6808_v25  ;;  %v5354_v25 = vpack.c.bf16 %v11142_v2, %v11141_v35  ;;  %v11146_v35 = vld [vmem:[#allocation7_spill] sm:$0xff] }
 0x307   : > { %v3427_v10 = vpop.f32.mrf.mxu1 }
 0x308   : > { %11139 = vst [vmem:[#allocation79_spill] sm:$0xff] %v9978_v60  ;;  %v9980_v5 = vadd.f32 %v3639_v50, %v3427_v10  ;;  %v11143_v10 = vld [vmem:[#allocation34_spill] sm:$0xff] }
 0x30a   : > { %11140 = vst [vmem:[#allocation48_spill] sm:$0xff] %v9980_v5 }
 0x30b   : > { %v6885_v19 = vpop.f32.mrf.mxu0  ;;  %7088 = vmatmul.mubr.msk.bf16.gmra.mxu0 %vm393_vm1, %v5352_v14 }
 0x30c   : > { %v6847_v28 = vpop.f32.mrf.mxu1  ;;  %7050 = vmatmul.mubr.msk.bf16.vlgmr.msra.gmra.mxu1 %vm2888_vm6, %v9525_v26  ;;  %7091 = vmatprep.mubr.msk.bf16.mxu0 %vm393_vm1, %v5353_v37  ;;  %v11144_v26 = vld [vmem:[#allocation35_spill] sm:$0xff] }
 0x30d   : > { %v3995_v34 = vadd.f32 %v6847_v28, %v9835_v30  ;;  %7053 = vmatprep.mubr.msk.bf16.mxu1 %vm2888_vm6, %v9527_v32  ;;  %v4084_v31 = vpop.f32.mrf.mxu0  ;;  %v5355_v5 = vpack.c.bf16 %v11144_v26, %v11143_v10 }
 0x30e   : > { %v3866_v57 = vpop.f32.mrf.mxu1 }
 0x30f   : > { %v3993_v58 = vadd.f32 %v3866_v57, %v9837_v8  ;;  %v6886_v50 = vpop.f32.mrf.mxu0  ;;  %v9992_v14 = vadd.f32 %v6881_v4, %v3995_v34 }
 0x310   : > { %v6848_v3 = vpop.f32.mrf.mxu1 }
 0x311   : > { %v3996_v37 = vadd.f32 %v6848_v3, %v9839_v20  ;;  %v4087_v30 = vpop.f32.mrf.mxu0  ;;  %v9997_v28 = vadd.f32 %v4068_v61, %v3993_v58  ;;  %v11147_v3 = vld [vmem:[#allocation8_spill] sm:$0xff] }
 0x312   : > { %v3869_v32 = vpop.f32.mrf.mxu1 }
 0x313   : > { %v3994_v60 = vadd.f32 %v3869_v32, %v9844_v1  ;;  %v6889_v52 = vpop.f32.mrf.mxu0  ;;  %7092 = vmatmul.mubr.msk.bf16.gmra.mxu0 %vm393_vm1, %v5354_v25  ;;  %v10001_v8 = vadd.f32 %v6882_v51, %v3996_v37  ;;  %v11145_v51 = vld [vmem:[#allocation6_spill] sm:$0xff] }
 0x314   : > { %v6851_v57 = vpop.f32.mrf.mxu1  ;;  %7054 = vmatmul.mubr.msk.bf16.gmra.mxu1 %vm2888_vm6, %v9533_v54  ;;  %7095 = vmatprep.mubr.msk.bf16.mxu0 %vm393_vm1, %v5355_v5  ;;  %v5356_v2 = vpack.c.bf16 %v11146_v35, %v11145_v51  ;;  %v11148_v5 = vld [vmem:[#allocation9_spill] sm:$0xff]  ;;  %v11151_v35 = vld [vmem:[#allocation16_spill] sm:$0xff] }
 0x315   : > { %v3999_v4 = vadd.f32 %v6851_v57, %v9852_v56  ;;  %7057 = vmatprep.mubr.msk.bf16.mxu1 %vm2888_vm6, %v9573_v9  ;;  %v4100_v20 = vpop.f32.mrf.mxu0  ;;  %v10009_v61 = vadd.f32 %v4071_v43, %v3994_v60  ;;  %v5357_v10 = vpack.c.bf16 %v11148_v5, %v11147_v3 }
 0x316   : > { %v3882_v1 = vpop.f32.mrf.mxu1 }
 0x317   : > { %v3997_v34 = vadd.f32 %v3882_v1, %v9854_v53  ;;  %v6890_v58 = vpop.f32.mrf.mxu0  ;;  %v10014_v25 = vadd.f32 %v6885_v19, %v3999_v4  ;;  %v11150_v1 = vld [vmem:[#allocation15_spill] sm:$0xff] }
 0x318   : > { %v6852_v54 = vpop.f32.mrf.mxu1 }
 0x319   : > { %v4000_v56 = vadd.f32 %v6852_v54, %v9860_v15  ;;  %v4103_v26 = vpop.f32.mrf.mxu0  ;;  %v10019_v9 = vadd.f32 %v4084_v31, %v3997_v34 }
 0x31a   : > { %v3885_v60 = vpop.f32.mrf.mxu1 }
 0x31b   : > { %v3998_v43 = vadd.f32 %v3885_v60, %v9866_v17  ;;  %v6893_v37 = vpop.f32.mrf.mxu0  ;;  %7096 = vmatmul.mubr.msk.bf16.gmra.mxu0 %vm393_vm1, %v5356_v2  ;;  %v10023_v53 = vadd.f32 %v6886_v50, %v4000_v56  ;;  %v11149_v50 = vld [vmem:[#allocation14_spill] sm:$0xff]  ;;  %v11152_v2 = vld [vmem:[#allocation17_spill] sm:$0xff] }
 0x31c   : > { %v6855_v32 = vpop.f32.mrf.mxu1  ;;  %7058 = vmatmul.mubr.msk.bf16.gmra.mxu1 %vm2888_vm6, %v9582_v38  ;;  %7099 = vmatprep.mubr.msk.bf16.mxu0 %vm393_vm1, %v5357_v10  ;;  %v5358_v34 = vpack.c.bf16 %v11150_v1, %v11149_v50  ;;  %v5359_v54 = vpack.c.bf16 %v11152_v2, %v11151_v35  ;;  %v11156_v50 = vld [vmem:[#allocation30_spill] sm:$0xff] }
 0x31d   : > { %v4003_v19 = vadd.f32 %v6855_v32, %v9868_v29  ;;  %7061 = vmatprep.mubr.msk.bf16.mxu1 %vm2888_vm6, %v9584_v27  ;;  %v4116_v15 = vpop.f32.mrf.mxu0  ;;  %v10031_v31 = vadd.f32 %v4087_v30, %v3998_v43  ;;  %v11154_v32 = vld [vmem:[#allocation23_spill] sm:$0xff] }
 0x31e   : > { %v3898_v17 = vpop.f32.mrf.mxu1 }
 0x31f   : > { %v4001_v57 = vadd.f32 %v3898_v17, %v9874_v41  ;;  %v6894_v4 = vpop.f32.mrf.mxu0  ;;  %v10036_v51 = vadd.f32 %v6889_v52, %v4003_v19 }
 0x320   : > { %v6856_v38 = vpop.f32.mrf.mxu1 }
 0x321   : > { %v4004_v29 = vadd.f32 %v6856_v38, %v9880_v13  ;;  %v4119_v3 = vpop.f32.mrf.mxu0  ;;  %v10041_v27 = vadd.f32 %v4100_v20, %v4001_v57  ;;  %v11155_v57 = vld [vmem:[#allocation24_spill] sm:$0xff] }
 0x322   : > { %v3901_v30 = vpop.f32.mrf.mxu1  ;;  %v5361_v1 = vpack.c.bf16 %v11156_v50, %v11155_v57 }
 0x323   : > { %v4002_v5 = vadd.f32 %v3901_v30, %v9882_v16  ;;  %v6897_v10 = vpop.f32.mrf.mxu0  ;;  %7100 = vmatmul.mubr.msk.bf16.gmra.mxu0 %vm393_vm1, %v5358_v34  ;;  %v10045_v41 = vadd.f32 %v6890_v58, %v4004_v29  ;;  %v11153_v58 = vld [vmem:[#allocation22_spill] sm:$0xff] }
 0x324   : > { %v6859_v56 = vpop.f32.mrf.mxu1  ;;  %7062 = vmatmul.mubr.msk.bf16.gmra.mxu1 %vm2888_vm6, %v9594_v63  ;;  %7103 = vmatprep.mubr.msk.bf16.mxu0 %vm393_vm1, %v5359_v54  ;;  %v5360_v19 = vpack.c.bf16 %v11154_v32, %v11153_v58  ;;  %v11158_v30 = vld [vmem:[#allocation38_spill] sm:$0xff] }
 0x325   : > { %v4007_v52 = vadd.f32 %v6859_v56, %v9884_v18  ;;  %7065 = vmatprep.mubr.msk.bf16.mxu1 %vm2888_vm6, %v9605_v59  ;;  %v4132_v13 = vpop.f32.mrf.mxu0  ;;  %v10053_v20 = vadd.f32 %v4103_v26, %v4002_v5 }
 0x326   : > { %v3914_v16 = vpop.f32.mrf.mxu1 }
 0x327   : > { %v4005_v60 = vadd.f32 %v3914_v16, %v9894_v46  ;;  %v6898_v43 = vpop.f32.mrf.mxu0  ;;  %v10058_v17 = vadd.f32 %v6893_v37, %v4007_v52  ;;  %v11159_v52 = vld [vmem:[#allocation39_spill] sm:$0xff]  ;;  %v11160_v16 = vld [vmem:[#allocation41_spill] sm:$0xff] }
 0x328   : > { %v6860_v63 = vpop.f32.mrf.mxu1 }
 0x329   : > { %v4008_v18 = vadd.f32 %v6860_v63, %v9896_v33  ;;  %v4135_v34 = vpop.f32.mrf.mxu0  ;;  %v10063_v59 = vadd.f32 %v4116_v15, %v4005_v60  ;;  %v5363_v60 = vpack.c.bf16 %v11160_v16, %v11159_v52  ;;  %v11163_v52 = vld [vmem:[#allocation63_spill] sm:$0xff] }
 0x32a   : > { %v3917_v26 = vpop.f32.mrf.mxu1 }
 0x32b   : > { %v4006_v38 = vadd.f32 %v3917_v26, %v9898_v47  ;;  %v6901_v35 = vpop.f32.mrf.mxu0  ;;  %7104 = vmatmul.mubr.msk.bf16.gmra.mxu0 %vm393_vm1, %v5360_v19  ;;  %v10067_v46 = vadd.f32 %v6894_v4, %v4008_v18  ;;  %v11157_v4 = vld [vmem:[#allocation37_spill] sm:$0xff] }
 0x32c   : > { %v6863_v2 = vpop.f32.mrf.mxu1  ;;  %7066 = vmatmul.mubr.msk.bf16.gmra.mxu1 %vm2888_vm6, %v9632_v36  ;;  %7107 = vmatprep.mubr.msk.bf16.mxu0 %vm393_vm1, %v5361_v1  ;;  %v5362_v5 = vpack.c.bf16 %v11158_v30, %v11157_v4  ;;  %v11162_v1 = vld [vmem:[#allocation45_spill] sm:$0xff] }
 0x32d   : > { %v4011_v37 = vadd.f32 %v6863_v2, %v9906_v39  ;;  %7069 = vmatprep.mubr.msk.bf16.mxu1 %vm2888_vm6, %v9647_v62  ;;  %v4148_v33 = vpop.f32.mrf.mxu0  ;;  %v10075_v15 = vadd.f32 %v4119_v3, %v4006_v38  ;;  %v5062_v38 = vrot.slane %v9910_v22, 2 }
 0x32e   : > { %v3930_v47 = vpop.f32.mrf.mxu1 }
 0x32f   : > { %v4009_v54 = vadd.f32 %v3930_v47, %v9916_v0  ;;  %v6902_v29 = vpop.f32.mrf.mxu0  ;;  %v10080_v56 = vadd.f32 %v6897_v10, %v4011_v37 }
 0x330   : > { %v6864_v36 = vpop.f32.mrf.mxu1 }
 0x331   : > { %v4012_v39 = vadd.f32 %v6864_v36, %v9921_v48  ;;  %v4151_v58 = vpop.f32.mrf.mxu0  ;;  %v10085_v62 = vadd.f32 %v4132_v13, %v4009_v54 }
 0x332   : > { %v3933_v3 = vpop.f32.mrf.mxu1 }
 0x333   : > { %v4010_v32 = vadd.f32 %v3933_v3, %v9923_v7  ;;  %v6905_v19 = vpop.f32.mrf.mxu0  ;;  %7108 = vmatmul.mubr.msk.bf16.gmra.mxu0 %vm393_vm1, %v5362_v5  ;;  %v10089_v0 = vadd.f32 %v6898_v43, %v4012_v39  ;;  %v11161_v43 = vld [vmem:[#allocation44_spill] sm:$0xff] }
 0x334   : > { %v6867_v63 = vpop.f32.mrf.mxu1  ;;  %7070 = vmatmul.mubr.msk.bf16.gmra.mxu1 %vm2888_vm6, %v9649_v55  ;;  %7111 = vmatprep.mubr.msk.bf16.mxu0 %vm393_vm1, %v5363_v60  ;;  %v5364_v18 = vpack.c.bf16 %v11162_v1, %v11161_v43  ;;  %v11164_v39 = vld [vmem:[#allocation64_spill] sm:$0xff] }
 0x335   : > { %v4015_v10 = vadd.f32 %v6867_v63, %v9933_v49  ;;  %7073 = vmatprep.mubr.msk.bf16.mxu1 %vm2888_vm6, %v9661_v44  ;;  %v4164_v48 = vpop.f32.mrf.mxu0  ;;  %v10097_v13 = vadd.f32 %v4135_v34, %v4010_v32  ;;  %v5063_v44 = vrot.slane %v9912_v6, 2  ;;  %v5065_v34 = vrot.slane %v9914_v40, 2  ;;  %v11166_v43 = vld [vmem:[#allocation40_spill] sm:$0xff] }
 0x336   : > { %v3946_v7 = vpop.f32.mrf.mxu1 }
 0x337   : > { %v4013_v57 = vadd.f32 %v3946_v7, %v9937_v21  ;;  %v6906_v50 = vpop.f32.mrf.mxu0  ;;  %v10102_v26 = vadd.f32 %v6901_v35, %v4015_v10  ;;  %v5064_v40 = vsel %vm1157_vm4, %v5062_v38, %v5063_v44  ;;  %v11167_v38 = vld [vmem:[#allocation79_spill] sm:$0xff] }
 0x338   : > { %v6868_v55 = vpop.f32.mrf.mxu1 }
 0x339   : > { %v4016_v49 = vadd.f32 %v6868_v55, %v9941_v12  ;;  %v4167_v2 = vpop.f32.mrf.mxu0  ;;  %v10108_v37 = vadd.f32 %v4148_v33, %v4013_v57  ;;  %v5066_v12 = vsel %vm1157_vm4, %v5063_v44, %v5065_v34 }
 0x33a   : > { %v3949_v47 = vpop.f32.mrf.mxu1 }
 0x33b   : > { %v4014_v21 = vadd.f32 %v3949_v47, %v9943_v42  ;;  %v6909_v54 = vpop.f32.mrf.mxu0  ;;  %7112 = vmatmul.mubr.msk.bf16.gmra.mxu0 %vm393_vm1, %v5364_v18  ;;  %v10112_v35 = vadd.f32 %v6902_v29, %v4016_v49  ;;  %v11168_v47 = vld [vmem:[#allocation48_spill] sm:$0xff] }
 0x33c   : > { %v6871_v4 = vpop.f32.mrf.mxu1  ;;  %7074 = vmatmul.mubr.msk.bf16.gmra.mxu1 %vm2888_vm6, %v9674_v23  ;;  %v5069_v23 = vpack.c.bf16 %v5066_v12, %v5064_v40 }
 0x33d   : > { %v4019_v22 = vadd.f32 %v6871_v4, %v9949_v24  ;;  %7077 = vmatprep.mubr.msk.bf16.mxu1 %vm2888_vm6, %v9816_v45  ;;  %v4180_v6 = vpop.f32.mrf.mxu0  ;;  %v10121_v42 = vadd.f32 %v4151_v58, %v4014_v21 }
 0x33e   : > { %v3962_v33 = vpop.f32.mrf.mxu1 }
 0x33f   : > { %v4017_v29 = vadd.f32 %v3962_v33, %v9953_v11  ;;  %v6910_v30 = vpop.f32.mrf.mxu0  ;;  %v10124_v5 = vadd.f32 %v6905_v19, %v4019_v22  ;;  %v11165_v11 = vld [vmem:[#allocation65_spill] sm:$0xff] }
 0x340   : > { %v6872_v36 = vpop.f32.mrf.mxu1 }
 0x341   : > { %v4020_v24 = vadd.f32 %v6872_v36, %v11163_v52  ;;  %v4183_v16 = vpop.f32.mrf.mxu0  ;;  %v10127_v60 = vadd.f32 %v4164_v48, %v4017_v29 }
 0x342   : > { %v3965_v45 = vpop.f32.mrf.mxu1 }
 0x343   : > { %v4018_v3 = vadd.f32 %v3965_v45, %v11164_v39  ;;  %v6949_v32 = vpop.f32.mrf.mxu0  ;;  %v10130_v63 = vadd.f32 %v6906_v50, %v4020_v24 }
 0x344   : > { %v6875_v58 = vpop.f32.mrf.mxu1  ;;  %7078 = vmatmul.mubr.msk.bf16.gmra.mxu1 %vm2888_vm6, %v5069_v23 }
 0x345   : > { %v4023_v10 = vadd.f32 %v6875_v58, %v11165_v11  ;;  %v4489_v19 = vpop.f32.mrf.mxu0  ;;  %v10134_v7 = vadd.f32 %v4167_v2, %v4018_v3 }
 0x346   : > { %v3978_v57 = vpop.f32.mrf.mxu1 }
 0x347   : > { %v4021_v1 = vadd.f32 %v3978_v57, %v11166_v43  ;;  %v6950_v18 = vpop.f32.mrf.mxu0  ;;  %v10137_v48 = vadd.f32 %v6909_v54, %v4023_v10 }
 0x348   : > { %v6876_v55 = vpop.f32.mrf.mxu1 }
 0x349   : > { %v4024_v49 = vadd.f32 %v6876_v55, %v11167_v38  ;;  %v4492_v44 = vpop.f32.mrf.mxu0  ;;  %v10140_v50 = vadd.f32 %v4180_v6, %v4021_v1 }
 0x34a   : > { %v3981_v34 = vpop.f32.mrf.mxu1 }
 0x34b   : > { %v4022_v21 = vadd.f32 %v3981_v34, %v11168_v47  ;;  %v6953_v4 = vpop.f32.mrf.mxu0  ;;  %v10143_v22 = vadd.f32 %v6910_v30, %v4024_v49 }
 0x34c   : > { %v6915_v2 = vpop.f32.mrf.mxu1 }
 0x34d   : > { %v4409_v40 = vadd.f32 %v6915_v2, %v9992_v14  ;;  %v4505_v12 = vpop.f32.mrf.mxu0  ;;  %v10146_v33 = vadd.f32 %v4183_v16, %v4022_v21 }
 0x34e   : > { %v4280_v54 = vpop.f32.mrf.mxu1 }
 0x34f   : > { %v4407_v29 = vadd.f32 %v4280_v54, %v9997_v28  ;;  %v6954_v36 = vpop.f32.mrf.mxu0  ;;  %v10149_v23 = vadd.f32 %v6949_v32, %v4409_v40 }
 0x350   : > { %v6916_v6 = vpop.f32.mrf.mxu1 }
 0x351   : > { %v4410_v52 = vadd.f32 %v6916_v6, %v10001_v8  ;;  %v4508_v24 = vpop.f32.mrf.mxu0  ;;  %v10152_v45 = vadd.f32 %v4489_v19, %v4407_v29 }
 0x352   : > { %v4283_v30 = vpop.f32.mrf.mxu1 }
 0x353   : > { %v4408_v39 = vadd.f32 %v4283_v30, %v10009_v61  ;;  %v6957_v3 = vpop.f32.mrf.mxu0  ;;  %v10155_v14 = vadd.f32 %v6950_v18, %v4410_v52 }
 0x354   : > { %v6919_v16 = vpop.f32.mrf.mxu1 }
 0x355   : > { %v4413_v58 = vadd.f32 %v6919_v16, %v10014_v25  ;;  %v4521_v11 = vpop.f32.mrf.mxu0  ;;  %v10158_v28 = vadd.f32 %v4492_v44, %v4408_v39 }
 0x356   : > { %v4296_v32 = vpop.f32.mrf.mxu1 }
 0x357   : > { %v4411_v10 = vadd.f32 %v4296_v32, %v10019_v9  ;;  %v6958_v57 = vpop.f32.mrf.mxu0  ;;  %v10161_v8 = vadd.f32 %v6953_v4, %v4413_v58 }
 0x358   : > { %v6920_v19 = vpop.f32.mrf.mxu1 }
 0x359   : > { %v4414_v43 = vadd.f32 %v6920_v19, %v10023_v53  ;;  %v4524_v1 = vpop.f32.mrf.mxu0  ;;  %v10164_v61 = vadd.f32 %v4505_v12, %v4411_v10 }
 0x35a   : > { %v4299_v18 = vpop.f32.mrf.mxu1 }
 0x35b   : > { %v4412_v55 = vadd.f32 %v4299_v18, %v10031_v31  ;;  %v6961_v38 = vpop.f32.mrf.mxu0  ;;  %v10167_v25 = vadd.f32 %v6954_v36, %v4414_v43 }
 0x35c   : > { %v6923_v49 = vpop.f32.mrf.mxu1 }
 0x35d   : > { %v4417_v44 = vadd.f32 %v6923_v49, %v10036_v51  ;;  %v4537_v34 = vpop.f32.mrf.mxu0  ;;  %v10170_v9 = vadd.f32 %v4508_v24, %v4412_v55 }
 0x35e   : > { %v4312_v47 = vpop.f32.mrf.mxu1 }
 0x35f   : > { %v4415_v21 = vadd.f32 %v4312_v47, %v10041_v27  ;;  %v6962_v4 = vpop.f32.mrf.mxu0  ;;  %v10173_v53 = vadd.f32 %v6957_v3, %v4417_v44 }
 0x360   : > { %v6924_v2 = vpop.f32.mrf.mxu1 }
 0x361   : > { %v4418_v40 = vadd.f32 %v6924_v2, %v10045_v41  ;;  %v4540_v12 = vpop.f32.mrf.mxu0  ;;  %v10176_v31 = vadd.f32 %v4521_v11, %v4415_v21 }
 0x362   : > { %v4315_v54 = vpop.f32.mrf.mxu1 }
 0x363   : > { %v4416_v29 = vadd.f32 %v4315_v54, %v10053_v20  ;;  %v6965_v36 = vpop.f32.mrf.mxu0  ;;  %v10179_v51 = vadd.f32 %v6958_v57, %v4418_v40 }
 0x364   : > { %v6927_v6 = vpop.f32.mrf.mxu1 }
 0x365   : > { %v4421_v52 = vadd.f32 %v6927_v6, %v10058_v17  ;;  %v4553_v24 = vpop.f32.mrf.mxu0  ;;  %v10182_v27 = vadd.f32 %v4524_v1, %v4416_v29 }
 0x366   : > { %v4328_v30 = vpop.f32.mrf.mxu1 }
 0x367   : > { %v4419_v39 = vadd.f32 %v4328_v30, %v10063_v59  ;;  %v6966_v3 = vpop.f32.mrf.mxu0  ;;  %v10185_v41 = vadd.f32 %v6961_v38, %v4421_v52 }
 0x368   : > { %v6928_v16 = vpop.f32.mrf.mxu1 }
 0x369   : > { %v4422_v58 = vadd.f32 %v6928_v16, %v10067_v46  ;;  %v4556_v11 = vpop.f32.mrf.mxu0  ;;  %v10188_v20 = vadd.f32 %v4537_v34, %v4419_v39 }
 0x36a   : > { %v4331_v32 = vpop.f32.mrf.mxu1 }
 0x36b   : > { %v4420_v10 = vadd.f32 %v4331_v32, %v10075_v15  ;;  %v6969_v57 = vpop.f32.mrf.mxu0  ;;  %v10191_v17 = vadd.f32 %v6962_v4, %v4422_v58 }
 0x36c   : > { %v6931_v19 = vpop.f32.mrf.mxu1 }
 0x36d   : > { %v4425_v43 = vadd.f32 %v6931_v19, %v10080_v56  ;;  %v4569_v1 = vpop.f32.mrf.mxu0  ;;  %v10194_v59 = vadd.f32 %v4540_v12, %v4420_v10 }
 0x36e   : > { %v4344_v18 = vpop.f32.mrf.mxu1 }
 0x36f   : > { %v4423_v55 = vadd.f32 %v4344_v18, %v10085_v62  ;;  %v6970_v38 = vpop.f32.mrf.mxu0  ;;  %v10197_v46 = vadd.f32 %v6965_v36, %v4425_v43 }
 0x370   : > { %v6932_v49 = vpop.f32.mrf.mxu1 }
 0x371   : > { %v4426_v44 = vadd.f32 %v6932_v49, %v10089_v0  ;;  %v4572_v34 = vpop.f32.mrf.mxu0  ;;  %v10200_v15 = vadd.f32 %v4553_v24, %v4423_v55 }
 0x372   : > { %v4347_v47 = vpop.f32.mrf.mxu1 }
 0x373   : > { %v4424_v21 = vadd.f32 %v4347_v47, %v10097_v13  ;;  %v6973_v4 = vpop.f32.mrf.mxu0  ;;  %v10203_v56 = vadd.f32 %v6966_v3, %v4426_v44 }
 0x374   : > { %v6935_v2 = vpop.f32.mrf.mxu1 }
 0x375   : > { %11169 = vst [vmem:[#allocation82_spill] sm:$0xff] %v10203_v56  ;;  %v4429_v40 = vadd.f32 %v6935_v2, %v10102_v26  ;;  %v4585_v12 = vpop.f32.mrf.mxu0  ;;  %v10206_v62 = vadd.f32 %v4556_v11, %v4424_v21 }
 0x376   : > { %v4360_v54 = vpop.f32.mrf.mxu1 }
 0x377   : > { %11170 = vst [vmem:[#allocation67_spill] sm:$0xff] %v10206_v62  ;;  %v4427_v29 = vadd.f32 %v4360_v54, %v10108_v37  ;;  %v6974_v36 = vpop.f32.mrf.mxu0  ;;  %v10209_v0 = vadd.f32 %v6969_v57, %v4429_v40 }
 0x378   : > { %v6936_v6 = vpop.f32.mrf.mxu1 }
 0x379   : > { %11171 = vst [vmem:[#allocation69_spill] sm:$0xff] %v10209_v0  ;;  %v4430_v52 = vadd.f32 %v6936_v6, %v10112_v35  ;;  %v4588_v24 = vpop.f32.mrf.mxu0  ;;  %v10212_v13 = vadd.f32 %v4569_v1, %v4427_v29 }
 0x37a   : > { %v4363_v30 = vpop.f32.mrf.mxu1 }
 0x37b   : > { %11172 = vst [vmem:[#allocation71_spill] sm:$0xff] %v10212_v13  ;;  %v4428_v39 = vadd.f32 %v4363_v30, %v10121_v42  ;;  %v6977_v3 = vpop.f32.mrf.mxu0  ;;  %v10215_v26 = vadd.f32 %v6970_v38, %v4430_v52 }
 0x37c   : > { %v6939_v16 = vpop.f32.mrf.mxu1 }
 0x37d   : > { %11173 = vst [vmem:[#allocation85_spill] sm:$0xff] %v10215_v26  ;;  %v4433_v58 = vadd.f32 %v6939_v16, %v10124_v5  ;;  %v4601_v11 = vpop.f32.mrf.mxu0  ;;  %v10218_v37 = vadd.f32 %v4572_v34, %v4428_v39 }
 0x37e   : > { %v4376_v32 = vpop.f32.mrf.mxu1 }
 0x37f   : > { %11174 = vst [vmem:[#allocation47_spill] sm:$0xff] %v10218_v37  ;;  %v4431_v10 = vadd.f32 %v4376_v32, %v10127_v60  ;;  %v6978_v57 = vpop.f32.mrf.mxu0  ;;  %v10221_v35 = vadd.f32 %v6973_v4, %v4433_v58 }
 0x380   : > { %v6940_v19 = vpop.f32.mrf.mxu1 }
 0x381   : > { %11175 = vst [vmem:[#allocation87_spill] sm:$0xff] %v10221_v35  ;;  %v4434_v43 = vadd.f32 %v6940_v19, %v10130_v63  ;;  %v4604_v1 = vpop.f32.mrf.mxu0  ;;  %v10224_v42 = vadd.f32 %v4585_v12, %v4431_v10 }
 0x382   : > { %v4379_v18 = vpop.f32.mrf.mxu1 }
 0x383   : > { %11176 = vst [vmem:[#allocation73_spill] sm:$0xff] %v10224_v42  ;;  %v4432_v55 = vadd.f32 %v4379_v18, %v10134_v7  ;;  %v10227_v38 = vpop.f32.mrf.mxu0  ;;  %v10229_v5 = vadd.f32 %v6974_v36, %v4434_v43 }
 0x384   : > { %v6943_v49 = vpop.f32.mrf.mxu1 }
 0x385   : > { %11177 = vst [vmem:[#allocation74_spill] sm:$0xff] %v10229_v5  ;;  %v4437_v44 = vadd.f32 %v6943_v49, %v10137_v48  ;;  %v10232_v60 = vpop.f32.mrf.mxu0  ;;  %v10234_v34 = vadd.f32 %v4588_v24, %v4432_v55 }
 0x386   : > { %v4392_v47 = vpop.f32.mrf.mxu1 }
 0x387   : > { %11178 = vst [vmem:[#allocation51_spill] sm:$0xff] %v10234_v34  ;;  %v4435_v63 = vadd.f32 %v4392_v47, %v10140_v50  ;;  %v10237_v21 = vpop.f32.mrf.mxu0  ;;  %v10239_v4 = vadd.f32 %v6977_v3, %v4437_v44 }
 0x388   : > { %v6944_v2 = vpop.f32.mrf.mxu1 }
 0x389   : > { %11179 = vst [vmem:[#allocation89_spill] sm:$0xff] %v10239_v4  ;;  %v4438_v7 = vadd.f32 %v6944_v2, %v10143_v22  ;;  %v10242_v40 = vpop.f32.mrf.mxu0  ;;  %v10244_v12 = vadd.f32 %v4601_v11, %v4435_v63 }
 0x38a   : > { %v4395_v54 = vpop.f32.mrf.mxu1 }
 0x38b   : > { %11180 = vst [vmem:[#allocation26_spill] sm:$0xff] %v10244_v12  ;;  %v4436_v48 = vadd.f32 %v4395_v54, %v10146_v33  ;;  %v10247_v29 = vpop.f32.mrf.mxu0  ;;  %v10249_v36 = vadd.f32 %v6978_v57, %v4438_v7 }
 0x38c   : > { %v6983_v6 = vpop.f32.mrf.mxu1 }
 0x38d   : > { %11181 = vst [vmem:[#allocation91_spill] sm:$0xff] %v10249_v36  ;;  %v10251_v50 = vpop.f32.mrf.mxu0  ;;  %v10253_v52 = vadd.f32 %v4604_v1, %v4436_v48 }
 0x38e   : > { %v4691_v24 = vpop.f32.mrf.mxu1 }
 0x38f   : > { %11182 = vst [vmem:[#allocation76_spill] sm:$0xff] %v10253_v52  ;;  %v10255_v30 = vpop.f32.mrf.mxu0 }
 0x390   : > { %v6984_v22 = vpop.f32.mrf.mxu1 }
 0x391   : > { %v10257_v39 = vpop.f32.mrf.mxu0 }
 0x392   : > { %v4694_v3 = vpop.f32.mrf.mxu1 }
 0x393   : > { %v10259_v16 = vpop.f32.mrf.mxu0 }
 0x394   : > { %v6987_v58 = vpop.f32.mrf.mxu1 }
 0x395   : > { %v10261_v33 = vpop.f32.mrf.mxu0 }
 0x396   : > { %v4707_v11 = vpop.f32.mrf.mxu1 }
 0x397   : > { %v10263_v32 = vpop.f32.mrf.mxu0 }
 0x398   : > { %v6988_v10 = vpop.f32.mrf.mxu1 }
 0x399   : > { %v10265_v57 = vpop.f32.mrf.mxu0 }
 0x39a   : > { %v4710_v19 = vpop.f32.mrf.mxu1 }
 0x39b   : > { %v10267_v43 = vpop.f32.mrf.mxu0 }
 0x39c   : > { %v6991_v1 = vpop.f32.mrf.mxu1 }
 0x39d   : > { %v10269_v18 = vpop.f32.mrf.mxu0 }
 0x39e   : > { %v4723_v55 = vpop.f32.mrf.mxu1 }
 0x39f   : > { %v10271_v49 = vpop.f32.mrf.mxu0 }
 0x3a0   : > { %v6992_v44 = vpop.f32.mrf.mxu1 }
 0x3a1   : > { %v10273_v47 = vpop.f32.mrf.mxu0 }
 0x3a2   : > { %11183 = vst [vmem:[#allocation78_spill] sm:$0xff] %v10273_v47  ;;  %v4726_v63 = vpop.f32.mrf.mxu1 }
 0x3a3   : > { %v10275_v2 = vpop.f32.mrf.mxu0 }
 0x3a4   : > { %11184 = vst [vmem:[#allocation93_spill] sm:$0xff] %v10275_v2  ;;  %v6995_v7 = vpop.f32.mrf.mxu1 }
 0x3a5   : > { %v10277_v54 = vpop.f32.mrf.mxu0 }
 0x3a6   : > { %11185 = vst [vmem:[#allocation80_spill] sm:$0xff] %v10277_v54  ;;  %v4739_v48 = vpop.f32.mrf.mxu1 }
 0x3a7   : > { %v10279_v52 = vpop.f32.mrf.mxu0 }
 0x3a8   : > { %11186 = vst [vmem:[#allocation83_spill] sm:$0xff] %v10279_v52  ;;  %v6996_v36 = vpop.f32.mrf.mxu1 }
 0x3a9   : > { %v10281_v12 = vpop.f32.mrf.mxu0 }
 0x3aa   : > { %11187 = vst [vmem:[#allocation27_spill] sm:$0xff] %v10281_v12  ;;  %v4742_v4 = vpop.f32.mrf.mxu1 }
 0x3ab   : > { %v10283_v34 = vpop.f32.mrf.mxu0 }
 0x3ac   : > { %11188 = vst [vmem:[#allocation86_spill] sm:$0xff] %v10283_v34  ;;  %v10285_v5 = vpop.f32.mrf.mxu1 }
 0x3ad   : > { %v10287_v42 = vpop.f32.mrf.mxu0 }
 0x3ae   : > { %11189 = vst [vmem:[#allocation88_spill] sm:$0xff] %v10287_v42  ;;  %v10289_v35 = vpop.f32.mrf.mxu1 }
 0x3af   : > { %v10291_v37 = vpop.f32.mrf.mxu0 }
 0x3b0   : > { %11190 = vst [vmem:[#allocation52_spill] sm:$0xff] %v10291_v37  ;;  %v10293_v26 = vpop.f32.mrf.mxu1 }
 0x3b1   : > { %11191 = vst [vmem:[#allocation53_spill] sm:$0xff] %v10293_v26  ;;  %v10295_v13 = vpop.f32.mrf.mxu0 }
 0x3b2   : > { %11192 = vst [vmem:[#allocation90_spill] sm:$0xff] %v10295_v13  ;;  %v10297_v0 = vpop.f32.mrf.mxu1 }
 0x3b3   : > { %11193 = vst [vmem:[#allocation54_spill] sm:$0xff] %v10297_v0  ;;  %v10299_v52 = vpop.f32.mrf.mxu0 }
 0x3b4   : > { %11194 = vst [vmem:[#allocation92_spill] sm:$0xff] %v10299_v52  ;;  %v10301_v12 = vpop.f32.mrf.mxu1 }
 0x3b5   : > { %11195 = vst [vmem:[#allocation94_spill] sm:$0xff] %v10301_v12  ;;  %v10303_v54 = vpop.f32.mrf.mxu0 }
 0x3b6   : > { %11196 = vst [vmem:[#allocation49_spill] sm:$0xff] %v10303_v54  ;;  %v10305_v34 = vpop.f32.mrf.mxu1 }
 0x3b7   : > { %11197 = vst [vmem:[#allocation36_spill] sm:$0xff] %v10305_v34  ;;  %v10307_v62 = vpop.f32.mrf.mxu0 }
 0x3b8   : > { %11198 = vst [vmem:[#allocation84_spill] sm:$0xff] %v10307_v62  ;;  %v10309_v42 = vpop.f32.mrf.mxu1 }
 0x3b9   : > { %11199 = vst [vmem:[#allocation81_spill] sm:$0xff] %v10309_v42  ;;  %v10311_v2 = vpop.f32.mrf.mxu0 }
 0x3ba   : > { %11200 = vst [vmem:[#allocation32_spill] sm:$0xff] %v10311_v2  ;;  %v10313_v37 = vpop.f32.mrf.mxu1 }
 0x3bb   : > { %11201 = vst [vmem:[#allocation55_spill] sm:$0xff] %v10313_v37  ;;  %v10315_v26 = vpop.f32.mrf.mxu0  ;;  %v4820_v37 = vadd.f32 %v6983_v6, %v10149_v23  ;;  %v10348_v23 = vld [vmem:[%s10712_s8] ss:$0 sm:$0xff] }
 0x3bc   : > { %11202 = vst [vmem:[#allocation56_spill] sm:$0xff] %v10315_v26  ;;  %v10317_v13 = vpop.f32.mrf.mxu1  ;;  %v4818_v26 = vadd.f32 %v4691_v24, %v10152_v45  ;;  %v4828_v45 = vadd.f32 %v6991_v1, %v10173_v53 }
 0x3bd   : > { %11203 = vst [vmem:[#allocation68_spill] sm:$0xff] %v10317_v13  ;;  %v10319_v0 = vpop.f32.mrf.mxu0 }
 0x3be   : > { %11204 = vst [vmem:[#allocation57_spill] sm:$0xff] %v10319_v0  ;;  %v10321_v52 = vpop.f32.mrf.mxu1  ;;  %v4821_v0 = vadd.f32 %v6984_v22, %v10155_v14  ;;  %v4826_v14 = vadd.f32 %v4723_v55, %v10176_v31 }
 0x3bf   : > { %11205 = vst [vmem:[#allocation28_spill] sm:$0xff] %v10321_v52  ;;  %v10323_v12 = vpop.f32.mrf.mxu0  ;;  %v4819_v52 = vadd.f32 %v4694_v3, %v10158_v28  ;;  %v5032_v28 = vadd.f32 %v10227_v38, %v4820_v37  ;;  %v4832_v3 = vadd.f32 %v6995_v7, %v10185_v41  ;;  %v10376_v41 = vld [vmem:[%s10709_s5] ss:$0 sm:$0xff] }
 0x3c0   : > { %11206 = vst [vmem:[#allocation58_spill] sm:$0xff] %v10323_v12  ;;  %v10325_v54 = vpop.f32.mrf.mxu1  ;;  %v4824_v12 = vadd.f32 %v6987_v58, %v10161_v8  ;;  %v5030_v8 = vadd.f32 %v10232_v60, %v4818_v26  ;;  %v5033_v24 = vadd.f32 %v10237_v21, %v4821_v0  ;;  %v10371_v0 = vld [vmem:[%s10713_s9] ss:$0 sm:$0xff]  ;;  %v10386_v21 = vadd.f32 %v10259_v16, %v4828_v45 }
 0x3c1   : > { %11207 = vst [vmem:[#allocation46_spill] sm:$0xff] %v10325_v54  ;;  %v10327_v34 = vpop.f32.mrf.mxu0  ;;  %v5031_v22 = vadd.f32 %v10242_v40, %v4819_v52  ;;  %v10389_v40 = vadd.f32 %v10261_v33, %v4826_v14  ;;  %v11215_v14 = vld [vmem:[#allocation67_spill] sm:$0xff] }
 0x3c2   : > { %11208 = vst [vmem:[#allocation60_spill] sm:$0xff] %v10327_v34  ;;  %v10329_v62 = vpop.f32.mrf.mxu1  ;;  %v4822_v34 = vadd.f32 %v4707_v11, %v10164_v61  ;;  %v5036_v37 = vadd.f32 %v10247_v29, %v4824_v12  ;;  %v4836_v12 = vadd.f32 %v10285_v5, %v10197_v46  ;;  %v4834_v5 = vadd.f32 %v10289_v35, %v10200_v15  ;;  %v11212_v15 = vld [vmem:[#allocation82_spill] sm:$0xff]  ;;  %v11213_v35 = vld [vmem:[#allocation53_spill] sm:$0xff] }
 0x3c3   : > { %11209 = vst [vmem:[#allocation29_spill] sm:$0xff] %v10329_v62  ;;  %v7085_v42 = vpop.f32.mrf.mxu0  ;;  %v4825_v62 = vadd.f32 %v6988_v10, %v10167_v25  ;;  %v4829_v25 = vadd.f32 %v6992_v44, %v10179_v51  ;;  %v4830_v51 = vadd.f32 %v4739_v48, %v10188_v20  ;;  %v4831_v20 = vadd.f32 %v4742_v4, %v10194_v59 }
 0x3c4   : > { %v10331_v2 = vpop.f32.mrf.mxu1  ;;  %v5587_v53 = vmul.f32 %v7085_v42, %v10348_v23  ;;  %v10364_v26 = vadd.f32 %v10251_v50, %v4822_v34  ;;  %v4837_v1 = vadd.f32 %v11213_v35, %v11212_v15 }
 0x3c5   : > { %11210 = vst [vmem:[#allocation77_spill] sm:$0xff] %v10331_v2  ;;  %v5451_v13 = vpop.f32.mrf.mxu0  ;;  %v4823_v2 = vadd.f32 %v4710_v19, %v10170_v9  ;;  %v4827_v9 = vadd.f32 %v4726_v63, %v10182_v27  ;;  %v4833_v27 = vadd.f32 %v6996_v36, %v10191_v17  ;;  %v10379_v42 = vadd.f32 %v10255_v30, %v4825_v62  ;;  %v10397_v62 = vld [vmem:[%s10710_s6] ss:$0 sm:$0xff]  ;;  %v11211_v19 = vld [vmem:[#allocation78_spill] sm:$0xff] }
 0x3c6   : > { %v10337_v56 = vpop.f32.mrf.mxu1  ;;  %v5585_v29 = vmul.f32 %v10348_v23, %v5451_v13  ;;  %v10400_v59 = vadd.f32 %v10263_v32, %v4829_v25  ;;  %v5626_v50 = vadd.f32 %v10371_v0, %v5587_v53  ;;  %v10408_v13 = vadd.f32 %v10267_v43, %v4832_v3 }
 0x3c7   : > { %v7086_v54 = vpop.f32.mrf.mxu0  ;;  %v10382_v60 = vadd.f32 %v10257_v39, %v4823_v2  ;;  %v10403_v4 = vadd.f32 %v10265_v57, %v4827_v9  ;;  %v10414_v58 = vadd.f32 %v10269_v18, %v4830_v51  ;;  %v10417_v33 = vadd.f32 %v10271_v49, %v4833_v27  ;;  %v11214_v49 = vld [vmem:[#allocation93_spill] sm:$0xff] }
 0x3c8   : > { %v10343_v47 = vpop.f32.mrf.mxu1  ;;  %v5588_v39 = vmul.f32 %v7086_v54, %v10348_v23  ;;  %v10422_v43 = vadd.f32 %v11211_v19, %v4831_v20  ;;  %v5624_v55 = vadd.f32 %v10371_v0, %v5585_v29  ;;  %v10429_v63 = vadd.f32 %v11214_v49, %v4836_v12 }
 0x3c9   : > { %v5454_v61 = vpop.f32.mrf.mxu0 }
 0x3ca   : > { %v10356_v6 = vpop.f32.mrf.mxu1  ;;  %v5586_v18 = vmul.f32 %v10348_v23, %v5454_v61  ;;  %v5627_v61 = vadd.f32 %v10371_v0, %v5588_v39 }
 0x3cb   : > { %v7089_v31 = vpop.f32.mrf.mxu0 }
 0x3cc   : > { %v7051_v38 = vpop.f32.mrf.mxu1  ;;  %v5591_v25 = vmul.f32 %v7089_v31, %v10348_v23  ;;  %v5625_v20 = vadd.f32 %v10371_v0, %v5586_v18 }
 0x3cd   : > { %v5241_v17 = vadd.f32 %v7051_v38, %v5032_v28  ;;  %v5467_v34 = vpop.f32.mrf.mxu0  ;;  %v11216_v28 = vld [vmem:[#allocation54_spill] sm:$0xff] }
 0x3ce   : > { %v5112_v36 = vpop.f32.mrf.mxu1 }
 0x3cf   : > { %v5280_v52 = vmul.f32 %v10376_v41, %v5241_v17  ;;  %v5239_v30 = vadd.f32 %v5112_v36, %v5030_v8  ;;  %v7090_v46 = vpop.f32.mrf.mxu0  ;;  %v4835_v8 = vadd.f32 %v11216_v28, %v11215_v14  ;;  %v5589_v17 = vmul.f32 %v10348_v23, %v5467_v34  ;;  %v11218_v36 = vld [vmem:[#allocation83_spill] sm:$0xff] }
 0x3d0   : > { %v7052_v16 = vpop.f32.mrf.mxu1  ;;  %v10452_v31 = vadd.f32 %v11218_v36, %v4837_v1  ;;  %v5630_v34 = vadd.f32 %v10371_v0, %v5591_v25  ;;  %v11221_v28 = vld [vmem:[#allocation71_spill] sm:$0xff] }
 0x3d1   : > { %v5319_v11 = vadd.f32 %v10397_v62, %v5280_v52  ;;  %v5278_v32 = vmul.f32 %v10376_v41, %v5239_v30  ;;  %v5242_v10 = vadd.f32 %v7052_v16, %v5033_v24  ;;  %v5470_v57 = vpop.f32.mrf.mxu0  ;;  %v11217_v24 = vld [vmem:[#allocation80_spill] sm:$0xff]  ;;  %v11219_v16 = vld [vmem:[#allocation69_spill] sm:$0xff]  ;;  %v5628_v18 = vadd.f32 %v10371_v0, %v5589_v17 }
 0x3d2   : > { %v5115_v44 = vpop.f32.mrf.mxu1  ;;  %v10445_v3 = vadd.f32 %v11217_v24, %v4834_v5  ;;  %v5590_v49 = vmul.f32 %v10348_v23, %v5470_v57 }
 0x3d3   : > { %v5658_v2 = vadd.f32 %v5626_v50, %v5319_v11  ;;  %v5317_v7 = vadd.f32 %v10397_v62, %v5278_v32  ;;  %v5281_v54 = vmul.f32 %v10376_v41, %v5242_v10  ;;  %v5240_v48 = vadd.f32 %v5115_v44, %v5031_v22  ;;  %v7093_v45 = vpop.f32.mrf.mxu0  ;;  %v11220_v11 = vld [vmem:[#allocation94_spill] sm:$0xff] }
 0x3d4   : > { %v7055_v9 = vpop.f32.mrf.mxu1  ;;  %v4840_v32 = vadd.f32 %v11220_v11, %v11219_v16  ;;  %v5592_v10 = vmul.f32 %v7090_v46, %v10348_v23 }
 0x3d5   : > { %v5690_v22 = vmax.f32 %v5658_v2, 0.0  ;;  %v5656_v53 = vadd.f32 %v5624_v55, %v5317_v7  ;;  %v5320_v51 = vadd.f32 %v10397_v62, %v5281_v54  ;;  %v5279_v27 = vmul.f32 %v10376_v41, %v5240_v48  ;;  %v5483_v38 = vpop.f32.mrf.mxu0 }
 0x3d6   : > { %v5245_v12 = vadd.f32 %v7055_v9, %v5036_v37  ;;  %v5128_v29 = vpop.f32.mrf.mxu1  ;;  %v5595_v2 = vmul.f32 %v7093_v45, %v10348_v23  ;;  %v5631_v24 = vadd.f32 %v10371_v0, %v5592_v10  ;;  %v5593_v10 = vmul.f32 %v10348_v23, %v5483_v38 }
 0x3d7   : > { %5722 = vst.msk [vmem:[%s10440_s19 + $0x10] sm:$0xff] %vm2888_vm6, %v5690_v22  ;;  %v5688_v50 = vmax.f32 %v5656_v53, 0.0  ;;  %v5659_v52 = vadd.f32 %v5627_v61, %v5320_v51  ;;  %v5318_v30 = vadd.f32 %v10397_v62, %v5279_v27  ;;  %v5243_v5 = vadd.f32 %v5128_v29, %v10364_v26  ;;  %v7094_v39 = vpop.f32.mrf.mxu0  ;;  %v11222_v61 = vld [vmem:[#allocation36_spill] sm:$0xff]  ;;  %v11223_v22 = vld [vmem:[#allocation27_spill] sm:$0xff] }
 0x3d8   : > { %v5284_v37 = vmul.f32 %v10376_v41, %v5245_v12  ;;  %v7056_v19 = vpop.f32.mrf.mxu1  ;;  %v4838_v25 = vadd.f32 %v11222_v61, %v11221_v28  ;;  %v10480_v45 = vadd.f32 %v11223_v22, %v4835_v8  ;;  %v5629_v12 = vadd.f32 %v10371_v0, %v5590_v49  ;;  %v11224_v8 = vld [vmem:[#allocation86_spill] sm:$0xff]  ;;  %v11228_v28 = vld [vmem:[#allocation47_spill] sm:$0xff] }
 0x3d9   : > { %5720 = vst.msk [vmem:[%s10440_s19] sm:$0xff] %vm2888_vm6, %v5688_v50  ;;  %v5691_v15 = vmax.f32 %v5659_v52, 0.0  ;;  %v5657_v35 = vadd.f32 %v5625_v20, %v5318_v30  ;;  %v5282_v1 = vmul.f32 %v10376_v41, %v5243_v5  ;;  %v5246_v26 = vadd.f32 %v7056_v19, %v10379_v42  ;;  %v5486_v55 = vpop.f32.mrf.mxu0  ;;  %v11229_v61 = vld [vmem:[#allocation55_spill] sm:$0xff] }
 0x3da   : > { %v5323_v44 = vadd.f32 %v10397_v62, %v5284_v37  ;;  %v5131_v46 = vpop.f32.mrf.mxu1  ;;  %v5634_v29 = vadd.f32 %v10371_v0, %v5595_v2  ;;  %v10490_v50 = vadd.f32 %v11224_v8, %v4840_v32  ;;  %v5596_v19 = vmul.f32 %v7094_v39, %v10348_v23 }
 0x3db   : > { %5723 = vst.msk [vmem:[%s10440_s19 + $0x18] sm:$0xff] %vm2888_vm6, %v5691_v15  ;;  %v5689_v7 = vmax.f32 %v5657_v35, 0.0  ;;  %v5321_v54 = vadd.f32 %v10397_v62, %v5282_v1  ;;  %v5285_v48 = vmul.f32 %v10376_v41, %v5246_v26  ;;  %v5244_v42 = vadd.f32 %v5131_v46, %v10382_v60  ;;  %v7097_v14 = vpop.f32.mrf.mxu0  ;;  %v11227_v46 = vld [vmem:[#allocation88_spill] sm:$0xff] }
 0x3dc   : > { %v5662_v9 = vadd.f32 %v5630_v34, %v5323_v44  ;;  %v7059_v57 = vpop.f32.mrf.mxu1  ;;  %v11225_v34 = vld [vmem:[#allocation85_spill] sm:$0xff]  ;;  %v5594_v2 = vmul.f32 %v10348_v23, %v5486_v55  ;;  %v5599_v38 = vmul.f32 %v7097_v14, %v10348_v23  ;;  %v5632_v55 = vadd.f32 %v10371_v0, %v5593_v10 }
 0x3dd   : > { %5721 = vst.msk [vmem:[%s10440_s19 + $0x8] sm:$0xff] %vm2888_vm6, %v5689_v7  ;;  %v5660_v53 = vadd.f32 %v5628_v18, %v5321_v54  ;;  %v5324_v51 = vadd.f32 %v10397_v62, %v5285_v48  ;;  %v5283_v27 = vmul.f32 %v10376_v41, %v5244_v42  ;;  %v5249_v60 = vadd.f32 %v7059_v57, %v10386_v21  ;;  %v5499_v20 = vpop.f32.mrf.mxu0  ;;  %v11226_v21 = vld [vmem:[#allocation81_spill] sm:$0xff] }
 0x3de   : > { %v5694_v17 = vmax.f32 %v5662_v9, 0.0  ;;  %v5144_v36 = vpop.f32.mrf.mxu1  ;;  %v4841_v37 = vadd.f32 %v11226_v21, %v11225_v34  ;;  %v4839_v9 = vadd.f32 %v11229_v61, %v11228_v28  ;;  %v5635_v14 = vadd.f32 %v10371_v0, %v5596_v19  ;;  %v11232_v19 = vld [vmem:[#allocation52_spill] sm:$0xff] }
 0x3df   : > { %v5692_v52 = vmax.f32 %v5660_v53, 0.0  ;;  %v5663_v30 = vadd.f32 %v5631_v24, %v5324_v51  ;;  %v5322_v5 = vadd.f32 %v10397_v62, %v5283_v27  ;;  %v5288_v16 = vmul.f32 %v10376_v41, %v5249_v60  ;;  %v7098_v11 = vpop.f32.mrf.mxu0 }
 0x3e0   : > { %5726 = vst.msk [vmem:[%s10440_s19 + $0x30] sm:$0xff] %vm2888_vm6, %v5694_v17  ;;  %v5247_v32 = vadd.f32 %v5144_v36, %v10389_v40  ;;  %v7060_v15 = vpop.f32.mrf.mxu1  ;;  %v10509_v40 = vadd.f32 %v11227_v46, %v4838_v25  ;;  %v5633_v60 = vadd.f32 %v10371_v0, %v5594_v2  ;;  %v5638_v17 = vadd.f32 %v10371_v0, %v5599_v38 }
 0x3e1   : > { %5724 = vst.msk [vmem:[%s10440_s19 + $0x20] sm:$0xff] %vm2888_vm6, %v5692_v52  ;;  %v5695_v35 = vmax.f32 %v5663_v30, 0.0  ;;  %v5661_v1 = vadd.f32 %v5629_v12, %v5322_v5  ;;  %v5327_v26 = vadd.f32 %v10397_v62, %v5288_v16  ;;  %v5250_v18 = vadd.f32 %v7060_v15, %v10400_v59  ;;  %v5502_v44 = vpop.f32.mrf.mxu0  ;;  %v11230_v5 = vld [vmem:[#allocation87_spill] sm:$0xff]  ;;  %v11231_v16 = vld [vmem:[#allocation68_spill] sm:$0xff] }
 0x3e2   : > { %v5286_v49 = vmul.f32 %v10376_v41, %v5247_v32  ;;  %v5147_v39 = vpop.f32.mrf.mxu1  ;;  %v5597_v12 = vmul.f32 %v10348_v23, %v5499_v20  ;;  %v4844_v34 = vadd.f32 %v11231_v16, %v11230_v5  ;;  %v5600_v10 = vmul.f32 %v7098_v11, %v10348_v23 }
 0x3e3   : > { %5727 = vst.msk [vmem:[%s10440_s19 + $0x38] sm:$0xff] %vm2888_vm6, %v5695_v35  ;;  %v5693_v7 = vmax.f32 %v5661_v1, 0.0  ;;  %v5666_v54 = vadd.f32 %v5634_v29, %v5327_v26  ;;  %v5289_v48 = vmul.f32 %v10376_v41, %v5250_v18  ;;  %v5248_v59 = vadd.f32 %v5147_v39, %v10403_v4  ;;  %v7101_v42 = vpop.f32.mrf.mxu0 }
 0x3e4   : > { %v5325_v25 = vadd.f32 %v10397_v62, %v5286_v49  ;;  %v7063_v24 = vpop.f32.mrf.mxu1  ;;  %v10537_v32 = vadd.f32 %v11232_v19, %v4841_v37  ;;  %v5598_v49 = vmul.f32 %v10348_v23, %v5502_v44  ;;  %v5603_v2 = vmul.f32 %v7101_v42, %v10348_v23  ;;  %v11235_v42 = vld [vmem:[#allocation90_spill] sm:$0xff] }
 0x3e5   : > { %5725 = vst.msk [vmem:[%s10440_s19 + $0x28] sm:$0xff] %vm2888_vm6, %v5693_v7  ;;  %v5698_v57 = vmax.f32 %v5666_v54, 0.0  ;;  %v5328_v22 = vadd.f32 %v10397_v62, %v5289_v48  ;;  %v5287_v53 = vmul.f32 %v10376_v41, %v5248_v59  ;;  %v5253_v4 = vadd.f32 %v7063_v24, %v10408_v13  ;;  %v5515_v51 = vpop.f32.mrf.mxu0  ;;  %v11233_v48 = vld [vmem:[#allocation73_spill] sm:$0xff]  ;;  %v11234_v59 = vld [vmem:[#allocation28_spill] sm:$0xff] }
 0x3e6   : > { %v5664_v27 = vadd.f32 %v5632_v55, %v5325_v25  ;;  %v5160_v29 = vpop.f32.mrf.mxu1  ;;  %v4842_v28 = vadd.f32 %v11234_v59, %v11233_v48  ;;  %v5639_v44 = vadd.f32 %v10371_v0, %v5600_v10  ;;  %v10556_v55 = vadd.f32 %v11235_v42, %v4839_v9 }
 0x3e7   : > { %5730 = vst.msk [vmem:[%s10440_s19 + $0x50] sm:$0xff] %vm2888_vm6, %v5698_v57  ;;  %v5667_v36 = vadd.f32 %v5635_v14, %v5328_v22  ;;  %v5326_v8 = vadd.f32 %v10397_v62, %v5287_v53  ;;  %v5292_v52 = vmul.f32 %v10376_v41, %v5253_v4  ;;  %v5251_v30 = vadd.f32 %v5160_v29, %v10414_v58  ;;  %v7102_v13 = vpop.f32.mrf.mxu0 }
 0x3e8   : > { %v5696_v21 = vmax.f32 %v5664_v27, 0.0  ;;  %v7064_v20 = vpop.f32.mrf.mxu1  ;;  %v5636_v58 = vadd.f32 %v10371_v0, %v5597_v12  ;;  %v5637_v22 = vadd.f32 %v10371_v0, %v5598_v49  ;;  %v5642_v4 = vadd.f32 %v10371_v0, %v5603_v2 }
 0x3e9   : > { %v5699_v15 = vmax.f32 %v5667_v36, 0.0  ;;  %v5665_v35 = vadd.f32 %v5633_v60, %v5326_v8  ;;  %v5331_v1 = vadd.f32 %v10397_v62, %v5292_v52  ;;  %v5290_v26 = vmul.f32 %v10376_v41, %v5251_v30  ;;  %v5518_v18 = vpop.f32.mrf.mxu0  ;;  %v11236_v36 = vld [vmem:[#allocation74_spill] sm:$0xff] }
 0x3ea   : > { %5728 = vst.msk [vmem:[%s10440_s19 + $0x40] sm:$0xff] %vm2888_vm6, %v5696_v21  ;;  %v5254_v11 = vadd.f32 %v7064_v20, %v10417_v33  ;;  %v5163_v37 = vpop.f32.mrf.mxu1  ;;  %v5601_v27 = vmul.f32 %v10348_v23, %v5515_v51  ;;  %v11237_v8 = vld [vmem:[#allocation46_spill] sm:$0xff]  ;;  %v5604_v5 = vmul.f32 %v7102_v13, %v10348_v23  ;;  %v11238_v21 = vld [vmem:[#allocation92_spill] sm:$0xff] }
 0x3eb   : > { %5731 = vst.msk [vmem:[%s10440_s19 + $0x58] sm:$0xff] %vm2888_vm6, %v5699_v15  ;;  %v5697_v38 = vmax.f32 %v5665_v35, 0.0  ;;  %v5670_v39 = vadd.f32 %v5638_v17, %v5331_v1  ;;  %v5329_v46 = vadd.f32 %v10397_v62, %v5290_v26  ;;  %v5252_v7 = vadd.f32 %v5163_v37, %v10422_v43  ;;  %v7105_v54 = vpop.f32.mrf.mxu0 }
 0x3ec   : > { %v5293_v33 = vmul.f32 %v10376_v41, %v5254_v11  ;;  %v7067_v61 = vpop.f32.mrf.mxu1  ;;  %v4845_v52 = vadd.f32 %v11237_v8, %v11236_v36  ;;  %v10575_v51 = vadd.f32 %v11238_v21, %v4844_v34  ;;  %v5640_v1 = vadd.f32 %v10371_v0, %v5601_v27  ;;  %v11239_v34 = vld [vmem:[#allocation49_spill] sm:$0xff] }
 0x3ed   : > { %5729 = vst.msk [vmem:[%s10440_s19 + $0x48] sm:$0xff] %vm2888_vm6, %v5697_v38  ;;  %v5702_v14 = vmax.f32 %v5670_v39, 0.0  ;;  %v5668_v25 = vadd.f32 %v5636_v58, %v5329_v46  ;;  %v5291_v24 = vmul.f32 %v10376_v41, %v5252_v7  ;;  %v5257_v43 = vadd.f32 %v7067_v61, %v10429_v63  ;;  %v5531_v57 = vpop.f32.mrf.mxu0  ;;  %v11240_v39 = vld [vmem:[#allocation51_spill] sm:$0xff] }
 0x3ee   : > { %v5332_v53 = vadd.f32 %v10397_v62, %v5293_v33  ;;  %v5176_v9 = vpop.f32.mrf.mxu1  ;;  %v5607_v13 = vmul.f32 %v7105_v54, %v10348_v23  ;;  %v10585_v58 = vadd.f32 %v11239_v34, %v4842_v28  ;;  %v5643_v7 = vadd.f32 %v10371_v0, %v5604_v5 }
 0x3ef   : > { %5734 = vst.msk [vmem:[%s10440_s19 + $0x70] sm:$0xff] %vm2888_vm6, %v5702_v14  ;;  %v5700_v60 = vmax.f32 %v5668_v25, 0.0  ;;  %v5330_v17 = vadd.f32 %v10397_v62, %v5291_v24  ;;  %v5296_v12 = vmul.f32 %v10376_v41, %v5257_v43  ;;  %v5255_v63 = vadd.f32 %v5176_v9, %v10445_v3  ;;  %v7106_v29 = vpop.f32.mrf.mxu0  ;;  %v11242_v43 = vld [vmem:[#allocation84_spill] sm:$0xff]  ;;  %v11243_v9 = vld [vmem:[#allocation89_spill] sm:$0xff] }
 0x3f0   : > { %v5671_v30 = vadd.f32 %v5639_v44, %v5332_v53  ;;  %v7068_v16 = vpop.f32.mrf.mxu1  ;;  %v5602_v54 = vmul.f32 %v10348_v23, %v5518_v18  ;;  %v5646_v14 = vadd.f32 %v10371_v0, %v5607_v13  ;;  %v5605_v24 = vmul.f32 %v10348_v23, %v5531_v57 }
 0x3f1   : > { %5732 = vst.msk [vmem:[%s10440_s19 + $0x60] sm:$0xff] %vm2888_vm6, %v5700_v60  ;;  %v5669_v10 = vadd.f32 %v5637_v22, %v5330_v17  ;;  %v5335_v20 = vadd.f32 %v10397_v62, %v5296_v12  ;;  %v5294_v19 = vmul.f32 %v10376_v41, %v5255_v63  ;;  %v5258_v3 = vadd.f32 %v7068_v16, %v10452_v31  ;;  %v5534_v15 = vpop.f32.mrf.mxu0  ;;  %v11241_v31 = vld [vmem:[#allocation29_spill] sm:$0xff] }
 0x3f2   : > { %v5703_v35 = vmax.f32 %v5671_v30, 0.0  ;;  %v5179_v26 = vpop.f32.mrf.mxu1  ;;  %v4843_v46 = vadd.f32 %v11241_v31, %v11240_v39  ;;  %v11244_v60 = vld [vmem:[#allocation77_spill] sm:$0xff]  ;;  %v5641_v12 = vadd.f32 %v10371_v0, %v5602_v54  ;;  %v5608_v63 = vmul.f32 %v7106_v29, %v10348_v23 }
 0x3f3   : > { %v5701_v49 = vmax.f32 %v5669_v10, 0.0  ;;  %v5674_v11 = vadd.f32 %v5642_v4, %v5335_v20  ;;  %v5333_v2 = vadd.f32 %v10397_v62, %v5294_v19  ;;  %v5297_v37 = vmul.f32 %v10376_v41, %v5258_v3  ;;  %v7109_v38 = vpop.f32.mrf.mxu0  ;;  %v11245_v19 = vld [vmem:[#allocation32_spill] sm:$0xff] }
 0x3f4   : > { %5735 = vst.msk [vmem:[%s10440_s19 + $0x78] sm:$0xff] %vm2888_vm6, %v5703_v35  ;;  %v5256_v48 = vadd.f32 %v5179_v26, %v10480_v45  ;;  %v7071_v59 = vpop.f32.mrf.mxu1  ;;  %v5057_v45 = vadd.f32 %v11242_v43, %v4845_v52  ;;  %v4848_v17 = vadd.f32 %v11244_v60, %v11243_v9  ;;  %v5644_v21 = vadd.f32 %v10371_v0, %v5605_v24  ;;  %v11246_v26 = vld [vmem:[#allocation26_spill] sm:$0xff] }
 0x3f5   : > { %5733 = vst.msk [vmem:[%s10440_s19 + $0x68] sm:$0xff] %vm2888_vm6, %v5701_v49  ;;  %v5706_v28 = vmax.f32 %v5674_v11, 0.0  ;;  %v5672_v44 = vadd.f32 %v5640_v1, %v5333_v2  ;;  %v5336_v33 = vadd.f32 %v10397_v62, %v5297_v37  ;;  %v5261_v61 = vadd.f32 %v7071_v59, %v10490_v50  ;;  %v5547_v42 = vpop.f32.mrf.mxu0 }
 0x3f6   : > { %v5295_v25 = vmul.f32 %v10376_v41, %v5256_v48  ;;  %v5192_v18 = vpop.f32.mrf.mxu1  ;;  %v5606_v10 = vmul.f32 %v10348_v23, %v5534_v15  ;;  %v5055_v3 = vadd.f32 %v11245_v19, %v4843_v46  ;;  %v4846_v34 = vadd.f32 %v10337_v56, %v11246_v26  ;;  %v11247_v48 = vld [vmem:[#allocation56_spill] sm:$0xff] }
 0x3f7   : > { %5738 = vst.msk [vmem:[%s10440_s19 + $0x90] sm:$0xff] %vm2888_vm6, %v5706_v28  ;;  %v5704_v22 = vmax.f32 %v5672_v44, 0.0  ;;  %v5675_v53 = vadd.f32 %v5643_v7, %v5336_v33  ;;  %v5300_v4 = vmul.f32 %v10376_v41, %v5261_v61  ;;  %v5259_v27 = vadd.f32 %v5192_v18, %v10509_v40  ;;  %v7110_v50 = vpop.f32.mrf.mxu0 }
 0x3f8   : > { %v5334_v57 = vadd.f32 %v10397_v62, %v5295_v25  ;;  %v7072_v36 = vpop.f32.mrf.mxu1  ;;  %v5647_v15 = vadd.f32 %v10371_v0, %v5608_v63  ;;  %v5611_v11 = vmul.f32 %v7109_v38, %v10348_v23  ;;  %v5609_v7 = vmul.f32 %v10348_v23, %v5547_v42 }
 0x3f9   : > { %5736 = vst.msk [vmem:[%s10440_s19 + $0x80] sm:$0xff] %vm2888_vm6, %v5704_v22  ;;  %v5707_v8 = vmax.f32 %v5675_v53, 0.0  ;;  %v5339_v52 = vadd.f32 %v10397_v62, %v5300_v4  ;;  %v5298_v30 = vmul.f32 %v10376_v41, %v5259_v27  ;;  %v5262_v40 = vadd.f32 %v7072_v36, %v10537_v32  ;;  %v5550_v5 = vpop.f32.mrf.mxu0 }
 0x3fa   : > { %v5673_v16 = vadd.f32 %v5641_v12, %v5334_v57  ;;  %v5195_v20 = vpop.f32.mrf.mxu1  ;;  %v5060_v59 = vadd.f32 %v11247_v48, %v4848_v17  ;;  %v5650_v42 = vadd.f32 %v10371_v0, %v5611_v11  ;;  %v5612_v24 = vmul.f32 %v7110_v50, %v10348_v23 }
 0x3fb   : > { %5739 = vst.msk [vmem:[%s10440_s19 + $0x98] sm:$0xff] %vm2888_vm6, %v5707_v8  ;;  %v5678_v29 = vadd.f32 %v5646_v14, %v5339_v52  ;;  %v5337_v35 = vadd.f32 %v10397_v62, %v5298_v30  ;;  %v5301_v1 = vmul.f32 %v10376_v41, %v5262_v40  ;;  %v5260_v13 = vadd.f32 %v5195_v20, %v10556_v55  ;;  %v7113_v32 = vpop.f32.mrf.mxu0  ;;  %v11248_v14 = vld [vmem:[#allocation91_spill] sm:$0xff]  ;;  %v11250_v40 = vld [vmem:[#allocation57_spill] sm:$0xff] }
 0x3fc   : > { %v5705_v49 = vmax.f32 %v5673_v16, 0.0  ;;  %v7075_v2 = vpop.f32.mrf.mxu1  ;;  %v5645_v55 = vadd.f32 %v10371_v0, %v5606_v10  ;;  %v4849_v25 = vadd.f32 %v10343_v47, %v11248_v14  ;;  %v5610_v47 = vmul.f32 %v10348_v23, %v5550_v5 }
 0x3fd   : > { %v5710_v37 = vmax.f32 %v5678_v29, 0.0  ;;  %v5676_v39 = vadd.f32 %v5644_v21, %v5337_v35  ;;  %v5340_v31 = vadd.f32 %v10397_v62, %v5301_v1  ;;  %v5299_v46 = vmul.f32 %v10376_v41, %v5260_v13  ;;  %v5563_v61 = vpop.f32.mrf.mxu0  ;;  %v11251_v35 = vld [vmem:[#allocation58_spill] sm:$0xff] }
 0x3fe   : > { %5737 = vst.msk [vmem:[%s10440_s19 + $0x88] sm:$0xff] %vm2888_vm6, %v5705_v49  ;;  %v5265_v56 = vadd.f32 %v7075_v2, %v10575_v51  ;;  %v5208_v54 = vpop.f32.mrf.mxu1  ;;  %v5615_v9 = vmul.f32 %v7113_v32, %v10348_v23  ;;  %v5651_v52 = vadd.f32 %v10371_v0, %v5612_v24  ;;  %v5058_v5 = vadd.f32 %v11250_v40, %v4846_v34 }
 0x3ff   : > { %5742 = vst.msk [vmem:[%s10440_s19 + $0xb0] sm:$0xff] %vm2888_vm6, %v5710_v37  ;;  %v5708_v38 = vmax.f32 %v5676_v39, 0.0  ;;  %v5679_v28 = vadd.f32 %v5647_v15, %v5340_v31  ;;  %v5338_v44 = vadd.f32 %v10397_v62, %v5299_v46  ;;  %v5263_v33 = vadd.f32 %v5208_v54, %v10585_v58  ;;  %v7114_v63 = vpop.f32.mrf.mxu0  ;;  %v11252_v39 = vld [vmem:[#allocation60_spill] sm:$0xff] }
 0x400   : > { %v5304_v51 = vmul.f32 %v10376_v41, %v5265_v56  ;;  %v7076_v18 = vpop.f32.mrf.mxu1  ;;  %v5648_v58 = vadd.f32 %v10371_v0, %v5609_v7  ;;  %v5061_v1 = vadd.f32 %v11251_v35, %v4849_v25  ;;  %v5613_v15 = vmul.f32 %v10348_v23, %v5563_v61 }
 0x401   : > { %5740 = vst.msk [vmem:[%s10440_s19 + $0xa0] sm:$0xff] %vm2888_vm6, %v5708_v38  ;;  %v5711_v43 = vmax.f32 %v5679_v28, 0.0  ;;  %v5677_v22 = vadd.f32 %v5645_v55, %v5338_v44  ;;  %v5302_v53 = vmul.f32 %v10376_v41, %v5263_v33  ;;  %v5266_v4 = vadd.f32 %v7076_v18, %v5057_v45  ;;  %v11249_v45 = vld [vmem:[#allocation76_spill] sm:$0xff]  ;;  %v5566_v49 = vpop.f32.mrf.mxu0 }
 0x402   : > { %v5343_v27 = vadd.f32 %v10397_v62, %v5304_v51  ;;  %v5211_v60 = vpop.f32.mrf.mxu1  ;;  %v4847_v36 = vadd.f32 %v10356_v6, %v11249_v45  ;;  %v5654_v6 = vadd.f32 %v10371_v0, %v5615_v9  ;;  %v5616_v11 = vmul.f32 %v7114_v63, %v10348_v23 }
 0x403   : > { %5743 = vst.msk [vmem:[%s10440_s19 + $0xb8] sm:$0xff] %vm2888_vm6, %v5711_v43  ;;  %v5709_v50 = vmax.f32 %v5677_v22, 0.0  ;;  %v5341_v17 = vadd.f32 %v10397_v62, %v5302_v53  ;;  %v5305_v12 = vmul.f32 %v10376_v41, %v5266_v4  ;;  %v5264_v57 = vadd.f32 %v5211_v60, %v5055_v3 }
 0x404   : > { %v5682_v8 = vadd.f32 %v5650_v42, %v5343_v27  ;;  %v7079_v30 = vpop.f32.mrf.mxu1  ;;  %v5649_v3 = vadd.f32 %v10371_v0, %v5610_v47  ;;  %v5059_v31 = vadd.f32 %v11252_v39, %v4847_v36  ;;  %v5614_v48 = vmul.f32 %v10348_v23, %v5566_v49 }
 0x405   : > { %5741 = vst.msk [vmem:[%s10440_s19 + $0xa8] sm:$0xff] %vm2888_vm6, %v5709_v50  ;;  %v5680_v16 = vadd.f32 %v5648_v58, %v5341_v17  ;;  %v5344_v21 = vadd.f32 %v10397_v62, %v5305_v12  ;;  %v5303_v10 = vmul.f32 %v10376_v41, %v5264_v57  ;;  %v5269_v20 = vadd.f32 %v7079_v30, %v5060_v59 }
 0x406   : > { %v5714_v19 = vmax.f32 %v5682_v8, 0.0  ;;  %v5224_v29 = vpop.f32.mrf.mxu1  ;;  %v5652_v61 = vadd.f32 %v10371_v0, %v5613_v15  ;;  %v5655_v23 = vadd.f32 %v10371_v0, %v5616_v11  ;;  %v5653_v18 = vadd.f32 %v10371_v0, %v5614_v48 }
 0x407   : > { %v5712_v13 = vmax.f32 %v5680_v16, 0.0  ;;  %v5683_v32 = vadd.f32 %v5651_v52, %v5344_v21  ;;  %v5342_v26 = vadd.f32 %v10397_v62, %v5303_v10  ;;  %v5308_v34 = vmul.f32 %v10376_v41, %v5269_v20 }
 0x408   : > { %5746 = vst.msk [vmem:[%s10440_s19 + $0xd0] sm:$0xff] %vm2888_vm6, %v5714_v19  ;;  %v5267_v2 = vadd.f32 %v5224_v29, %v5058_v5  ;;  %v7080_v37 = vpop.f32.mrf.mxu1 }
 0x409   : > { %5744 = vst.msk [vmem:[%s10440_s19 + $0xc0] sm:$0xff] %vm2888_vm6, %v5712_v13  ;;  %v5715_v46 = vmax.f32 %v5683_v32, 0.0  ;;  %v5681_v55 = vadd.f32 %v5649_v3, %v5342_v26  ;;  %v5347_v7 = vadd.f32 %v10397_v62, %v5308_v34  ;;  %v5270_v56 = vadd.f32 %v7080_v37, %v5061_v1 }
 0x40a   : > { %v5306_v54 = vmul.f32 %v10376_v41, %v5267_v2  ;;  %v5227_v59 = vpop.f32.mrf.mxu1 }
 0x40b   : > { %5747 = vst.msk [vmem:[%s10440_s19 + $0xd8] sm:$0xff] %vm2888_vm6, %v5715_v46  ;;  %v5713_v38 = vmax.f32 %v5681_v55, 0.0  ;;  %v5686_v28 = vadd.f32 %v5654_v6, %v5347_v7  ;;  %v5309_v44 = vmul.f32 %v10376_v41, %v5270_v56  ;;  %v5268_v33 = vadd.f32 %v5227_v59, %v5059_v31 }
 0x40c   : > { %v5345_v14 = vadd.f32 %v10397_v62, %v5306_v54 }
 0x40d   : > { %5745 = vst.msk [vmem:[%s10440_s19 + $0xc8] sm:$0xff] %vm2888_vm6, %v5713_v38  ;;  %v5718_v25 = vmax.f32 %v5686_v28, 0.0  ;;  %v5348_v42 = vadd.f32 %v10397_v62, %v5309_v44  ;;  %v5307_v51 = vmul.f32 %v10376_v41, %v5268_v33 }
 0x40e   : > { %v5684_v24 = vadd.f32 %v5652_v61, %v5345_v14 }
 0x40f   : > { %5750 = vst.msk [vmem:[%s10440_s19 + $0xf0] sm:$0xff] %vm2888_vm6, %v5718_v25  ;;  %v5687_v43 = vadd.f32 %v5655_v23, %v5348_v42  ;;  %v5346_v22 = vadd.f32 %v10397_v62, %v5307_v51 }
 0x410   : > { %v5716_v53 = vmax.f32 %v5684_v24, 0.0 }
 0x411   : > { %v5719_v4 = vmax.f32 %v5687_v43, 0.0  ;;  %v5685_v58 = vadd.f32 %v5653_v18, %v5346_v22 }
 0x412   : > { %5748 = vst.msk [vmem:[%s10440_s19 + $0xe0] sm:$0xff] %vm2888_vm6, %v5716_v53 }
 0x413   : > { %5751 = vst.msk [vmem:[%s10440_s19 + $0xf8] sm:$0xff] %vm2888_vm6, %v5719_v4  ;;  %v5717_v27 = vmax.f32 %v5685_v58, 0.0 }
 0x415   : > { %5749 = vst.msk [vmem:[%s10440_s19 + $0xe8] sm:$0xff] %vm2888_vm6, %v5717_v27 }
 0x416 PF: > { %s20_s13 = sadd.s32 1, %s7152_s13  }
 0x417   : > { %p17_p4 = scmp.ge.s32.totalorder %s20_s13, 4  }
 0x419   :  { %19 = sbr.rel (!%p17_p4) target bundleno = 1 (0x1), region = 108 }

</bundles_post_ra>
